<compile_context>
chip_gen: v7x
topology: tpu7x:2x2x1
jax: 0.10.0
libtpu: 0.0.40
codegen_flags: <defaults>
</compile_context>

<pallas_src>
import functools

import jax
import jax.numpy as jnp
from jax import lax
from jax.experimental import pallas as pl
from jax.experimental.pallas import tpu as pltpu

EPS = 1e-5  # nn.BatchNorm2d default eps


# ------------------------------ Pallas kernel ------------------------------ #
def _resblock_kernel(x_ref, w1_ref, b1_ref, w2_ref, b2_ref, o_ref,
                     xpad_ref, h1_ref, col_ref, *, H, W, nb):
    """Fused conv+BN+ReLU -> conv+BN -> +residual -> ReLU for `nb` images.

    x_ref   : (nb*H*W, C) f32   raw NHWC activations, flattened (residual source).
    w*_ref  : (9*C, C)   bf16   per-tap weights with BN scale folded in (resident).
    b*_ref  : (1, C)     f32    folded BN bias (resident).
    o_ref   : (nb*H*W, C) f32   final output (interior pixels only, final layout).
    xpad_ref: (nb*L, C)  f32    scratch: zero-padded image grid, built in VMEM.
    h1_ref  : (nb*L, C)  f32    scratch: conv1 activation on the padded grid
                                (its zero ring is conv2's zero padding).
    col_ref : (nb*M2, 9*C) bf16 scratch: im2col matrix, reused by both convs.
    """
    C = b1_ref.shape[1]
    P = W + 2
    L = (H + 2) * P
    M2 = H * P - 2
    HW = H * W
    offs = [(k // 3) * P + (k % 3) for k in range(9)]     # tap (dh,dw) -> flat offset

    # ---- Build the zero-padded grid in VMEM (pad + load fused; ring stays zero). ----
    xpad_ref[...] = jnp.zeros_like(xpad_ref)
    for b in range(nb):
        for h in range(H):
            xpad_ref[pl.ds(b * L + (h + 1) * P + 1, W), :] = (
                x_ref[pl.ds(b * HW + h * W, W), :])

    # ---- conv1 (+ folded BN): im2col in VMEM, then ONE K=9*C MXU matmul. ----
    for b in range(nb):
        for k, off in enumerate(offs):
            col_ref[pl.ds(b * M2, M2), pl.ds(k * C, C)] = (
                xpad_ref[pl.ds(b * L + off, M2), :].astype(col_ref.dtype))
    acc1 = jnp.dot(col_ref[...], w1_ref[...], preferred_element_type=jnp.float32)
    a1 = jnp.maximum(acc1 + b1_ref[...], 0.0)

    # h1 lives only in VMEM.  Zero it, then write the interior runs; the untouched
    # ring cells are exactly conv2's zero padding (no mask needed).
    h1_ref[...] = jnp.zeros_like(h1_ref)
    for b in range(nb):
        for h in range(H):
            r0 = b * M2 + h * P
            h1_ref[pl.ds(b * L + (h + 1) * P + 1, W), :] = a1[r0:r0 + W, :]

    # ---- conv2 (+ folded BN): same im2col trick on h1 (col scratch reused). ----
    for b in range(nb):
        for k, off in enumerate(offs):
            col_ref[pl.ds(b * M2, M2), pl.ds(k * C, C)] = (
                h1_ref[pl.ds(b * L + off, M2), :].astype(col_ref.dtype))
    acc2 = jnp.dot(col_ref[...], w2_ref[...], preferred_element_type=jnp.float32)
    y = acc2 + b2_ref[...]

    # ---- residual (original f32 input) + final ReLU; store interior pixels only,
    #      directly in the final (nb*H*W, C) layout. ----
    for b in range(nb):
        for h in range(H):
            r0 = b * M2 + h * P
            o_ref[pl.ds(b * HW + h * W, W), :] = jnp.maximum(
                y[r0:r0 + W, :] + x_ref[pl.ds(b * HW + h * W, W), :], 0.0)


# ------------------------------- JAX wrapper -------------------------------- #
def _fold_conv_bn(w_oihw, conv_bias, gamma, beta, mean, var):
    """Fold eval-mode BN into the conv: scale into weights, shift into a bias."""
    cout, cin = w_oihw.shape[0], w_oihw.shape[1]
    scale = gamma / jnp.sqrt(var + EPS)                               # (Cout,)
    w = jnp.transpose(w_oihw, (2, 3, 1, 0)).reshape(9 * cin, cout)    # (9*Cin, Cout)
    w = (w * scale[None, :]).astype(jnp.bfloat16)
    bias = ((conv_bias - mean) * scale + beta).reshape(1, cout).astype(jnp.float32)
    return w, bias


def _pick_images_per_step(n, rows_per_image, target_rows=1024):
    """Batch enough images per grid step to amortize the fixed per-step cost, but keep
    >= 2 grid steps when the batch allows it (v7x has two TensorCores)."""
    divisors = [d for d in range(1, n + 1) if n % d == 0]
    fits = [d for d in divisors if d * rows_per_image <= target_rows] or [1]
    keeps_two = [d for d in fits if n // d >= 2]
    return max(keeps_two) if keeps_two else max(fits)


def resblock_forward(x_nchw, params, *, images_per_step=None):
    N, C, H, W = x_nchw.shape
    P = W + 2                    # padded row stride
    L = (H + 2) * P              # padded-grid size (flat, per image)
    M2 = H * P - 2               # flat conv window covering every interior pixel
    HW = H * W

    nb = images_per_step if images_per_step is not None else _pick_images_per_step(N, M2)
    assert N % nb == 0

    # NCHW -> NHWC (lane dim must be C) and flatten; no padding / no extra HBM copy.
    # TODO(synk): if the surrounding model keeps activations NHWC, this transpose and
    #   the one on the output can be dropped entirely.
    x_flat = jnp.transpose(x_nchw, (0, 2, 3, 1)).reshape(N * HW, C)

    w1, b1 = _fold_conv_bn(params["w1"], params["b1"], params["bn1_gamma"],
                           params["bn1_beta"], params["bn1_mean"], params["bn1_var"])
    w2, b2 = _fold_conv_bn(params["w2"], params["b2"], params["bn2_gamma"],
                           params["bn2_beta"], params["bn2_mean"], params["bn2_var"])

    kernel = functools.partial(_resblock_kernel, H=H, W=W, nb=nb)
    out_flat = pl.pallas_call(
        kernel,
        out_shape=jax.ShapeDtypeStruct((N * HW, C), jnp.float32),
        grid=(N // nb,),
        in_specs=[
            pl.BlockSpec((nb * HW, C), lambda n: (n, 0)),   # streamed activations (f32)
            pl.BlockSpec((9 * C, C), lambda n: (0, 0)),     # resident folded weights
            pl.BlockSpec((1, C), lambda n: (0, 0)),         # resident folded bias
            pl.BlockSpec((9 * C, C), lambda n: (0, 0)),
            pl.BlockSpec((1, C), lambda n: (0, 0)),
        ],
        out_specs=pl.BlockSpec((nb * HW, C), lambda n: (n, 0)),
        scratch_shapes=[
            pltpu.VMEM((nb * L, C), jnp.float32),            # xpad (padded grid)
            pltpu.VMEM((nb * L, C), jnp.float32),            # h1
            pltpu.VMEM((nb * M2, 9 * C), jnp.bfloat16),      # im2col (shared by both convs)
        ],
        compiler_params=pltpu.CompilerParams(
            dimension_semantics=("parallel",),
            vmem_limit_bytes=32 * 1024 * 1024),
    )(x_flat, w1, b1, w2, b2)

    out = out_flat.reshape(N, H, W, C)
    return jnp.transpose(out, (0, 3, 1, 2))                  # back to NCHW


# --------------------------- deterministic params --------------------------- #
def init_resblock_params(key, num_filters):
    C = num_filters
    ks = jax.random.split(key, 12)
    return {
        "w1": 0.05 * jax.random.normal(ks[0], (C, C, 3, 3), jnp.float32),
        "b1": 0.10 * jax.random.normal(ks[1], (C,), jnp.float32),
        "w2": 0.05 * jax.random.normal(ks[2], (C, C, 3, 3), jnp.float32),
        "b2": 0.10 * jax.random.normal(ks[3], (C,), jnp.float32),
        "bn1_gamma": 1.0 + 0.1 * jax.random.normal(ks[4], (C,), jnp.float32),
        "bn1_beta": 0.1 * jax.random.normal(ks[5], (C,), jnp.float32),
        "bn1_mean": 0.05 * jax.random.normal(ks[6], (C,), jnp.float32),
        "bn1_var": jnp.abs(1.0 + 0.1 * jax.random.normal(ks[7], (C,), jnp.float32)),
        "bn2_gamma": 1.0 + 0.1 * jax.random.normal(ks[8], (C,), jnp.float32),
        "bn2_beta": 0.1 * jax.random.normal(ks[9], (C,), jnp.float32),
        "bn2_mean": 0.05 * jax.random.normal(ks[10], (C,), jnp.float32),
        "bn2_var": jnp.abs(1.0 + 0.1 * jax.random.normal(ks[11], (C,), jnp.float32)),
    }


# -------------------------------- reference --------------------------------- #
def resblock_reference(x_nchw, params):
    x = jnp.transpose(x_nchw, (0, 2, 3, 1))

    def conv(h, w, b):
        w_hwio = jnp.transpose(w, (2, 3, 1, 0))
        y = lax.conv_general_dilated(h, w_hwio, (1, 1), ((1, 1), (1, 1)),
                                     dimension_numbers=("NHWC", "HWIO", "NHWC"))
        return y + b

    def bn(h, g, bt, m, v):
        return (h - m) / jnp.sqrt(v + EPS) * g + bt

    h = jax.nn.relu(bn(conv(x, params["w1"], params["b1"]),
                       params["bn1_gamma"], params["bn1_beta"],
                       params["bn1_mean"], params["bn1_var"]))
    h = bn(conv(h, params["w2"], params["b2"]),
           params["bn2_gamma"], params["bn2_beta"],
           params["bn2_mean"], params["bn2_var"])
    return jnp.transpose(jax.nn.relu(x + h), (0, 3, 1, 2))


if __name__ == "__main__":
    key = jax.random.PRNGKey(0)
    kx, kp = jax.random.split(key)
    # Module default num_filters=256 (lane-dense / MXU-friendly), small spatial extent.
    N, C, H, W = 2, 256, 8, 8
    x = jax.random.normal(kx, (N, C, H, W), jnp.float32)
    params = init_resblock_params(kp, C)

    out = jax.block_until_ready(jax.jit(resblock_forward)(x, params))
    ref = resblock_reference(x, params)

    assert out.shape == (N, C, H, W)
    max_err = float(jnp.max(jnp.abs(out - ref)))
    # bf16 MXU operands (f32 accumulation, f32 residual) through two 9*C = 2304-term
    # convolutions: a few 1e-2 absolute error on O(1..5) outputs is expected.
    assert jnp.allclose(out, ref, atol=8e-2, rtol=2e-2), f"max abs err {max_err}"
    print("KERNEL_OK")
</pallas_src>

<mosaic_0001>
module attributes {stable_mosaic.version = 11 : i64} {
  func.func @_resblock_kernel(%arg0: i32, %arg1: memref<64x256xf32, #tpu.memory_space<vmem>>, %arg2: memref<2304x256xbf16, #tpu.memory_space<vmem>>, %arg3: memref<1x256xf32, #tpu.memory_space<vmem>>, %arg4: memref<2304x256xbf16, #tpu.memory_space<vmem>>, %arg5: memref<1x256xf32, #tpu.memory_space<vmem>>, %arg6: memref<64x256xf32, #tpu.memory_space<vmem>>, %arg7: memref<100x256xf32, #tpu.memory_space<vmem>>, %arg8: memref<100x256xf32, #tpu.memory_space<vmem>>, %arg9: memref<78x2304xbf16, #tpu.memory_space<vmem>>) attributes {dimension_semantics = [#tpu.dimension_semantics<parallel>], iteration_bounds = array<i64: 2>, scalar_prefetch = 0 : i64, scratch_operands = 3 : i64, tpu.core_type = #tpu.core_type<tc>, window_params = [{transform_indices = @transform_0, window_bounds = array<i64: 64, 256>}, {pipeline_mode = #tpu.pipeline_mode<synchronous>, transform_indices = @transform_1, window_bounds = array<i64: 2304, 256>}, {pipeline_mode = #tpu.pipeline_mode<synchronous>, transform_indices = @transform_2, window_bounds = array<i64: 1, 256>}, {pipeline_mode = #tpu.pipeline_mode<synchronous>, transform_indices = @transform_3, window_bounds = array<i64: 2304, 256>}, {pipeline_mode = #tpu.pipeline_mode<synchronous>, transform_indices = @transform_4, window_bounds = array<i64: 1, 256>}, {transform_indices = @transform_5, window_bounds = array<i64: 64, 256>}]} {
    %cst = arith.constant 0.000000e+00 : f32
    %0 = vector.broadcast %cst : f32 to vector<100x256xf32>
    %c0 = arith.constant 0 : index
    %c0_0 = arith.constant 0 : index
    %1 = vector.load %arg7[%c0, %c0_0] : memref<100x256xf32, #tpu.memory_space<vmem>>, vector<100x256xf32>
    tpu.vector_store %arg7[%c0, %c0_0], %0 {strides = array<i32>} : memref<100x256xf32, #tpu.memory_space<vmem>>, vector<100x256xf32>,
    %c0_1 = arith.constant 0 : index
    %c0_2 = arith.constant 0 : index
    %2 = vector.load %arg1[%c0_1, %c0_2] : memref<64x256xf32, #tpu.memory_space<vmem>>, vector<8x256xf32>
    %c11 = arith.constant 11 : index
    %c0_3 = arith.constant 0 : index
    %3 = vector.load %arg7[%c11, %c0_3] : memref<100x256xf32, #tpu.memory_space<vmem>>, vector<8x256xf32>
    tpu.vector_store %arg7[%c11, %c0_3], %2 {strides = array<i32>} : memref<100x256xf32, #tpu.memory_space<vmem>>, vector<8x256xf32>,
    %c8 = arith.constant 8 : index
    %c0_4 = arith.constant 0 : index
    %4 = vector.load %arg1[%c8, %c0_4] : memref<64x256xf32, #tpu.memory_space<vmem>>, vector<8x256xf32>
    %c21 = arith.constant 21 : index
    %c0_5 = arith.constant 0 : index
    %5 = vector.load %arg7[%c21, %c0_5] : memref<100x256xf32, #tpu.memory_space<vmem>>, vector<8x256xf32>
    tpu.vector_store %arg7[%c21, %c0_5], %4 {strides = array<i32>} : memref<100x256xf32, #tpu.memory_space<vmem>>, vector<8x256xf32>,
    %c16 = arith.constant 16 : index
    %c0_6 = arith.constant 0 : index
    %6 = vector.load %arg1[%c16, %c0_6] : memref<64x256xf32, #tpu.memory_space<vmem>>, vector<8x256xf32>
    %c31 = arith.constant 31 : index
    %c0_7 = arith.constant 0 : index
    %7 = vector.load %arg7[%c31, %c0_7] : memref<100x256xf32, #tpu.memory_space<vmem>>, vector<8x256xf32>
    tpu.vector_store %arg7[%c31, %c0_7], %6 {strides = array<i32>} : memref<100x256xf32, #tpu.memory_space<vmem>>, vector<8x256xf32>,
    %c24 = arith.constant 24 : index
    %c0_8 = arith.constant 0 : index
    %8 = vector.load %arg1[%c24, %c0_8] : memref<64x256xf32, #tpu.memory_space<vmem>>, vector<8x256xf32>
    %c41 = arith.constant 41 : index
    %c0_9 = arith.constant 0 : index
    %9 = vector.load %arg7[%c41, %c0_9] : memref<100x256xf32, #tpu.memory_space<vmem>>, vector<8x256xf32>
    tpu.vector_store %arg7[%c41, %c0_9], %8 {strides = array<i32>} : memref<100x256xf32, #tpu.memory_space<vmem>>, vector<8x256xf32>,
    %c32 = arith.constant 32 : index
    %c0_10 = arith.constant 0 : index
    %10 = vector.load %arg1[%c32, %c0_10] : memref<64x256xf32, #tpu.memory_space<vmem>>, vector<8x256xf32>
    %c51 = arith.constant 51 : index
    %c0_11 = arith.constant 0 : index
    %11 = vector.load %arg7[%c51, %c0_11] : memref<100x256xf32, #tpu.memory_space<vmem>>, vector<8x256xf32>
    tpu.vector_store %arg7[%c51, %c0_11], %10 {strides = array<i32>} : memref<100x256xf32, #tpu.memory_space<vmem>>, vector<8x256xf32>,
    %c40 = arith.constant 40 : index
    %c0_12 = arith.constant 0 : index
    %12 = vector.load %arg1[%c40, %c0_12] : memref<64x256xf32, #tpu.memory_space<vmem>>, vector<8x256xf32>
    %c61 = arith.constant 61 : index
    %c0_13 = arith.constant 0 : index
    %13 = vector.load %arg7[%c61, %c0_13] : memref<100x256xf32, #tpu.memory_space<vmem>>, vector<8x256xf32>
    tpu.vector_store %arg7[%c61, %c0_13], %12 {strides = array<i32>} : memref<100x256xf32, #tpu.memory_space<vmem>>, vector<8x256xf32>,
    %c48 = arith.constant 48 : index
    %c0_14 = arith.constant 0 : index
    %14 = vector.load %arg1[%c48, %c0_14] : memref<64x256xf32, #tpu.memory_space<vmem>>, vector<8x256xf32>
    %c71 = arith.constant 71 : index
    %c0_15 = arith.constant 0 : index
    %15 = vector.load %arg7[%c71, %c0_15] : memref<100x256xf32, #tpu.memory_space<vmem>>, vector<8x256xf32>
    tpu.vector_store %arg7[%c71, %c0_15], %14 {strides = array<i32>} : memref<100x256xf32, #tpu.memory_space<vmem>>, vector<8x256xf32>,
    %c56 = arith.constant 56 : index
    %c0_16 = arith.constant 0 : index
    %16 = vector.load %arg1[%c56, %c0_16] : memref<64x256xf32, #tpu.memory_space<vmem>>, vector<8x256xf32>
    %c81 = arith.constant 81 : index
    %c0_17 = arith.constant 0 : index
    %17 = vector.load %arg7[%c81, %c0_17] : memref<100x256xf32, #tpu.memory_space<vmem>>, vector<8x256xf32>
    tpu.vector_store %arg7[%c81, %c0_17], %16 {strides = array<i32>} : memref<100x256xf32, #tpu.memory_space<vmem>>, vector<8x256xf32>,
    %c0_18 = arith.constant 0 : index
    %c0_19 = arith.constant 0 : index
    %18 = vector.load %arg7[%c0_18, %c0_19] : memref<100x256xf32, #tpu.memory_space<vmem>>, vector<78x256xf32>
    %19 = arith.truncf %18 : vector<78x256xf32> to vector<78x256xbf16>
    %c0_20 = arith.constant 0 : index
    %c0_21 = arith.constant 0 : index
    %20 = vector.load %arg9[%c0_20, %c0_21] : memref<78x2304xbf16, #tpu.memory_space<vmem>>, vector<78x256xbf16>
    tpu.vector_store %arg9[%c0_20, %c0_21], %19 {strides = array<i32>} : memref<78x2304xbf16, #tpu.memory_space<vmem>>, vector<78x256xbf16>,
    %c1 = arith.constant 1 : index
    %c0_22 = arith.constant 0 : index
    %21 = vector.load %arg7[%c1, %c0_22] : memref<100x256xf32, #tpu.memory_space<vmem>>, vector<78x256xf32>
    %22 = arith.truncf %21 : vector<78x256xf32> to vector<78x256xbf16>
    %c0_23 = arith.constant 0 : index
    %c256 = arith.constant 256 : index
    %23 = vector.load %arg9[%c0_23, %c256] : memref<78x2304xbf16, #tpu.memory_space<vmem>>, vector<78x256xbf16>
    tpu.vector_store %arg9[%c0_23, %c256], %22 {strides = array<i32>} : memref<78x2304xbf16, #tpu.memory_space<vmem>>, vector<78x256xbf16>,
    %c2 = arith.constant 2 : index
    %c0_24 = arith.constant 0 : index
    %24 = vector.load %arg7[%c2, %c0_24] : memref<100x256xf32, #tpu.memory_space<vmem>>, vector<78x256xf32>
    %25 = arith.truncf %24 : vector<78x256xf32> to vector<78x256xbf16>
    %c0_25 = arith.constant 0 : index
    %c512 = arith.constant 512 : index
    %26 = vector.load %arg9[%c0_25, %c512] : memref<78x2304xbf16, #tpu.memory_space<vmem>>, vector<78x256xbf16>
    tpu.vector_store %arg9[%c0_25, %c512], %25 {strides = array<i32>} : memref<78x2304xbf16, #tpu.memory_space<vmem>>, vector<78x256xbf16>,
    %c10 = arith.constant 10 : index
    %c0_26 = arith.constant 0 : index
    %27 = vector.load %arg7[%c10, %c0_26] : memref<100x256xf32, #tpu.memory_space<vmem>>, vector<78x256xf32>
    %28 = arith.truncf %27 : vector<78x256xf32> to vector<78x256xbf16>
    %c0_27 = arith.constant 0 : index
    %c768 = arith.constant 768 : index
    %29 = vector.load %arg9[%c0_27, %c768] : memref<78x2304xbf16, #tpu.memory_space<vmem>>, vector<78x256xbf16>
    tpu.vector_store %arg9[%c0_27, %c768], %28 {strides = array<i32>} : memref<78x2304xbf16, #tpu.memory_space<vmem>>, vector<78x256xbf16>,
    %c11_28 = arith.constant 11 : index
    %c0_29 = arith.constant 0 : index
    %30 = vector.load %arg7[%c11_28, %c0_29] : memref<100x256xf32, #tpu.memory_space<vmem>>, vector<78x256xf32>
    %31 = arith.truncf %30 : vector<78x256xf32> to vector<78x256xbf16>
    %c0_30 = arith.constant 0 : index
    %c1024 = arith.constant 1024 : index
    %32 = vector.load %arg9[%c0_30, %c1024] : memref<78x2304xbf16, #tpu.memory_space<vmem>>, vector<78x256xbf16>
    tpu.vector_store %arg9[%c0_30, %c1024], %31 {strides = array<i32>} : memref<78x2304xbf16, #tpu.memory_space<vmem>>, vector<78x256xbf16>,
    %c12 = arith.constant 12 : index
    %c0_31 = arith.constant 0 : index
    %33 = vector.load %arg7[%c12, %c0_31] : memref<100x256xf32, #tpu.memory_space<vmem>>, vector<78x256xf32>
    %34 = arith.truncf %33 : vector<78x256xf32> to vector<78x256xbf16>
    %c0_32 = arith.constant 0 : index
    %c1280 = arith.constant 1280 : index
    %35 = vector.load %arg9[%c0_32, %c1280] : memref<78x2304xbf16, #tpu.memory_space<vmem>>, vector<78x256xbf16>
    tpu.vector_store %arg9[%c0_32, %c1280], %34 {strides = array<i32>} : memref<78x2304xbf16, #tpu.memory_space<vmem>>, vector<78x256xbf16>,
    %c20 = arith.constant 20 : index
    %c0_33 = arith.constant 0 : index
    %36 = vector.load %arg7[%c20, %c0_33] : memref<100x256xf32, #tpu.memory_space<vmem>>, vector<78x256xf32>
    %37 = arith.truncf %36 : vector<78x256xf32> to vector<78x256xbf16>
    %c0_34 = arith.constant 0 : index
    %c1536 = arith.constant 1536 : index
    %38 = vector.load %arg9[%c0_34, %c1536] : memref<78x2304xbf16, #tpu.memory_space<vmem>>, vector<78x256xbf16>
    tpu.vector_store %arg9[%c0_34, %c1536], %37 {strides = array<i32>} : memref<78x2304xbf16, #tpu.memory_space<vmem>>, vector<78x256xbf16>,
    %c21_35 = arith.constant 21 : index
    %c0_36 = arith.constant 0 : index
    %39 = vector.load %arg7[%c21_35, %c0_36] : memref<100x256xf32, #tpu.memory_space<vmem>>, vector<78x256xf32>
    %40 = arith.truncf %39 : vector<78x256xf32> to vector<78x256xbf16>
    %c0_37 = arith.constant 0 : index
    %c1792 = arith.constant 1792 : index
    %41 = vector.load %arg9[%c0_37, %c1792] : memref<78x2304xbf16, #tpu.memory_space<vmem>>, vector<78x256xbf16>
    tpu.vector_store %arg9[%c0_37, %c1792], %40 {strides = array<i32>} : memref<78x2304xbf16, #tpu.memory_space<vmem>>, vector<78x256xbf16>,
    %c22 = arith.constant 22 : index
    %c0_38 = arith.constant 0 : index
    %42 = vector.load %arg7[%c22, %c0_38] : memref<100x256xf32, #tpu.memory_space<vmem>>, vector<78x256xf32>
    %43 = arith.truncf %42 : vector<78x256xf32> to vector<78x256xbf16>
    %c0_39 = arith.constant 0 : index
    %c2048 = arith.constant 2048 : index
    %44 = vector.load %arg9[%c0_39, %c2048] : memref<78x2304xbf16, #tpu.memory_space<vmem>>, vector<78x256xbf16>
    tpu.vector_store %arg9[%c0_39, %c2048], %43 {strides = array<i32>} : memref<78x2304xbf16, #tpu.memory_space<vmem>>, vector<78x256xbf16>,
    %c0_40 = arith.constant 0 : index
    %c0_41 = arith.constant 0 : index
    %45 = vector.load %arg9[%c0_40, %c0_41] : memref<78x2304xbf16, #tpu.memory_space<vmem>>, vector<78x2304xbf16>
    %c0_42 = arith.constant 0 : index
    %c0_43 = arith.constant 0 : index
    %46 = vector.load %arg2[%c0_42, %c0_43] : memref<2304x256xbf16, #tpu.memory_space<vmem>>, vector<2304x256xbf16>
    %cst_44 = arith.constant dense<0.000000e+00> : vector<78x256xf32>
    %47 = tpu.matmul %45, %46, %cst_44 {dimension_numbers = #tpu.dot_dimension_numbers<[1], [0], [0], [1], [0, 0, 1, 1], [], []>} : vector<78x2304xbf16>, vector<2304x256xbf16>, vector<78x256xf32> -> vector<78x256xf32>
    %c0_45 = arith.constant 0 : index
    %c0_46 = arith.constant 0 : index
    %48 = vector.load %arg3[%c0_45, %c0_46] : memref<1x256xf32, #tpu.memory_space<vmem>>, vector<1x256xf32>
    %49 = vector.broadcast %48 : vector<1x256xf32> to vector<78x256xf32>
    %50 = arith.addf %47, %49 : vector<78x256xf32>
    %cst_47 = arith.constant 0.000000e+00 : f32
    %51 = vector.broadcast %cst_47 : f32 to vector<78x256xf32>
    %52 = arith.maximumf %50, %51 : vector<78x256xf32>
    %cst_48 = arith.constant 0.000000e+00 : f32
    %53 = vector.broadcast %cst_48 : f32 to vector<100x256xf32>
    %c0_49 = arith.constant 0 : index
    %c0_50 = arith.constant 0 : index
    %54 = vector.load %arg8[%c0_49, %c0_50] : memref<100x256xf32, #tpu.memory_space<vmem>>, vector<100x256xf32>
    tpu.vector_store %arg8[%c0_49, %c0_50], %53 {strides = array<i32>} : memref<100x256xf32, #tpu.memory_space<vmem>>, vector<100x256xf32>,
    %55 = vector.extract_strided_slice %52 {offsets = [0, 0], sizes = [8, 256], strides = [1, 1]} : vector<78x256xf32> to vector<8x256xf32>
    %c11_51 = arith.constant 11 : index
    %c0_52 = arith.constant 0 : index
    %56 = vector.load %arg8[%c11_51, %c0_52] : memref<100x256xf32, #tpu.memory_space<vmem>>, vector<8x256xf32>
    tpu.vector_store %arg8[%c11_51, %c0_52], %55 {strides = array<i32>} : memref<100x256xf32, #tpu.memory_space<vmem>>, vector<8x256xf32>,
    %57 = vector.extract_strided_slice %52 {offsets = [10, 0], sizes = [8, 256], strides = [1, 1]} : vector<78x256xf32> to vector<8x256xf32>
    %c21_53 = arith.constant 21 : index
    %c0_54 = arith.constant 0 : index
    %58 = vector.load %arg8[%c21_53, %c0_54] : memref<100x256xf32, #tpu.memory_space<vmem>>, vector<8x256xf32>
    tpu.vector_store %arg8[%c21_53, %c0_54], %57 {strides = array<i32>} : memref<100x256xf32, #tpu.memory_space<vmem>>, vector<8x256xf32>,
    %59 = vector.extract_strided_slice %52 {offsets = [20, 0], sizes = [8, 256], strides = [1, 1]} : vector<78x256xf32> to vector<8x256xf32>
    %c31_55 = arith.constant 31 : index
    %c0_56 = arith.constant 0 : index
    %60 = vector.load %arg8[%c31_55, %c0_56] : memref<100x256xf32, #tpu.memory_space<vmem>>, vector<8x256xf32>
    tpu.vector_store %arg8[%c31_55, %c0_56], %59 {strides = array<i32>} : memref<100x256xf32, #tpu.memory_space<vmem>>, vector<8x256xf32>,
    %61 = vector.extract_strided_slice %52 {offsets = [30, 0], sizes = [8, 256], strides = [1, 1]} : vector<78x256xf32> to vector<8x256xf32>
    %c41_57 = arith.constant 41 : index
    %c0_58 = arith.constant 0 : index
    %62 = vector.load %arg8[%c41_57, %c0_58] : memref<100x256xf32, #tpu.memory_space<vmem>>, vector<8x256xf32>
    tpu.vector_store %arg8[%c41_57, %c0_58], %61 {strides = array<i32>} : memref<100x256xf32, #tpu.memory_space<vmem>>, vector<8x256xf32>,
    %63 = vector.extract_strided_slice %52 {offsets = [40, 0], sizes = [8, 256], strides = [1, 1]} : vector<78x256xf32> to vector<8x256xf32>
    %c51_59 = arith.constant 51 : index
    %c0_60 = arith.constant 0 : index
    %64 = vector.load %arg8[%c51_59, %c0_60] : memref<100x256xf32, #tpu.memory_space<vmem>>, vector<8x256xf32>
    tpu.vector_store %arg8[%c51_59, %c0_60], %63 {strides = array<i32>} : memref<100x256xf32, #tpu.memory_space<vmem>>, vector<8x256xf32>,
    %65 = vector.extract_strided_slice %52 {offsets = [50, 0], sizes = [8, 256], strides = [1, 1]} : vector<78x256xf32> to vector<8x256xf32>
    %c61_61 = arith.constant 61 : index
    %c0_62 = arith.constant 0 : index
    %66 = vector.load %arg8[%c61_61, %c0_62] : memref<100x256xf32, #tpu.memory_space<vmem>>, vector<8x256xf32>
    tpu.vector_store %arg8[%c61_61, %c0_62], %65 {strides = array<i32>} : memref<100x256xf32, #tpu.memory_space<vmem>>, vector<8x256xf32>,
    %67 = vector.extract_strided_slice %52 {offsets = [60, 0], sizes = [8, 256], strides = [1, 1]} : vector<78x256xf32> to vector<8x256xf32>
    %c71_63 = arith.constant 71 : index
    %c0_64 = arith.constant 0 : index
    %68 = vector.load %arg8[%c71_63, %c0_64] : memref<100x256xf32, #tpu.memory_space<vmem>>, vector<8x256xf32>
    tpu.vector_store %arg8[%c71_63, %c0_64], %67 {strides = array<i32>} : memref<100x256xf32, #tpu.memory_space<vmem>>, vector<8x256xf32>,
    %69 = vector.extract_strided_slice %52 {offsets = [70, 0], sizes = [8, 256], strides = [1, 1]} : vector<78x256xf32> to vector<8x256xf32>
    %c81_65 = arith.constant 81 : index
    %c0_66 = arith.constant 0 : index
    %70 = vector.load %arg8[%c81_65, %c0_66] : memref<100x256xf32, #tpu.memory_space<vmem>>, vector<8x256xf32>
    tpu.vector_store %arg8[%c81_65, %c0_66], %69 {strides = array<i32>} : memref<100x256xf32, #tpu.memory_space<vmem>>, vector<8x256xf32>,
    %c0_67 = arith.constant 0 : index
    %c0_68 = arith.constant 0 : index
    %71 = vector.load %arg8[%c0_67, %c0_68] : memref<100x256xf32, #tpu.memory_space<vmem>>, vector<78x256xf32>
    %72 = arith.truncf %71 : vector<78x256xf32> to vector<78x256xbf16>
    %c0_69 = arith.constant 0 : index
    %c0_70 = arith.constant 0 : index
    %73 = vector.load %arg9[%c0_69, %c0_70] : memref<78x2304xbf16, #tpu.memory_space<vmem>>, vector<78x256xbf16>
    tpu.vector_store %arg9[%c0_69, %c0_70], %72 {strides = array<i32>} : memref<78x2304xbf16, #tpu.memory_space<vmem>>, vector<78x256xbf16>,
    %c1_71 = arith.constant 1 : index
    %c0_72 = arith.constant 0 : index
    %74 = vector.load %arg8[%c1_71, %c0_72] : memref<100x256xf32, #tpu.memory_space<vmem>>, vector<78x256xf32>
    %75 = arith.truncf %74 : vector<78x256xf32> to vector<78x256xbf16>
    %c0_73 = arith.constant 0 : index
    %c256_74 = arith.constant 256 : index
    %76 = vector.load %arg9[%c0_73, %c256_74] : memref<78x2304xbf16, #tpu.memory_space<vmem>>, vector<78x256xbf16>
    tpu.vector_store %arg9[%c0_73, %c256_74], %75 {strides = array<i32>} : memref<78x2304xbf16, #tpu.memory_space<vmem>>, vector<78x256xbf16>,
    %c2_75 = arith.constant 2 : index
    %c0_76 = arith.constant 0 : index
    %77 = vector.load %arg8[%c2_75, %c0_76] : memref<100x256xf32, #tpu.memory_space<vmem>>, vector<78x256xf32>
    %78 = arith.truncf %77 : vector<78x256xf32> to vector<78x256xbf16>
    %c0_77 = arith.constant 0 : index
    %c512_78 = arith.constant 512 : index
    %79 = vector.load %arg9[%c0_77, %c512_78] : memref<78x2304xbf16, #tpu.memory_space<vmem>>, vector<78x256xbf16>
    tpu.vector_store %arg9[%c0_77, %c512_78], %78 {strides = array<i32>} : memref<78x2304xbf16, #tpu.memory_space<vmem>>, vector<78x256xbf16>,
    %c10_79 = arith.constant 10 : index
    %c0_80 = arith.constant 0 : index
    %80 = vector.load %arg8[%c10_79, %c0_80] : memref<100x256xf32, #tpu.memory_space<vmem>>, vector<78x256xf32>
    %81 = arith.truncf %80 : vector<78x256xf32> to vector<78x256xbf16>
    %c0_81 = arith.constant 0 : index
    %c768_82 = arith.constant 768 : index
    %82 = vector.load %arg9[%c0_81, %c768_82] : memref<78x2304xbf16, #tpu.memory_space<vmem>>, vector<78x256xbf16>
    tpu.vector_store %arg9[%c0_81, %c768_82], %81 {strides = array<i32>} : memref<78x2304xbf16, #tpu.memory_space<vmem>>, vector<78x256xbf16>,
    %c11_83 = arith.constant 11 : index
    %c0_84 = arith.constant 0 : index
    %83 = vector.load %arg8[%c11_83, %c0_84] : memref<100x256xf32, #tpu.memory_space<vmem>>, vector<78x256xf32>
    %84 = arith.truncf %83 : vector<78x256xf32> to vector<78x256xbf16>
    %c0_85 = arith.constant 0 : index
    %c1024_86 = arith.constant 1024 : index
    %85 = vector.load %arg9[%c0_85, %c1024_86] : memref<78x2304xbf16, #tpu.memory_space<vmem>>, vector<78x256xbf16>
    tpu.vector_store %arg9[%c0_85, %c1024_86], %84 {strides = array<i32>} : memref<78x2304xbf16, #tpu.memory_space<vmem>>, vector<78x256xbf16>,
    %c12_87 = arith.constant 12 : index
    %c0_88 = arith.constant 0 : index
    %86 = vector.load %arg8[%c12_87, %c0_88] : memref<100x256xf32, #tpu.memory_space<vmem>>, vector<78x256xf32>
    %87 = arith.truncf %86 : vector<78x256xf32> to vector<78x256xbf16>
    %c0_89 = arith.constant 0 : index
    %c1280_90 = arith.constant 1280 : index
    %88 = vector.load %arg9[%c0_89, %c1280_90] : memref<78x2304xbf16, #tpu.memory_space<vmem>>, vector<78x256xbf16>
    tpu.vector_store %arg9[%c0_89, %c1280_90], %87 {strides = array<i32>} : memref<78x2304xbf16, #tpu.memory_space<vmem>>, vector<78x256xbf16>,
    %c20_91 = arith.constant 20 : index
    %c0_92 = arith.constant 0 : index
    %89 = vector.load %arg8[%c20_91, %c0_92] : memref<100x256xf32, #tpu.memory_space<vmem>>, vector<78x256xf32>
    %90 = arith.truncf %89 : vector<78x256xf32> to vector<78x256xbf16>
    %c0_93 = arith.constant 0 : index
    %c1536_94 = arith.constant 1536 : index
    %91 = vector.load %arg9[%c0_93, %c1536_94] : memref<78x2304xbf16, #tpu.memory_space<vmem>>, vector<78x256xbf16>
    tpu.vector_store %arg9[%c0_93, %c1536_94], %90 {strides = array<i32>} : memref<78x2304xbf16, #tpu.memory_space<vmem>>, vector<78x256xbf16>,
    %c21_95 = arith.constant 21 : index
    %c0_96 = arith.constant 0 : index
    %92 = vector.load %arg8[%c21_95, %c0_96] : memref<100x256xf32, #tpu.memory_space<vmem>>, vector<78x256xf32>
    %93 = arith.truncf %92 : vector<78x256xf32> to vector<78x256xbf16>
    %c0_97 = arith.constant 0 : index
    %c1792_98 = arith.constant 1792 : index
    %94 = vector.load %arg9[%c0_97, %c1792_98] : memref<78x2304xbf16, #tpu.memory_space<vmem>>, vector<78x256xbf16>
    tpu.vector_store %arg9[%c0_97, %c1792_98], %93 {strides = array<i32>} : memref<78x2304xbf16, #tpu.memory_space<vmem>>, vector<78x256xbf16>,
    %c22_99 = arith.constant 22 : index
    %c0_100 = arith.constant 0 : index
    %95 = vector.load %arg8[%c22_99, %c0_100] : memref<100x256xf32, #tpu.memory_space<vmem>>, vector<78x256xf32>
    %96 = arith.truncf %95 : vector<78x256xf32> to vector<78x256xbf16>
    %c0_101 = arith.constant 0 : index
    %c2048_102 = arith.constant 2048 : index
    %97 = vector.load %arg9[%c0_101, %c2048_102] : memref<78x2304xbf16, #tpu.memory_space<vmem>>, vector<78x256xbf16>
    tpu.vector_store %arg9[%c0_101, %c2048_102], %96 {strides = array<i32>} : memref<78x2304xbf16, #tpu.memory_space<vmem>>, vector<78x256xbf16>,
    %c0_103 = arith.constant 0 : index
    %c0_104 = arith.constant 0 : index
    %98 = vector.load %arg9[%c0_103, %c0_104] : memref<78x2304xbf16, #tpu.memory_space<vmem>>, vector<78x2304xbf16>
    %c0_105 = arith.constant 0 : index
    %c0_106 = arith.constant 0 : index
    %99 = vector.load %arg4[%c0_105, %c0_106] : memref<2304x256xbf16, #tpu.memory_space<vmem>>, vector<2304x256xbf16>
    %cst_107 = arith.constant dense<0.000000e+00> : vector<78x256xf32>
    %100 = tpu.matmul %98, %99, %cst_107 {dimension_numbers = #tpu.dot_dimension_numbers<[1], [0], [0], [1], [0, 0, 1, 1], [], []>} : vector<78x2304xbf16>, vector<2304x256xbf16>, vector<78x256xf32> -> vector<78x256xf32>
    %c0_108 = arith.constant 0 : index
    %c0_109 = arith.constant 0 : index
    %101 = vector.load %arg5[%c0_108, %c0_109] : memref<1x256xf32, #tpu.memory_space<vmem>>, vector<1x256xf32>
    %102 = vector.broadcast %101 : vector<1x256xf32> to vector<78x256xf32>
    %103 = arith.addf %100, %102 : vector<78x256xf32>
    %104 = vector.extract_strided_slice %103 {offsets = [0, 0], sizes = [8, 256], strides = [1, 1]} : vector<78x256xf32> to vector<8x256xf32>
    %c0_110 = arith.constant 0 : index
    %c0_111 = arith.constant 0 : index
    %105 = vector.load %arg1[%c0_110, %c0_111] : memref<64x256xf32, #tpu.memory_space<vmem>>, vector<8x256xf32>
    %106 = arith.addf %104, %105 : vector<8x256xf32>
    %cst_112 = arith.constant 0.000000e+00 : f32
    %107 = vector.broadcast %cst_112 : f32 to vector<8x256xf32>
    %108 = arith.maximumf %106, %107 : vector<8x256xf32>
    %c0_113 = arith.constant 0 : index
    %c0_114 = arith.constant 0 : index
    %109 = vector.load %arg6[%c0_113, %c0_114] : memref<64x256xf32, #tpu.memory_space<vmem>>, vector<8x256xf32>
    tpu.vector_store %arg6[%c0_113, %c0_114], %108 {strides = array<i32>} : memref<64x256xf32, #tpu.memory_space<vmem>>, vector<8x256xf32>,
    %110 = vector.extract_strided_slice %103 {offsets = [10, 0], sizes = [8, 256], strides = [1, 1]} : vector<78x256xf32> to vector<8x256xf32>
    %c8_115 = arith.constant 8 : index
    %c0_116 = arith.constant 0 : index
    %111 = vector.load %arg1[%c8_115, %c0_116] : memref<64x256xf32, #tpu.memory_space<vmem>>, vector<8x256xf32>
    %112 = arith.addf %110, %111 : vector<8x256xf32>
    %cst_117 = arith.constant 0.000000e+00 : f32
    %113 = vector.broadcast %cst_117 : f32 to vector<8x256xf32>
    %114 = arith.maximumf %112, %113 : vector<8x256xf32>
    %c8_118 = arith.constant 8 : index
    %c0_119 = arith.constant 0 : index
    %115 = vector.load %arg6[%c8_118, %c0_119] : memref<64x256xf32, #tpu.memory_space<vmem>>, vector<8x256xf32>
    tpu.vector_store %arg6[%c8_118, %c0_119], %114 {strides = array<i32>} : memref<64x256xf32, #tpu.memory_space<vmem>>, vector<8x256xf32>,
    %116 = vector.extract_strided_slice %103 {offsets = [20, 0], sizes = [8, 256], strides = [1, 1]} : vector<78x256xf32> to vector<8x256xf32>
    %c16_120 = arith.constant 16 : index
    %c0_121 = arith.constant 0 : index
    %117 = vector.load %arg1[%c16_120, %c0_121] : memref<64x256xf32, #tpu.memory_space<vmem>>, vector<8x256xf32>
    %118 = arith.addf %116, %117 : vector<8x256xf32>
    %cst_122 = arith.constant 0.000000e+00 : f32
    %119 = vector.broadcast %cst_122 : f32 to vector<8x256xf32>
    %120 = arith.maximumf %118, %119 : vector<8x256xf32>
    %c16_123 = arith.constant 16 : index
    %c0_124 = arith.constant 0 : index
    %121 = vector.load %arg6[%c16_123, %c0_124] : memref<64x256xf32, #tpu.memory_space<vmem>>, vector<8x256xf32>
    tpu.vector_store %arg6[%c16_123, %c0_124], %120 {strides = array<i32>} : memref<64x256xf32, #tpu.memory_space<vmem>>, vector<8x256xf32>,
    %122 = vector.extract_strided_slice %103 {offsets = [30, 0], sizes = [8, 256], strides = [1, 1]} : vector<78x256xf32> to vector<8x256xf32>
    %c24_125 = arith.constant 24 : index
    %c0_126 = arith.constant 0 : index
    %123 = vector.load %arg1[%c24_125, %c0_126] : memref<64x256xf32, #tpu.memory_space<vmem>>, vector<8x256xf32>
    %124 = arith.addf %122, %123 : vector<8x256xf32>
    %cst_127 = arith.constant 0.000000e+00 : f32
    %125 = vector.broadcast %cst_127 : f32 to vector<8x256xf32>
    %126 = arith.maximumf %124, %125 : vector<8x256xf32>
    %c24_128 = arith.constant 24 : index
    %c0_129 = arith.constant 0 : index
    %127 = vector.load %arg6[%c24_128, %c0_129] : memref<64x256xf32, #tpu.memory_space<vmem>>, vector<8x256xf32>
    tpu.vector_store %arg6[%c24_128, %c0_129], %126 {strides = array<i32>} : memref<64x256xf32, #tpu.memory_space<vmem>>, vector<8x256xf32>,
    %128 = vector.extract_strided_slice %103 {offsets = [40, 0], sizes = [8, 256], strides = [1, 1]} : vector<78x256xf32> to vector<8x256xf32>
    %c32_130 = arith.constant 32 : index
    %c0_131 = arith.constant 0 : index
    %129 = vector.load %arg1[%c32_130, %c0_131] : memref<64x256xf32, #tpu.memory_space<vmem>>, vector<8x256xf32>
    %130 = arith.addf %128, %129 : vector<8x256xf32>
    %cst_132 = arith.constant 0.000000e+00 : f32
    %131 = vector.broadcast %cst_132 : f32 to vector<8x256xf32>
    %132 = arith.maximumf %130, %131 : vector<8x256xf32>
    %c32_133 = arith.constant 32 : index
    %c0_134 = arith.constant 0 : index
    %133 = vector.load %arg6[%c32_133, %c0_134] : memref<64x256xf32, #tpu.memory_space<vmem>>, vector<8x256xf32>
    tpu.vector_store %arg6[%c32_133, %c0_134], %132 {strides = array<i32>} : memref<64x256xf32, #tpu.memory_space<vmem>>, vector<8x256xf32>,
    %134 = vector.extract_strided_slice %103 {offsets = [50, 0], sizes = [8, 256], strides = [1, 1]} : vector<78x256xf32> to vector<8x256xf32>
    %c40_135 = arith.constant 40 : index
    %c0_136 = arith.constant 0 : index
    %135 = vector.load %arg1[%c40_135, %c0_136] : memref<64x256xf32, #tpu.memory_space<vmem>>, vector<8x256xf32>
    %136 = arith.addf %134, %135 : vector<8x256xf32>
    %cst_137 = arith.constant 0.000000e+00 : f32
    %137 = vector.broadcast %cst_137 : f32 to vector<8x256xf32>
    %138 = arith.maximumf %136, %137 : vector<8x256xf32>
    %c40_138 = arith.constant 40 : index
    %c0_139 = arith.constant 0 : index
    %139 = vector.load %arg6[%c40_138, %c0_139] : memref<64x256xf32, #tpu.memory_space<vmem>>, vector<8x256xf32>
    tpu.vector_store %arg6[%c40_138, %c0_139], %138 {strides = array<i32>} : memref<64x256xf32, #tpu.memory_space<vmem>>, vector<8x256xf32>,
    %140 = vector.extract_strided_slice %103 {offsets = [60, 0], sizes = [8, 256], strides = [1, 1]} : vector<78x256xf32> to vector<8x256xf32>
    %c48_140 = arith.constant 48 : index
    %c0_141 = arith.constant 0 : index
    %141 = vector.load %arg1[%c48_140, %c0_141] : memref<64x256xf32, #tpu.memory_space<vmem>>, vector<8x256xf32>
    %142 = arith.addf %140, %141 : vector<8x256xf32>
    %cst_142 = arith.constant 0.000000e+00 : f32
    %143 = vector.broadcast %cst_142 : f32 to vector<8x256xf32>
    %144 = arith.maximumf %142, %143 : vector<8x256xf32>
    %c48_143 = arith.constant 48 : index
    %c0_144 = arith.constant 0 : index
    %145 = vector.load %arg6[%c48_143, %c0_144] : memref<64x256xf32, #tpu.memory_space<vmem>>, vector<8x256xf32>
    tpu.vector_store %arg6[%c48_143, %c0_144], %144 {strides = array<i32>} : memref<64x256xf32, #tpu.memory_space<vmem>>, vector<8x256xf32>,
    %146 = vector.extract_strided_slice %103 {offsets = [70, 0], sizes = [8, 256], strides = [1, 1]} : vector<78x256xf32> to vector<8x256xf32>
    %c56_145 = arith.constant 56 : index
    %c0_146 = arith.constant 0 : index
    %147 = vector.load %arg1[%c56_145, %c0_146] : memref<64x256xf32, #tpu.memory_space<vmem>>, vector<8x256xf32>
    %148 = arith.addf %146, %147 : vector<8x256xf32>
    %cst_147 = arith.constant 0.000000e+00 : f32
    %149 = vector.broadcast %cst_147 : f32 to vector<8x256xf32>
    %150 = arith.maximumf %148, %149 : vector<8x256xf32>
    %c56_148 = arith.constant 56 : index
    %c0_149 = arith.constant 0 : index
    %151 = vector.load %arg6[%c56_148, %c0_149] : memref<64x256xf32, #tpu.memory_space<vmem>>, vector<8x256xf32>
    tpu.vector_store %arg6[%c56_148, %c0_149], %150 {strides = array<i32>} : memref<64x256xf32, #tpu.memory_space<vmem>>, vector<8x256xf32>,
    return
  }
  func.func @transform_0(%arg0: i32) -> (i32, i32) {
    %c0_i32 = arith.constant 0 : i32
    %c0_i32_0 = arith.constant 0 : i32
    return %arg0, %c0_i32 : i32, i32
  }
  func.func @transform_1(%arg0: i32) -> (i32, i32) {
    %c0_i32 = arith.constant 0 : i32
    %c0_i32_0 = arith.constant 0 : i32
    %c0_i32_1 = arith.constant 0 : i32
    return %c0_i32, %c0_i32_0 : i32, i32
  }
  func.func @transform_2(%arg0: i32) -> (i32, i32) {
    %c0_i32 = arith.constant 0 : i32
    %c0_i32_0 = arith.constant 0 : i32
    %c0_i32_1 = arith.constant 0 : i32
    return %c0_i32, %c0_i32_0 : i32, i32
  }
  func.func @transform_3(%arg0: i32) -> (i32, i32) {
    %c0_i32 = arith.constant 0 : i32
    %c0_i32_0 = arith.constant 0 : i32
    %c0_i32_1 = arith.constant 0 : i32
    return %c0_i32, %c0_i32_0 : i32, i32
  }
  func.func @transform_4(%arg0: i32) -> (i32, i32) {
    %c0_i32 = arith.constant 0 : i32
    %c0_i32_0 = arith.constant 0 : i32
    %c0_i32_1 = arith.constant 0 : i32
    return %c0_i32, %c0_i32_0 : i32, i32
  }
  func.func @transform_5(%arg0: i32) -> (i32, i32) {
    %c0_i32 = arith.constant 0 : i32
    %c0_i32_0 = arith.constant 0 : i32
    return %arg0, %c0_i32 : i32, i32
  }
}

</mosaic_0001>

<bundles_post_ra>
// kernel: resblock_forward.1
= control target key start
LH: loop header
LB: loop body
LE: loop exit
PB: predicated region body
PF: predicated region fallthrough
CT: control target
= control target key end

     0   :  { %10 = vsyncpa [#allocation6], 0  ;;  %s15719_s0 = inlined_call_operand.vmem [shape: f32[128,256], index: 0, kind: input, shape index: {}]   ;;  %s15720_s1 = inlined_call_operand.vmem [shape: bf16[2304,256], index: 1, kind: input, shape index: {}]   ;;  %s15721_s2 = inlined_call_operand.vmem [shape: f32[1,256], index: 2, kind: input, shape index: {}]   ;;  %s15722_s3 = inlined_call_operand.vmem [shape: bf16[2304,256], index: 3, kind: input, shape index: {}]   ;;  %s15723_s4 = inlined_call_operand.vmem [shape: f32[1,256], index: 4, kind: input, shape index: {}]   ;;  %s15724_s5 = inlined_call_operand.hbm [shape: f32[128,256], index: 5, kind: output, shape index: {}]  }
   0x1   :  { %12 = vsyncpa [#allocation6 + $0x1], 0  ;;  %s12033_s18 = smov 0   ;;  %s12035_s19 = smov 0  }
   0x2   :  { %s12037_s20 = smov 0   ;;  %s12039_s21 = smov 0  }
   0x3 LB: > { %s12054_s22 = sadd.s32 4294967295, %s11996_s21   ;;  %s9492_s23 = sadd.s32 4294967294, %s11996_s21   ;;  %s11996_s21 = sphi %s12039_s21, %s16013_s21   ;;  %s11992_s20 = sphi %s12037_s20, %s16012_s20   ;;  %s11988_s19 = sphi %s12035_s19, %s16011_s19   ;;  %s11984_s18 = sphi %s12033_s18, %s16010_s18  }
   0x4   : > { %s12058_s24 = sadd.s32 1, %s11996_s21   ;;  %s135_s25 = sadd.s32 1, %s11992_s20 }
   0x5   : > { %s132_s26 = ssub.s32 %s11996_s21, %s12058_s24  ;;  %p145_p0 = scmp.ne.s32.totalorder %s11992_s20, %s11988_s19 }
   0x6   : > { %p133_p1 = scmp.eq.s32.totalorder %s132_s26, 0  ;;  %p146_p2 = scmp.eq.s32.totalorder %s12054_s22, 1 }
   0x7   : > { %p151_p3 = scmp.ne.s32.totalorder %s11988_s19, %s11984_s18  ;;  %p152_p4 = scmp.eq.s32.totalorder %s9492_s23, 1 }
   0x8   : > { %s12069_s27 = scalar_select %p133_p1, %s11992_s20, %s135_s25  }
   0x9   : > { %p12071_p5 = por %p146_p2, %p145_p0  ;;  %p12075_p6 = por %p152_p4, %p151_p3 }
   0xa   : > { %p9495_p7 = scmp.ge.s32.totalorder %s11996_s21, 1  ;;  %p192_p8 = scmp.lt.s32.totalorder %s11996_s21, 3 }
   0xc   : > { %p193_p9 = pnand %p9495_p7, %p192_p8 }
   0xe   : > { %196 = sbr.rel (%p193_p9) target bundleno = 1633 (0x661), region = 40 }
  0x15   : > { %v11057_v0 = vld [vmem:[%s15720_s1 + $0x4] ss:$8 sps:$4 sm:$0xff]   ;;  %v11059_v1 = vld [vmem:[%s15720_s1] ss:$8 sps:$4 sm:$0xff]   ;;  %v11998_v2 = vmov 0.0   ;;  %v11999_v5 = vmov 0.0|0.0  }
  0x16   : > { %229 = vst [vmem:[#allocation2] sm:$0xff] %v11998_v2  ;;  %230 = vst [vmem:[#allocation2 + $0x8] sm:$0xff] %v11998_v2  ;;  %3966 = vmatprep.subr.bf16.mxu0 %v11057_v0  ;;  %v11060_v3 = vld [vmem:[%s15720_s1 + $0x14] ss:$8 sps:$4 sm:$0xff]   ;;  %v11062_v4 = vld [vmem:[%s15720_s1 + $0x10] ss:$8 sps:$4 sm:$0xff]  }
  0x17   : > { %231 = vst [vmem:[#allocation2 + $0x10] sm:$0xff] %v11998_v2  ;;  %232 = vst [vmem:[#allocation2 + $0x18] sm:$0xff] %v11998_v2  ;;  %3967 = vmatpush1.bf16.msra.mxu0 %v11059_v1  ;;  %v11063_v6 = vld [vmem:[%s15720_s1 + $0x24] ss:$8 sps:$4 sm:$0xff]   ;;  %s9497_s15 = sshll.u32 %s12054_s22, 3  ;;  %vm703_vm0 = vcmask 1042432  }
  0x18   : > { %4733 = vst [vmem:[#allocation3] sm:$0xff] %v11998_v2  ;;  %4734 = vst [vmem:[#allocation3 + $0x8] sm:$0xff] %v11998_v2  ;;  %3968 = vmatprep.subr.bf16.mxu0 %v11060_v3  ;;  %v11065_v7 = vld [vmem:[%s15720_s1 + $0x20] ss:$8 sps:$4 sm:$0xff]   ;;  %p222_p10 = scmp.lt.s32.totalorder %s9497_s15, 15  ;;  %vm704_vm1 = vcmask 1046532  }
  0x19   : > { %233 = vst [vmem:[#allocation2 + $0x20] sm:$0xff] %v11998_v2  ;;  %234 = vst [vmem:[#allocation2 + $0x28] sm:$0xff] %v11998_v2  ;;  %v11066_v8 = vld [vmem:[%s15720_s1 + $0x34] ss:$8 sps:$4 sm:$0xff]   ;;  %v11068_v9 = vld [vmem:[%s15720_s1 + $0x30] ss:$8 sps:$4 sm:$0xff]  }
  0x1a   : > { %235 = vst [vmem:[#allocation2 + $0x30] sm:$0xff] %v11998_v2  ;;  %236 = vst [vmem:[#allocation2 + $0x38] sm:$0xff] %v11998_v2  ;;  %s16015_s15 = smov (!%p222_p10, %s9497_s15), 15  ;;  %v11069_v10 = vld [vmem:[%s15720_s1 + $0x44] ss:$8 sps:$4 sm:$0xff]   ;;  %vm1159_vm9 = vcmask 1041408  }
  0x1b   : > { %237 = vst [vmem:[#allocation2 + $0x40] sm:$0xff] %v11998_v2  ;;  %238 = vst [vmem:[#allocation2 + $0x48] sm:$0xff] %v11998_v2  ;;  %3969 = vmatpush1.bf16.msra.mxu0 %v11062_v4  ;;  %v11071_v11 = vld [vmem:[%s15720_s1 + $0x40] ss:$8 sps:$4 sm:$0xff]   ;;  %s10462_s10 = sshll.u32 %s16015_s15, 4  ;;  %vm1160_vm10 = vcmask 1045508  }
  0x1c   : > { %239 = vst [vmem:[#allocation2 + $0x50] sm:$0xff] %v11998_v2  ;;  %240 = vst [vmem:[#allocation2 + $0x58] sm:$0xff] %v11998_v2  ;;  %3970 = vmatprep.subr.bf16.mxu0 %v11063_v6  ;;  %v11072_v12 = vld [vmem:[%s15720_s1 + $0x54] ss:$8 sps:$4 sm:$0xff]   ;;  %s12119_s16 = scalar_lea.vmem %s15719_s0, %s10462_s10  ;;  %v11074_v13 = vld [vmem:[%s15720_s1 + $0x50] ss:$8 sps:$4 sm:$0xff]  }
  0x1d   : > { %241 = vst [vmem:[#allocation2 + $0x60] sm:$0xff] %v11998_v2  ;;  %242 = vst [vmem:[#allocation2 + $0x68] sm:$0xff] %v11998_v2  ;;  %v11075_v14 = vld [vmem:[%s15720_s1 + $0x64] ss:$8 sps:$4 sm:$0xff]   ;;  %v11077_v19 = vld [vmem:[%s15720_s1 + $0x60] ss:$8 sps:$4 sm:$0xff]  }
  0x1e   : > { %243 = vst [vmem:[#allocation2 + $0x70] sm:$0xff] %v11998_v2  ;;  %244 = vst [vmem:[#allocation2 + $0x78] sm:$0xff] %v11998_v2  ;;  %v255_v15 = vld [vmem:[%s12119_s16] sm:$0xff]  ;;  %v256_v16 = vld [vmem:[%s12119_s16 + $0x8] sm:$0xff]  ;;  %vm511_vm3 = vsmask.f32 3328 }
  0x1f   : > { %245 = vst [vmem:[#allocation2 + $0x80] sm:$0xff] %v11998_v2  ;;  %246 = vst [vmem:[#allocation2 + $0x88] sm:$0xff] %v11998_v2  ;;  %3971 = vmatpush1.bf16.msra.mxu0 %v11065_v7  ;;  %v259_v17 = vrot.slane %v255_v15, 5  ;;  %v260_v18 = vrot.slane %v256_v16, 5  ;;  %v11078_v20 = vld [vmem:[%s15720_s1 + $0x74] ss:$8 sps:$4 sm:$0xff]  }
  0x20   : > { %247 = vst [vmem:[#allocation2 + $0x90] sm:$0xff] %v11998_v2  ;;  %248 = vst [vmem:[#allocation2 + $0x98] sm:$0xff] %v11998_v2  ;;  %3972 = vmatprep.subr.bf16.mxu0 %v11066_v8  ;;  %v11080_v21 = vld [vmem:[%s15720_s1 + $0x70] ss:$8 sps:$4 sm:$0xff]   ;;  %v11081_v22 = vld [vmem:[%s15720_s1 + $0x84] ss:$8 sps:$4 sm:$0xff]  }
  0x21   : > { %249 = vst [vmem:[#allocation2 + $0xa0] sm:$0xff] %v11998_v2  ;;  %250 = vst [vmem:[#allocation2 + $0xa8] sm:$0xff] %v11998_v2  ;;  %v11083_v23 = vld [vmem:[%s15720_s1 + $0x80] ss:$8 sps:$4 sm:$0xff]   ;;  %v11084_v26 = vld [vmem:[%s15720_s1 + $0x94] ss:$8 sps:$4 sm:$0xff]  }
  0x22   : > { %251 = vst [vmem:[#allocation2 + $0xb0] sm:$0xff] %v11998_v2  ;;  %252 = vst [vmem:[#allocation2 + $0xb8] sm:$0xff] %v11998_v2  ;;  %v267_v28 = vld [vmem:[%s12119_s16 + $0x10] sm:$0xff]  ;;  %v268_v29 = vld [vmem:[%s12119_s16 + $0x18] sm:$0xff]  ;;  %vm512_vm4 = vsmask.f32 7440 }
  0x23   : > { %253 = vst [vmem:[#allocation2 + $0xc0] sm:$0xf] %v11998_v2  ;;  %254 = vst [vmem:[#allocation2 + $0xc8] sm:$0xf] %v11998_v2  ;;  %3973 = vmatpush1.bf16.msra.mxu0 %v11068_v9  ;;  %v271_v31 = vrot.slane %v267_v28, 3  ;;  %v272_v32 = vrot.slane %v268_v29, 3 }
  0x24   : > { %4735 = vst [vmem:[#allocation3 + $0x10] sm:$0xff] %v11998_v2  ;;  %4736 = vst [vmem:[#allocation3 + $0x18] sm:$0xff] %v11998_v2  ;;  %3974 = vmatprep.subr.bf16.mxu0 %v11069_v10  ;;  %v279_v33 = vld [vmem:[%s12119_s16 + $0x20] sm:$0xff]  ;;  %v280_v34 = vld [vmem:[%s12119_s16 + $0x28] sm:$0xff]  ;;  %vm953_vm6 = vsmask.f32 2304 }
  0x25   : > { %4737 = vst [vmem:[#allocation3 + $0x20] sm:$0xff] %v11998_v2  ;;  %4738 = vst [vmem:[#allocation3 + $0x28] sm:$0xff] %v11998_v2  ;;  %v11086_v35 = vld [vmem:[%s15720_s1 + $0x90] ss:$8 sps:$4 sm:$0xff]   ;;  %v283_v36 = vrot.slane %v279_v33, 1  ;;  %v284_v37 = vrot.slane %v280_v34, 1 }
  0x26   : > { %4739 = vst [vmem:[#allocation3 + $0x30] sm:$0xff] %v11998_v2  ;;  %4740 = vst [vmem:[#allocation3 + $0x38] sm:$0xff] %v11998_v2  ;;  %v11087_v38 = vld [vmem:[%s15720_s1 + $0xa4] ss:$8 sps:$4 sm:$0xff]   ;;  %v291_v39 = vld [vmem:[%s12119_s16 + $0x30] sm:$0xff]  ;;  %vm1632_vm15 = vcmask 1040384  }
  0x27   : > { %4741 = vst [vmem:[#allocation3 + $0x40] sm:$0xff] %v11998_v2  ;;  %4742 = vst [vmem:[#allocation3 + $0x48] sm:$0xff] %v11998_v2  ;;  %3975 = vmatpush1.bf16.msra.mxu0 %v11071_v11  ;;  %v292_v40 = vld [vmem:[%s12119_s16 + $0x38] sm:$0xff]  ;;  %v295_v41 = vrot.slane %v291_v39, 7  ;;  %v11089_v43 = vld [vmem:[%s15720_s1 + $0xa0] ss:$8 sps:$4 sm:$0xff]  }
  0x28   : > { %4743 = vst [vmem:[#allocation3 + $0x50] sm:$0xff] %v11998_v2  ;;  %4744 = vst [vmem:[#allocation3 + $0x58] sm:$0xff] %v11998_v2  ;;  %3976 = vmatprep.subr.bf16.mxu0 %v11072_v12  ;;  %v296_v42 = vrot.slane %v292_v40, 7  ;;  %v11090_v44 = vld [vmem:[%s15720_s1 + $0xb4] ss:$8 sps:$4 sm:$0xff]   ;;  %v303_v45 = vld [vmem:[%s12119_s16 + $0x40] sm:$0xff] }
  0x29   : > { %4745 = vst [vmem:[#allocation3 + $0x60] sm:$0xff] %v11998_v2  ;;  %4746 = vst [vmem:[#allocation3 + $0x68] sm:$0xff] %v11998_v2  ;;  %v304_v46 = vld [vmem:[%s12119_s16 + $0x48] sm:$0xff]  ;;  %v307_v47 = vrot.slane %v303_v45, 5  ;;  %v315_v48 = vld [vmem:[%s12119_s16 + $0x50] sm:$0xff]  ;;  %s218_s9 = sand.u32 1, %s11988_s19  }
  0x2a   : > { %4747 = vst [vmem:[#allocation3 + $0x70] sm:$0xff] %v11998_v2  ;;  %4748 = vst [vmem:[#allocation3 + $0x78] sm:$0xff] %v11998_v2  ;;  %v316_v49 = vld [vmem:[%s12119_s16 + $0x58] sm:$0xff]  ;;  %v308_v50 = vrot.slane %v304_v46, 5  ;;  %v319_v51 = vrot.slane %v315_v48, 3  ;;  %v327_v55 = vld [vmem:[%s12119_s16 + $0x60] sm:$0xff] }
  0x2b   : > { %4749 = vst [vmem:[#allocation3 + $0x80] sm:$0xff] %v11998_v2  ;;  %4750 = vst [vmem:[#allocation3 + $0x88] sm:$0xff] %v11998_v2  ;;  %3977 = vmatpush1.bf16.msra.mxu0 %v11074_v13  ;;  %v320_v52 = vrot.slane %v316_v49, 3  ;;  %v11092_v53 = vld [vmem:[%s15720_s1 + $0xb0] ss:$8 sps:$4 sm:$0xff]   ;;  %v328_v57 = vld [vmem:[%s12119_s16 + $0x68] sm:$0xff] }
  0x2c   : > { %4751 = vst [vmem:[#allocation3 + $0x90] sm:$0xff] %v11998_v2  ;;  %4752 = vst [vmem:[#allocation3 + $0x98] sm:$0xff] %v11998_v2  ;;  %3978 = vmatprep.subr.bf16.mxu0 %v11075_v14  ;;  %v11093_v54 = vld [vmem:[%s15720_s1 + $0xc4] ss:$8 sps:$4 sm:$0xff]   ;;  %v11095_v56 = vld [vmem:[%s15720_s1 + $0xc0] ss:$8 sps:$4 sm:$0xff]  }
  0x2d   : > { %4753 = vst [vmem:[#allocation3 + $0xa0] sm:$0xff] %v11998_v2  ;;  %4754 = vst [vmem:[#allocation3 + $0xa8] sm:$0xff] %v11998_v2  ;;  %v331_v58 = vrot.slane %v327_v55, 1  ;;  %v11096_v59 = vld [vmem:[%s15720_s1 + $0xd4] ss:$8 sps:$4 sm:$0xff]   ;;  %v332_v60 = vrot.slane %v328_v57, 1 }
  0x2e   : > { %4755 = vst [vmem:[#allocation3 + $0xb0] sm:$0xff] %v11998_v2  ;;  %4756 = vst [vmem:[#allocation3 + $0xb8] sm:$0xff] %v11998_v2  ;;  %v11098_v61 = vld [vmem:[%s15720_s1 + $0xd0] ss:$8 sps:$4 sm:$0xff]   ;;  %v11099_v62 = vld [vmem:[%s15720_s1 + $0xe4] ss:$8 sps:$4 sm:$0xff]  }
  0x2f   : > { %4757 = vst [vmem:[#allocation3 + $0xc0] sm:$0xf] %v11998_v2  ;;  %4758 = vst [vmem:[#allocation3 + $0xc8] sm:$0xf] %v11998_v2  ;;  %3979 = vmatpush1.bf16.msra.mxu0 %v11077_v19  ;;  %v11101_v63 = vld [vmem:[%s15720_s1 + $0xe0] ss:$8 sps:$4 sm:$0xff]  }
  0x30   : > { %4952 = vst [vmem:[#allocation4] sm:$0xff] %v11999_v5  ;;  %263 = vst [vmem:[#allocation2 + $0x10] sm:$0xf8] %v259_v17  ;;  %3980 = vmatprep.subr.bf16.mxu0 %v11078_v20  ;;  %v11102_v0 = vld [vmem:[%s15720_s1 + $0xf4] ss:$8 sps:$4 sm:$0xff]   ;;  %s9496_s10 = sshll.u32 %s218_s9, 7 }
  0x31   : > { %264 = vst [vmem:[#allocation2 + $0x18] sm:$0xf8] %v260_v18  ;;  %265 = vst [vmem:[#allocation2 + $0x20] sm:$0x7] %v259_v17  ;;  %v11104_v9 = vld [vmem:[%s15720_s1 + $0xf0] ss:$8 sps:$4 sm:$0xff]  }
  0x32   : > { %266 = vst [vmem:[#allocation2 + $0x28] sm:$0x7] %v260_v18  ;;  %275 = vst [vmem:[#allocation2 + $0x20] sm:$0xe0] %v271_v31  ;;  %v11107_v12 = vld [vmem:[%s15720_s1 + $0x104] ss:$8 sps:$4 sm:$0xff]  }
  0x33   : > { %3981 = vmatpush1.bf16.msra.mxu0 %v11080_v21  ;;  %276 = vst [vmem:[#allocation2 + $0x28] sm:$0xe0] %v272_v32  ;;  %277 = vst [vmem:[#allocation2 + $0x30] sm:$0x1f] %v271_v31  ;;  %v11105_v13 = vld [vmem:[%s15720_s1 + $0x100] ss:$8 sps:$4 sm:$0xff]  }
  0x34   : > { %3982 = vmatprep.subr.bf16.mxu0 %v11081_v22  ;;  %278 = vst [vmem:[#allocation2 + $0x38] sm:$0x1f] %v272_v32  ;;  %287 = vst [vmem:[#allocation2 + $0x30] sm:$0x80] %v283_v36  ;;  %v11110_v15 = vld [vmem:[%s15720_s1 + $0x114] ss:$8 sps:$4 sm:$0xff]  }
  0x35   : > { %288 = vst [vmem:[#allocation2 + $0x38] sm:$0x80] %v284_v37  ;;  %289 = vst [vmem:[#allocation2 + $0x40] sm:$0x7f] %v283_v36  ;;  %v11108_v21 = vld [vmem:[%s15720_s1 + $0x110] ss:$8 sps:$4 sm:$0xff]  }
  0x36   : > { %290 = vst [vmem:[#allocation2 + $0x48] sm:$0x7f] %v284_v37  ;;  %299 = vst [vmem:[#allocation2 + $0x50] sm:$0xfe] %v295_v41  ;;  %v11116_v28 = vld [vmem:[%s15720_s1 + $0x134] ss:$8 sps:$4 sm:$0xff]  }
  0x37   : > { %v353_v24 = vld [vmem:[#allocation2 + $0x10] sm:$0xff]  ;;  %3983 = vmatpush1.bf16.msra.mxu0 %v11083_v23  ;;  %300 = vst [vmem:[#allocation2 + $0x58] sm:$0xfe] %v296_v42  ;;  %301 = vst [vmem:[#allocation2 + $0x60] sm:$0x1] %v295_v41  ;;  %s15611_s11 = scalar_lea.vmem [#allocation5], %s9496_s10 }
  0x38   : > { %v354_v25 = vld [vmem:[#allocation2 + $0x18] sm:$0xff]  ;;  %3984 = vmatprep.subr.bf16.mxu0 %v11084_v26  ;;  %302 = vst [vmem:[#allocation2 + $0x68] sm:$0x1] %v296_v42  ;;  %311 = vst [vmem:[#allocation2 + $0x60] sm:$0xf8] %v307_v47  ;;  %s9430_s12 = sshll.u32 %s15611_s11, 4  ;;  %s15669_s12 = int_to_ptr.vmem [resolvable:$true] %s9430_s12 }
  0x39   : > { %v12147_v27 = vpack.c.bf16 %v354_v25, %v353_v24  ;;  %313 = vst [vmem:[#allocation2 + $0x70] sm:$0x7] %v307_v47  ;;  %312 = vst [vmem:[#allocation2 + $0x68] sm:$0xf8] %v308_v50  ;;  %v355_v1 = vld [vmem:[#allocation2 + $0x20] sm:$0xff]  ;;  %s15678_s17 = scalar_lea.sflag [#allocation6], %s218_s9 }
  0x3a   : > { %314 = vst [vmem:[#allocation2 + $0x78] sm:$0x7] %v308_v50  ;;  %323 = vst [vmem:[#allocation2 + $0x70] sm:$0xe0] %v319_v51  ;;  %v356_v2 = vld [vmem:[#allocation2 + $0x28] sm:$0xff]  ;;  %s11934_s23 = scalar_lea.vmem %s15669_s12, 2048 }
  0x3b   : > { %v9601_v30 = vcombine.high %v11999_v5, %v12147_v27  ;;  %3985 = vmatpush1.bf16.msra.mxu0 %v11086_v35  ;;  %324 = vst [vmem:[#allocation2 + $0x78] sm:$0xe0] %v320_v52  ;;  %325 = vst [vmem:[#allocation2 + $0x80] sm:$0x1f] %v319_v51  ;;  %v357_v3 = vld [vmem:[#allocation2 + $0x30] sm:$0xff]  ;;  %v12202_v10 = vpack.c.bf16 %v356_v2, %v355_v1  ;;  %v9600_v14 = vcombine.low %v11999_v5, %v12147_v27  ;;  %p11935_p11 = scmp.ne.s32.totalorder %s15669_s12, %s11934_s23  ;;  %s12000_s25 = smov [#allocation5]  }
  0x3c   : > { %3986 = vmatprep.subr.bf16.mxu0 %v11087_v38  ;;  %326 = vst [vmem:[#allocation2 + $0x88] sm:$0x1f] %v320_v52  ;;  %335 = vst [vmem:[#allocation2 + $0x80] sm:$0x80] %v331_v58  ;;  %v358_v4 = vld [vmem:[#allocation2 + $0x38] sm:$0xff]  ;;  %v12217_v16 = vld [vmem:[#allocation2 + $0x40] sm:$0xff]  ;;  %v11925_v29 = vpack.c.bf16 %v357_v3, %v355_v1 }
  0x3d   : > { %3998 = vmatprep.mubr.bf16.mxu0 %v9601_v30  ;;  %337 = vst [vmem:[#allocation2 + $0x90] sm:$0x7f] %v331_v58  ;;  %336 = vst [vmem:[#allocation2 + $0x88] sm:$0x80] %v332_v60  ;;  %v12204_v11 = vpack.c.bf16 %v358_v4, %v357_v3  ;;  %v11924_v17 = vpack.c.bf16 %v358_v4, %v356_v2  ;;  %v360_v18 = vld [vmem:[#allocation2 + $0x48] sm:$0xff]  ;;  %v12219_v19 = vld [vmem:[#allocation2 + $0x50] sm:$0xff]  ;;  %p11936_p12 = pnand %p11935_p11, %p12071_p5 }
  0x3e   : > { %338 = vst [vmem:[#allocation2 + $0x98] sm:$0x7f] %v332_v60  ;;  %v362_v20 = vld [vmem:[#allocation2 + $0x58] sm:$0xff]  ;;  %v12225_v5 = vpack.c.bf16 %v360_v18, %v12217_v16  ;;  %v11113_v23 = vld [vmem:[%s15720_s1 + $0x124] ss:$8 sps:$4 sm:$0xff]   ;;  %v708_v36 = vrot.slane %v12147_v27, 5  ;;  %vm12247_vm2 = vmor %vm703_vm0, %vm704_vm1  ;;  %v11927_v55 = vpack.c.bf16 %v12219_v19, %v12217_v16 }
  0x3f   : > { %3987 = vmatpush1.bf16.msra.mxu0 %v11089_v43  ;;  %v12228_v22 = vpack.c.bf16 %v362_v20, %v12219_v19  ;;  %v11111_v24 = vld [vmem:[%s15720_s1 + $0x120] ss:$8 sps:$4 sm:$0xff]   ;;  %v11926_v32 = vpack.c.bf16 %v362_v20, %v360_v18  ;;  %v524_v37 = vshll.u32 %v12147_v27, 16  ;;  %v528_v38 = vshrl.u32 %v12147_v27, 16  ;;  %v11114_v43 = vld [vmem:[%s15720_s1 + $0x130] ss:$8 sps:$4 sm:$0xff]   ;;  %vm12309_vm5 = vmor %vm511_vm3, %vm512_vm4  ;;  %p11937_p13 = pneg %p11936_p12 }
  0x40   : > { %3988 = vmatprep.subr.bf16.mxu0 %v11090_v44  ;;  %v441_v25 = vld [vmem:[#allocation2] sm:$0xfe]  ;;  %v442_v26 = vld [vmem:[#allocation2 + $0x8] sm:$0xfe]  ;;  %v710_v42 = vrot.slane %v708_v36, 4  ;;  %v711_v46 = vrot.slane %v12202_v10, 5  ;;  %vm12864_vm11 = vmor %vm1159_vm9, %vm1160_vm10 }
  0x41   : > { %v12239_v30 = vld [vmem:[#allocation2 + $0x60] sm:$0xff]  ;;  %v364_v31 = vld [vmem:[#allocation2 + $0x68] sm:$0xff]  ;;  %v12241_v33 = vld [vmem:[#allocation2 + $0x70] sm:$0xff]  ;;  %v10473_v35 = vpack.c.bf16 %v442_v26, %v441_v25  ;;  %v526_v51 = vrot.slane %v524_v37, 5  ;;  %vm954_vm7 = vsmask.f32 6416 }
  0x42   : > { %v366_v34 = vld [vmem:[#allocation2 + $0x78] sm:$0xff]  ;;  %v12255_v44 = vpack.c.bf16 %v364_v31, %v12239_v30  ;;  %v11119_v47 = vld [vmem:[%s15720_s1 + $0x144] ss:$8 sps:$4 sm:$0xff]   ;;  %v11117_v50 = vld [vmem:[%s15720_s1 + $0x140] ss:$8 sps:$4 sm:$0xff]   ;;  %vm1633_vm1 = vcmask 1044484  }
  0x43   : > { %3989 = vmatpush1.bf16.msra.mxu0 %v11092_v53  ;;  %v12258_v27 = vpack.c.bf16 %v366_v34, %v12241_v33  ;;  %v515_v48 = vshrl.u32 %v10473_v35, 16  ;;  %v518_v49 = vshll.u32 %v10473_v35, 16  ;;  %v633_v57 = vld [vmem:[#allocation2] sm:$0xfc]  ;;  %v634_v58 = vld [vmem:[#allocation2 + $0x8] sm:$0xfc]  ;;  %v11928_v60 = vpack.c.bf16 %v366_v34, %v364_v31  ;;  %vm12699_vm8 = vmor %vm953_vm6, %vm954_vm7 }
  0x44   : > { %3990 = vmatprep.subr.bf16.mxu0 %v11093_v54  ;;  %v369_v6 = vld [vmem:[#allocation2 + $0x90] sm:$0x3f]  ;;  %v12271_v54 = vsel %vm12247_vm2, %v710_v42, %v711_v46  ;;  %v368_v1 = vld [vmem:[#allocation2 + $0x88] sm:$0xff]  ;;  %v714_v31 = vrot.slane %v12204_v11, 5  ;;  %v713_v35 = vrot.slane %v711_v46, 4  ;;  %vm13267_vm3 = vmor %vm1632_vm15, %vm1633_vm1  ;;  %s11938_s15 = sshll.u32 %s12000_s25, 4  ;;  %s11939_s15 = int_to_ptr.vmem [resolvable:$false] %s11938_s15 }
  0x45   : > { %v370_v7 = vld [vmem:[#allocation2 + $0x98] sm:$0x3f]  ;;  %v459_v40 = vld [vmem:[#allocation2 + $0x90] sm:$0x7f]  ;;  %v517_v2 = vrot.slane %v515_v48, 4  ;;  %v520_v3 = vrot.slane %v518_v49, 5  ;;  %p11941_p0 = scmp.lt.s32.totalorder %s15669_s12, %s11939_s15 }
  0x46   : > { %v10472_v8 = vpack.c.bf16 %v370_v7, %v369_v6  ;;  %v460_v41 = vld [vmem:[#allocation2 + $0x98] sm:$0x7f]  ;;  %v11123_v20 = vld [vmem:[%s15720_s1 + $0x160] ss:$8 sps:$4 sm:$0xff]   ;;  %v11137_v49 = vld [vmem:[%s15720_s1 + $0x1a4] ss:$8 sps:$4 sm:$0xff]  }
  0x47   : > { %3991 = vmatpush1.bf16.msra.mxu0 %v11095_v56  ;;  %v10482_v45 = vpack.c.bf16 %v460_v41, %v459_v40  ;;  %v530_v56 = vrot.slane %v528_v38, 4  ;;  %v11120_v7 = vld [vmem:[%s15720_s1 + $0x150] ss:$8 sps:$4 sm:$0xff]   ;;  %v521_v16 = vor.u32 %v520_v3, %v517_v2  ;;  %v717_v38 = vrot.slane %v12225_v5, 5  ;;  %v11129_v40 = vld [vmem:[%s15720_s1 + $0x180] ss:$8 sps:$4 sm:$0xff]  }
  0x48   : > { %3992 = vmatprep.subr.bf16.mxu0 %v11096_v59  ;;  %440 = vst [vmem:[#allocation4 + $0x288] sm:$0x77] %v10472_v8  ;;  %v11122_v59 = vld [vmem:[%s15720_s1 + $0x154] ss:$8 sps:$4 sm:$0xff]   ;;  %v11125_v8 = vld [vmem:[%s15720_s1 + $0x164] ss:$8 sps:$4 sm:$0xff]  }
  0x49   : > { %v604_v52 = vshll.u32 %v10482_v45, 16  ;;  %v608_v53 = vshrl.u32 %v10482_v45, 16  ;;  %v522_v26 = vrot.slane %v521_v16, 4  ;;  %v11134_v41 = vld [vmem:[%s15720_s1 + $0x194] ss:$8 sps:$4 sm:$0xff]   ;;  %v538_v3 = vshrl.u32 %v12202_v10, 16 }
  0x4a   : > { %v11132_v48 = vld [vmem:[%s15720_s1 + $0x190] ss:$8 sps:$4 sm:$0xff]   ;;  %v11143_v2 = vld [vmem:[%s15720_s1 + $0x1c4] ss:$8 sps:$4 sm:$0xff]   ;;  %vm1422_vm12 = vsmask.f32 1280 }
  0x4b   : > { %3993 = vmatpush1.bf16.msra.mxu0 %v11098_v61  ;;  %v367_v61 = vld [vmem:[#allocation2 + $0x80] sm:$0xff]  ;;  %vm1423_vm13 = vsmask.f32 5392  ;;  %s11940_s26 = scalar_lea.vmem %s11939_s15, 4096 }
  0x4c   : > { %3994 = vmatprep.subr.bf16.mxu0 %v11099_v62  ;;  %v12278_v62 = vrot.slane %v604_v52, 5  ;;  %vm13164_vm14 = vmor %vm1422_vm12, %vm1423_vm13  ;;  %p11942_p1 = scmp.lt.s32.totalorder %s11940_s26, %s11934_s23 }
  0x4e   : > { %p11943_p2 = por %p11942_p1, %p11941_p0 }
  0x4f   : > { %3995 = vmatpush1.bf16.msra.mxu0 %v11101_v63  ;;  %v610_v63 = vrot.slane %v608_v53, 4  ;;  %v723_v53 = vrot.slane %v12255_v44, 5 }
  0x50   : > { %3996 = vmatprep.subr.bf16.mxu0 %v11102_v0  ;;  %v10483_v0 = vpack.c.bf16 %v634_v58, %v633_v57  ;;  %p11944_p3 = pnand %p11943_p2, %p11937_p13 }
  0x51   : > { %v611_v4 = vor.u32 %v610_v63, %v12278_v62  ;;  %v651_v63 = vld [vmem:[#allocation2 + $0x90] sm:$0xff] }
  0x52   : > { %v9530_v6 = vrot.slane %v10483_v0, 9  ;;  %v652_v0 = vld [vmem:[#allocation2 + $0x98] sm:$0xff] }
  0x53   : > { %3997 = vmatpush1.bf16.msra.mxu0 %v11104_v9  ;;  %v12287_v9 = vpack.c.bf16 %v368_v1, %v367_v61  ;;  %v11138_v61 = vld [vmem:[%s15720_s1 + $0x1b0] ss:$8 sps:$4 sm:$0xff]   ;;  %v12384_v1 = vpack.c.bf16 %v652_v0, %v651_v63 }
  0x54   : > { %4049 = vmatprep.subr.bf16.mxu0 %v11107_v12  ;;  %v531_v12 = vor.u32 %v530_v56, %v526_v51  ;;  %v11140_v56 = vld [vmem:[%s15720_s1 + $0x1b4] ss:$8 sps:$4 sm:$0xff]  }
  0x56   : > { %3999 = vmatmul.mubr.bf16.vlgmr.msra.gmra.mrb[0].mxu0 %v9600_v14  ;;  %v12291_v14 = vsel %vm12247_vm2, %v9530_v6, %v708_v36  ;;  %v716_v36 = vrot.slane %v714_v31, 4  ;;  %v544_v6 = vshll.u32 %v12204_v11, 16 }
  0x57   : > { %4050 = vmatpush1.bf16.msra.mxu0 %v11105_v13  ;;  %4008 = vmatprep.mubr.bf16.mxu0 %v11924_v17  ;;  %v612_v13 = vrot.slane %v611_v4, 4  ;;  %v534_v17 = vshll.u32 %v12202_v10, 16  ;;  %v9604_v18 = vcombine.low %v12291_v14, %v12271_v54  ;;  %v9605_v19 = vcombine.high %v12291_v14, %v12271_v54  ;;  %v11141_v10 = vld [vmem:[%s15720_s1 + $0x1c0] ss:$8 sps:$4 sm:$0xff]   ;;  %v11212_v14 = vld [vmem:[%s15720_s1 + $0x334] ss:$8 sps:$4 sm:$0xff]  }
  0x58   : > { %4051 = vmatprep.subr.bf16.mxu0 %v11110_v15  ;;  %v1767_v15 = vld [vmem:[#allocation4 + $0x288] sm:$0x77]  ;;  %v12349_v45 = vsel %vm12247_vm2, %v716_v36, %v717_v38  ;;  %v726_v4 = vrot.slane %v12258_v27, 5 }
  0x59   : > { %632 = vst [vmem:[#allocation4 + $0x290] sm:$0x77] %v612_v13  ;;  %v9672_v37 = vcombine.low %v12287_v9, %v1767_v15  ;;  %v11207_v54 = vld [vmem:[%s15720_s1 + $0x320] ss:$8 sps:$4 sm:$0xff]  }
  0x5a   : > { %v728_v13 = vrot.slane %v726_v4, 4 }
  0x5b   : > { %4052 = vmatpush1.bf16.msra.mxu0 %v11108_v21  ;;  %v11929_v21 = vpack.c.bf16 %v12241_v33, %v12239_v30  ;;  %v11126_v30 = vld [vmem:[%s15720_s1 + $0x170] ss:$8 sps:$4 sm:$0xff]   ;;  %v12324_v33 = vsel %vm12309_vm5, %v522_v26, %v526_v51  ;;  %v719_v51 = vrot.slane %v717_v38, 4  ;;  %v564_v38 = vshll.u32 %v12228_v22, 16 }
  0x5c   : > { %4053 = vmatprep.subr.bf16.mxu0 %v11113_v23  ;;  %v11128_v23 = vld [vmem:[%s15720_s1 + $0x174] ss:$8 sps:$4 sm:$0xff]  }
  0x5e   : > { %4009 = vmatmul.mubr.bf16.gmra.mrb[4].mxu0 %v11925_v29  ;;  %v12313_v29 = vrot.slane %v534_v17, 5  ;;  %v11146_v17 = vld [vmem:[%s15720_s1 + $0x1d4] ss:$8 sps:$4 sm:$0xff]  }
  0x5f   : > { %4054 = vmatpush1.bf16.msra.mxu0 %v11111_v24  ;;  %4018 = vmatprep.mubr.bf16.mxu0 %v11926_v32  ;;  %v9673_v24 = vcombine.high %v12287_v9, %v1767_v15  ;;  %v11131_v32 = vld [vmem:[%s15720_s1 + $0x184] ss:$8 sps:$4 sm:$0xff]   ;;  %v729_v15 = vrot.slane %v12287_v9, 5 }
  0x60   : > { %4055 = vmatprep.subr.bf16.mxu0 %v11116_v28  ;;  %v532_v28 = vrot.slane %v531_v12, 4  ;;  %v725_v12 = vrot.slane %v723_v53, 4 }
  0x62   : > { %v12329_v34 = vsel %vm12309_vm5, %v532_v28, %v12313_v29 }
  0x63   : > { %4056 = vmatpush1.bf16.msra.mxu0 %v11114_v43  ;;  %v9603_v42 = vcombine.high %v12324_v33, %v12329_v34  ;;  %v12345_v43 = vsel %vm12247_vm2, %v713_v35, %v714_v31  ;;  %v11149_v31 = vld [vmem:[%s15720_s1 + $0x1e4] ss:$8 sps:$4 sm:$0xff]   ;;  %v558_v35 = vshrl.u32 %v12225_v5, 16 }
  0x64   : > { %4057 = vmatprep.subr.bf16.mxu0 %v11119_v47  ;;  %v9623_v46 = vcombine.high %v12345_v43, %v12349_v45  ;;  %v9622_v47 = vcombine.low %v12345_v43, %v12349_v45  ;;  %v756_v43 = vld [vmem:[#allocation2 + $0x18] sm:$0xfc]  ;;  %v759_v45 = vld [vmem:[#allocation2 + $0x30] sm:$0xff] }
  0x66   : > { %4019 = vmatmul.mubr.bf16.gmra.mrb[8].mxu0 %v11927_v55  ;;  %v11135_v55 = vld [vmem:[%s15720_s1 + $0x1a0] ss:$8 sps:$4 sm:$0xff]  }
  0x67   : > { %4058 = vmatpush1.bf16.msra.mxu0 %v11117_v50  ;;  %4028 = vmatprep.mubr.bf16.mxu0 %v11928_v60  ;;  %v720_v50 = vrot.slane %v12228_v22, 5 }
  0x68   : > { %4059 = vmatprep.subr.bf16.mxu0 %v11122_v59 }
  0x69   : > { %v722_v52 = vrot.slane %v720_v50, 4  ;;  %v12371_v57 = vsel %vm12247_vm2, %v719_v51, %v720_v50  ;;  %v566_v51 = vrot.slane %v564_v38, 5  ;;  %v11164_v38 = vld [vmem:[%s15720_s1 + $0x234] ss:$8 sps:$4 sm:$0xff]  }
  0x6b   : > { %4060 = vmatpush1.bf16.msra.mxu0 %v11120_v7  ;;  %v12375_v58 = vsel %vm12247_vm2, %v722_v52, %v723_v53  ;;  %v548_v7 = vshrl.u32 %v12204_v11, 16  ;;  %v12406_v11 = vsel %vm12247_vm2, %v725_v12, %v726_v4  ;;  %v11155_v52 = vld [vmem:[%s15720_s1 + $0x204] ss:$8 sps:$4 sm:$0xff]   ;;  %v11153_v4 = vld [vmem:[%s15720_s1 + $0x200] ss:$8 sps:$4 sm:$0xff]  }
  0x6c   : > { %4061 = vmatprep.subr.bf16.mxu0 %v11125_v8  ;;  %v9641_v59 = vcombine.high %v12371_v57, %v12375_v58  ;;  %v9640_v60 = vcombine.low %v12371_v57, %v12375_v58  ;;  %v12394_v8 = vrot.slane %v12384_v1, 5  ;;  %v11219_v58 = vld [vmem:[%s15720_s1 + $0x360] ss:$8 sps:$4 sm:$0xff]  }
  0x6e   : > { %4029 = vmatmul.mubr.bf16.gmra.mrb[12].mxu0 %v11929_v21  ;;  %v734_v16 = vrot.slane %v12394_v8, 4  ;;  %v12412_v21 = vsel %vm12247_vm2, %v728_v13, %v729_v15 }
  0x6f   : > { %4062 = vmatpush1.bf16.msra.mxu0 %v11123_v20  ;;  %4038 = vmatprep.mubr.bf16.mxu0 %v9673_v24  ;;  %v540_v20 = vrot.slane %v538_v3, 4  ;;  %v550_v24 = vrot.slane %v548_v7, 4  ;;  %v9659_v26 = vcombine.high %v12406_v11, %v12412_v21  ;;  %v9658_v28 = vcombine.low %v12406_v11, %v12412_v21 }
  0x70   : > { %4063 = vmatprep.subr.bf16.mxu0 %v11128_v23  ;;  %v546_v23 = vrot.slane %v544_v6, 5  ;;  %754 = vst [vmem:[#allocation4 + $0x298] sm:$0x77] %v734_v16  ;;  %v588_v3 = vshrl.u32 %v12258_v27, 16  ;;  %v9602_v6 = vcombine.low %v12324_v33, %v12329_v34  ;;  %v11161_v33 = vld [vmem:[%s15720_s1 + $0x224] ss:$8 sps:$4 sm:$0xff]  }
  0x72   : > { %v551_v36 = vor.u32 %v550_v24, %v546_v23 }
  0x73   : > { %4064 = vmatpush1.bf16.msra.mxu0 %v11126_v30  ;;  %v11144_v30 = vld [vmem:[%s15720_s1 + $0x1d0] ss:$8 sps:$4 sm:$0xff]  }
  0x74   : > { %4065 = vmatprep.subr.bf16.mxu0 %v11131_v32  ;;  %v541_v32 = vor.u32 %v540_v20, %v12313_v29 }
  0x76   : > { %4039 = vmatmul.mubr.bf16.gmra.mrb[16].mxu0 %v9672_v37  ;;  %v554_v37 = vshll.u32 %v12225_v5, 16  ;;  %v542_v29 = vrot.slane %v541_v32, 4  ;;  %v594_v32 = vshll.u32 %v12287_v9, 16 }
  0x77   : > { %4066 = vmatpush1.bf16.msra.mxu0 %v11129_v40  ;;  %4081 = vmatprep.mubr.bf16.mxu0 %v9603_v42  ;;  %v568_v40 = vshrl.u32 %v12228_v22, 16  ;;  %v11152_v42 = vld [vmem:[%s15720_s1 + $0x1f4] ss:$8 sps:$4 sm:$0xff]   ;;  %v11150_v22 = vld [vmem:[%s15720_s1 + $0x1f0] ss:$8 sps:$4 sm:$0xff]  }
  0x78   : > { %4067 = vmatprep.subr.bf16.mxu0 %v11134_v41  ;;  %v11147_v41 = vld [vmem:[%s15720_s1 + $0x1e0] ss:$8 sps:$4 sm:$0xff]   ;;  %v556_v50 = vrot.slane %v554_v37, 5  ;;  %v547_v53 = vsel %vm12309_vm5, %v542_v29, %v546_v23  ;;  %v11156_v23 = vld [vmem:[%s15720_s1 + $0x210] ss:$8 sps:$4 sm:$0xff]   ;;  %v596_v29 = vrot.slane %v594_v32, 5 }
  0x79   : > { %v570_v5 = vrot.slane %v568_v40, 4  ;;  %v11159_v37 = vld [vmem:[%s15720_s1 + $0x220] ss:$8 sps:$4 sm:$0xff]  }
  0x7b   : > { %4068 = vmatpush1.bf16.msra.mxu0 %v11132_v48  ;;  %v560_v48 = vrot.slane %v558_v35, 4  ;;  %v571_v0 = vor.u32 %v570_v5, %v566_v51  ;;  %v598_v35 = vshrl.u32 %v12287_v9, 16  ;;  %v1769_v9 = vld [vmem:[#allocation4 + $0x298] sm:$0x77] }
  0x7c   : > { %4069 = vmatprep.subr.bf16.mxu0 %v11137_v49  ;;  %v552_v49 = vrot.slane %v551_v36, 4 }
  0x7e   : > { %v557_v63 = vsel %vm12309_vm5, %v552_v49, %v556_v50  ;;  %v11162_v49 = vld [vmem:[%s15720_s1 + $0x230] ss:$8 sps:$4 sm:$0xff]  }
  0x7f   : > { %4070 = vmatpush1.bf16.msra.mxu0 %v11135_v55  ;;  %v561_v55 = vor.u32 %v560_v48, %v556_v50  ;;  %v9621_v7 = vcombine.high %v547_v53, %v557_v63  ;;  %v9620_v36 = vcombine.low %v547_v53, %v557_v63  ;;  %v600_v48 = vrot.slane %v598_v35, 4  ;;  %v11167_v50 = vld [vmem:[%s15720_s1 + $0x244] ss:$8 sps:$4 sm:$0xff]   ;;  %v11165_v53 = vld [vmem:[%s15720_s1 + $0x240] ss:$8 sps:$4 sm:$0xff]  }
  0x80   : > { %4071 = vmatprep.subr.bf16.mxu0 %v11140_v56  ;;  %v574_v56 = vshll.u32 %v12255_v44, 16  ;;  %v11168_v63 = vld [vmem:[%s15720_s1 + $0x250] ss:$8 sps:$4 sm:$0xff]  }
  0x81   : > { %v562_v12 = vrot.slane %v561_v55, 4  ;;  %v11170_v55 = vld [vmem:[%s15720_s1 + $0x254] ss:$8 sps:$4 sm:$0xff]  }
  0x82   : > { %v576_v13 = vrot.slane %v574_v56, 5 }
  0x83   : > { %4072 = vmatpush1.bf16.msra.mxu0 %v11138_v61  ;;  %v578_v61 = vshrl.u32 %v12255_v44, 16  ;;  %v11158_v44 = vld [vmem:[%s15720_s1 + $0x214] ss:$8 sps:$4 sm:$0xff]   ;;  %v567_v34 = vsel %vm12309_vm5, %v562_v12, %v566_v51  ;;  %v11179_v12 = vld [vmem:[%s15720_s1 + $0x284] ss:$8 sps:$4 sm:$0xff]  }
  0x84   : > { %4073 = vmatprep.subr.bf16.mxu0 %v11143_v2  ;;  %v584_v2 = vshll.u32 %v12258_v27, 16  ;;  %v590_v27 = vrot.slane %v588_v3, 4 }
  0x86   : > { %v586_v20 = vrot.slane %v584_v2, 5  ;;  %v1768_v2 = vld [vmem:[#allocation4 + $0x290] sm:$0x77] }
  0x87   : > { %4074 = vmatpush1.bf16.msra.mxu0 %v11141_v10  ;;  %v580_v10 = vrot.slane %v578_v61, 4 }
  0x88   : > { %4075 = vmatprep.subr.bf16.mxu0 %v11146_v17  ;;  %v572_v17 = vrot.slane %v571_v0, 4  ;;  %v11173_v0 = vld [vmem:[%s15720_s1 + $0x264] ss:$8 sps:$4 sm:$0xff]  }
  0x89   : > { %v581_v24 = vor.u32 %v580_v10, %v576_v13  ;;  %v11177_v10 = vld [vmem:[%s15720_s1 + $0x280] ss:$8 sps:$4 sm:$0xff]  }
  0x8b   : > { %4076 = vmatpush1.bf16.msra.mxu0 %v11144_v30  ;;  %v577_v30 = vsel %vm12309_vm5, %v572_v17, %v576_v13  ;;  %v339_v17 = vld [vmem:[%s12119_s16 + $0x70] sm:$0xff] }
  0x8c   : > { %4077 = vmatprep.subr.bf16.mxu0 %v11149_v31  ;;  %v591_v31 = vor.u32 %v590_v27, %v586_v20  ;;  %v9639_v40 = vcombine.high %v567_v34, %v577_v30  ;;  %v340_v27 = vld [vmem:[%s12119_s16 + $0x78] sm:$0xff] }
  0x8f   : > { %4078 = vmatpush1.bf16.msra.mxu0 %v11147_v41  ;;  %v582_v41 = vrot.slane %v581_v24, 4  ;;  %v11185_v24 = vld [vmem:[%s15720_s1 + $0x2a4] ss:$8 sps:$4 sm:$0xff]  }
  0x90   : > { %4079 = vmatprep.subr.bf16.mxu0 %v11152_v42  ;;  %v592_v42 = vrot.slane %v591_v31, 4  ;;  %v11188_v31 = vld [vmem:[%s15720_s1 + $0x2b4] ss:$8 sps:$4 sm:$0xff]  }
  0x91   : > { %v587_v51 = vsel %vm12309_vm5, %v582_v41, %v586_v20  ;;  %v11182_v20 = vld [vmem:[%s15720_s1 + $0x294] ss:$8 sps:$4 sm:$0xff]  }
  0x92   : > { %v597_v5 = vsel %vm12309_vm5, %v592_v42, %v596_v29  ;;  %v11194_v41 = vld [vmem:[%s15720_s1 + $0x2d4] ss:$8 sps:$4 sm:$0xff]  }
  0x93   : > { %4080 = vmatpush1.bf16.msra.mxu0 %v11150_v22  ;;  %v601_v22 = vor.u32 %v600_v48, %v596_v29  ;;  %v9657_v56 = vcombine.high %v587_v51, %v597_v5  ;;  %v11192_v29 = vld [vmem:[%s15720_s1 + $0x2d0] ss:$8 sps:$4 sm:$0xff]   ;;  %v11197_v48 = vld [vmem:[%s15720_s1 + $0x2e4] ss:$8 sps:$4 sm:$0xff]  }
  0x94   : > { %4132 = vmatprep.subr.bf16.mxu0 %v11155_v52  ;;  %v9638_v52 = vcombine.low %v567_v34, %v577_v30  ;;  %v11180_v34 = vld [vmem:[%s15720_s1 + $0x290] ss:$8 sps:$4 sm:$0xff]   ;;  %v11183_v30 = vld [vmem:[%s15720_s1 + $0x2a0] ss:$8 sps:$4 sm:$0xff]  }
  0x95   : > { %v602_v61 = vrot.slane %v601_v22, 4  ;;  %v11201_v22 = vld [vmem:[%s15720_s1 + $0x300] ss:$8 sps:$4 sm:$0xff]  }
  0x96   : > { %4082 = vmatmul.mubr.bf16.vlgmr.msra.gmra.mrb[0].mxu0 %v9602_v6  ;;  %v11171_v6 = vld [vmem:[%s15720_s1 + $0x260] ss:$8 sps:$4 sm:$0xff]  }
  0x97   : > { %4133 = vmatpush1.bf16.msra.mxu0 %v11153_v4  ;;  %4091 = vmatprep.mubr.bf16.mxu0 %v9621_v7  ;;  %v607_v3 = vsel %vm12309_vm5, %v602_v61, %v12278_v62  ;;  %v9656_v4 = vcombine.low %v587_v51, %v597_v5  ;;  %v11176_v7 = vld [vmem:[%s15720_s1 + $0x274] ss:$8 sps:$4 sm:$0xff]   ;;  %v11174_v62 = vld [vmem:[%s15720_s1 + $0x270] ss:$8 sps:$4 sm:$0xff]   ;;  %v11203_v5 = vld [vmem:[%s15720_s1 + $0x304] ss:$8 sps:$4 sm:$0xff]  }
  0x98   : > { %4134 = vmatprep.subr.bf16.mxu0 %v11158_v44  ;;  %v9675_v44 = vcombine.high %v607_v3, %v1768_v2  ;;  %v9674_v13 = vcombine.low %v607_v3, %v1768_v2  ;;  %v11198_v51 = vld [vmem:[%s15720_s1 + $0x2f0] ss:$8 sps:$4 sm:$0xff]   ;;  %v758_v61 = vld [vmem:[#allocation2 + $0x28] sm:$0xff] }
  0x99   : > { %v755_v2 = vld [vmem:[#allocation2 + $0x10] sm:$0xfc] }
  0x9b   : > { %4135 = vmatpush1.bf16.msra.mxu0 %v11156_v23  ;;  %v343_v23 = vrot.slane %v339_v17, 7  ;;  %v11227_v17 = vld [vmem:[%s15720_s1 + $0x384] ss:$8 sps:$4 sm:$0xff]  }
  0x9c   : > { %4136 = vmatprep.subr.bf16.mxu0 %v11161_v33  ;;  %v344_v33 = vrot.slane %v340_v27, 7  ;;  %v11230_v27 = vld [vmem:[%s15720_s1 + $0x394] ss:$8 sps:$4 sm:$0xff]  }
  0x9d   : > { %347 = vst [vmem:[#allocation2 + $0xa0] sm:$0xfe] %v343_v23  ;;  %349 = vst [vmem:[#allocation2 + $0xb0] sm:$0x1] %v343_v23 }
  0x9e   : > { %4092 = vmatmul.mubr.bf16.gmra.mrb[4].mxu0 %v9620_v36  ;;  %348 = vst [vmem:[#allocation2 + $0xa8] sm:$0xfe] %v344_v33  ;;  %350 = vst [vmem:[#allocation2 + $0xb8] sm:$0x1] %v344_v33  ;;  %v11191_v36 = vld [vmem:[%s15720_s1 + $0x2c4] ss:$8 sps:$4 sm:$0xff]  }
  0x9f   : > { %4137 = vmatpush1.bf16.msra.mxu0 %v11159_v37  ;;  %4101 = vmatprep.mubr.bf16.mxu0 %v9639_v40  ;;  %v11189_v40 = vld [vmem:[%s15720_s1 + $0x2c0] ss:$8 sps:$4 sm:$0xff]   ;;  %v11228_v33 = vld [vmem:[%s15720_s1 + $0x390] ss:$8 sps:$4 sm:$0xff]  }
  0xa0   : > { %4138 = vmatprep.subr.bf16.mxu0 %v11164_v38 }
  0xa3   : > { %4139 = vmatpush1.bf16.msra.mxu0 %v11162_v49  ;;  %v11195_v49 = vld [vmem:[%s15720_s1 + $0x2e0] ss:$8 sps:$4 sm:$0xff]  }
  0xa4   : > { %4140 = vmatprep.subr.bf16.mxu0 %v11167_v50  ;;  %v773_v32 = vld [vmem:[#allocation2 + $0xa0] sm:$0xff]  ;;  %v11200_v50 = vld [vmem:[%s15720_s1 + $0x2f4] ss:$8 sps:$4 sm:$0xff]  }
  0xa5   : > { %v774_v35 = vld [vmem:[#allocation2 + $0xa8] sm:$0xff] }
  0xa6   : > { %4102 = vmatmul.mubr.bf16.gmra.mrb[8].mxu0 %v9638_v52  ;;  %v12543_v37 = vpack.c.bf16 %v774_v35, %v773_v32  ;;  %v11206_v52 = vld [vmem:[%s15720_s1 + $0x314] ss:$8 sps:$4 sm:$0xff]   ;;  %v895_v32 = vld [vmem:[#allocation2 + $0xb8] sm:$0x1] }
  0xa7   : > { %4141 = vmatpush1.bf16.msra.mxu0 %v11165_v53  ;;  %4111 = vmatprep.mubr.bf16.mxu0 %v9657_v56  ;;  %v11204_v53 = vld [vmem:[%s15720_s1 + $0x310] ss:$8 sps:$4 sm:$0xff]   ;;  %v11215_v56 = vld [vmem:[%s15720_s1 + $0x344] ss:$8 sps:$4 sm:$0xff]  }
  0xa8   : > { %4142 = vmatprep.subr.bf16.mxu0 %v11170_v55  ;;  %v851_v38 = vrot.slane %v12543_v37, 5  ;;  %v11209_v55 = vld [vmem:[%s15720_s1 + $0x324] ss:$8 sps:$4 sm:$0xff]   ;;  %v1046_v35 = vshrl.u32 %v12543_v37, 16 }
  0xaa   : > { %v853_v42 = vrot.slane %v851_v38, 4 }
  0xab   : > { %4143 = vmatpush1.bf16.msra.mxu0 %v11168_v63  ;;  %v11213_v63 = vld [vmem:[%s15720_s1 + $0x340] ss:$8 sps:$4 sm:$0xff]  }
  0xac   : > { %4144 = vmatprep.subr.bf16.mxu0 %v11173_v0  ;;  %873 = vst [vmem:[#allocation4 + $0x2a0] sm:$0x77] %v853_v42  ;;  %v11218_v0 = vld [vmem:[%s15720_s1 + $0x354] ss:$8 sps:$4 sm:$0xff]  }
  0xae   : > { %4112 = vmatmul.mubr.bf16.gmra.mrb[12].mxu0 %v9656_v4  ;;  %v11216_v4 = vld [vmem:[%s15720_s1 + $0x350] ss:$8 sps:$4 sm:$0xff]  }
  0xaf   : > { %4145 = vmatpush1.bf16.msra.mxu0 %v11171_v6  ;;  %4121 = vmatprep.mubr.bf16.mxu0 %v9675_v44  ;;  %v11221_v6 = vld [vmem:[%s15720_s1 + $0x364] ss:$8 sps:$4 sm:$0xff]   ;;  %v10493_v44 = vpack.c.bf16 %v756_v43, %v755_v2 }
  0xb0   : > { %4146 = vmatprep.subr.bf16.mxu0 %v11176_v7 }
  0xb3   : > { %4147 = vmatpush1.bf16.msra.mxu0 %v11174_v62  ;;  %v9541_v62 = vrot.slane %v10493_v44, 9 }
  0xb4   : > { %4148 = vmatprep.subr.bf16.mxu0 %v11179_v12 }
  0xb6   : > { %4122 = vmatmul.mubr.bf16.gmra.mrb[16].mxu0 %v9674_v13 }
  0xb7   : > { %4149 = vmatpush1.bf16.msra.mxu0 %v11177_v10  ;;  %4164 = vmatprep.mubr.bf16.mxu0 %v9605_v19  ;;  %v11186_v19 = vld [vmem:[%s15720_s1 + $0x2b0] ss:$8 sps:$4 sm:$0xff]  }
  0xb8   : > { %4150 = vmatprep.subr.bf16.mxu0 %v11182_v20  ;;  %v11222_v10 = vld [vmem:[%s15720_s1 + $0x370] ss:$8 sps:$4 sm:$0xff]  }
  0xbb   : > { %4151 = vmatpush1.bf16.msra.mxu0 %v11180_v34  ;;  %v11233_v34 = vld [vmem:[%s15720_s1 + $0x3a4] ss:$8 sps:$4 sm:$0xff]  }
  0xbc   : > { %4152 = vmatprep.subr.bf16.mxu0 %v11185_v24  ;;  %v11231_v24 = vld [vmem:[%s15720_s1 + $0x3a0] ss:$8 sps:$4 sm:$0xff]  }
  0xbf   : > { %4153 = vmatpush1.bf16.msra.mxu0 %v11183_v30  ;;  %v11236_v30 = vld [vmem:[%s15720_s1 + $0x3b4] ss:$8 sps:$4 sm:$0xff]  }
  0xc0   : > { %4154 = vmatprep.subr.bf16.mxu0 %v11188_v31  ;;  %v894_v31 = vld [vmem:[#allocation2 + $0xb0] sm:$0x1] }
  0xc3   : > { %4155 = vmatpush1.bf16.msra.mxu0 %v11186_v19  ;;  %v1049_v19 = vshll.u32 %v12543_v37, 16 }
  0xc4   : > { %4156 = vmatprep.subr.bf16.mxu0 %v11191_v36  ;;  %v11234_v36 = vld [vmem:[%s15720_s1 + $0x3b0] ss:$8 sps:$4 sm:$0xff]  }
  0xc5   : > { %v1051_v42 = vrot.slane %v1049_v19, 6 }
  0xc7   : > { %4157 = vmatpush1.bf16.msra.mxu0 %v11189_v40  ;;  %v10513_v40 = vpack.c.bf16 %v895_v32, %v894_v31  ;;  %v875_v31 = vld [vmem:[#allocation2 + $0x18] sm:$0xf8] }
  0xc8   : > { %4158 = vmatprep.subr.bf16.mxu0 %v11194_v41  ;;  %v1048_v41 = vrot.slane %v1046_v35, 5 }
  0xcb   : > { %4159 = vmatpush1.bf16.msra.mxu0 %v11192_v29  ;;  %v11239_v29 = vld [vmem:[%s15720_s1 + $0x3c4] ss:$8 sps:$4 sm:$0xff]  }
  0xcc   : > { %4160 = vmatprep.subr.bf16.mxu0 %v11197_v48  ;;  %v761_v48 = vld [vmem:[#allocation2 + $0x40] sm:$0xff] }
  0xcf   : > { %4161 = vmatpush1.bf16.msra.mxu0 %v11195_v49  ;;  %v762_v49 = vld [vmem:[#allocation2 + $0x48] sm:$0xff] }
  0xd0   : > { %4162 = vmatprep.subr.bf16.mxu0 %v11200_v50  ;;  %v12690_v50 = vor.u32 %v1051_v42, %v1048_v41  ;;  %v11260_v41 = vld [vmem:[%s15720_s1 + $0x434] ss:$8 sps:$4 sm:$0xff]  }
  0xd3   : > { %4163 = vmatpush1.bf16.msra.mxu0 %v11198_v51  ;;  %v1056_v51 = vshll.u32 %v10513_v40, 16  ;;  %v11255_v40 = vld [vmem:[%s15720_s1 + $0x420] ss:$8 sps:$4 sm:$0xff]  }
  0xd4   : > { %4215 = vmatprep.subr.bf16.mxu0 %v11203_v5  ;;  %v11237_v5 = vld [vmem:[%s15720_s1 + $0x3c0] ss:$8 sps:$4 sm:$0xff]  }
  0xd6   : > { %4165 = vmatmul.mubr.bf16.vlgmr.msra.gmra.mrb[0].mxu0 %v9604_v18  ;;  %v11210_v18 = vld [vmem:[%s15720_s1 + $0x330] ss:$8 sps:$4 sm:$0xff]  }
  0xd7   : > { %4216 = vmatpush1.bf16.msra.mxu0 %v11201_v22  ;;  %4174 = vmatprep.mubr.bf16.mxu0 %v9623_v46  ;;  %v757_v46 = vld [vmem:[#allocation2 + $0x20] sm:$0xff]  ;;  %v11242_v22 = vld [vmem:[%s15720_s1 + $0x3d4] ss:$8 sps:$4 sm:$0xff]  }
  0xd8   : > { %4217 = vmatprep.subr.bf16.mxu0 %v11206_v52  ;;  %v12616_v3 = vpack.c.bf16 %v758_v61, %v757_v46  ;;  %v1054_v52 = vrot.slane %v12690_v50, 4  ;;  %v11240_v46 = vld [vmem:[%s15720_s1 + $0x3d0] ss:$8 sps:$4 sm:$0xff]   ;;  %v11245_v61 = vld [vmem:[%s15720_s1 + $0x3e4] ss:$8 sps:$4 sm:$0xff]  }
  0xda   : > { %v827_v57 = vrot.slane %v12616_v3, 5 }
  0xdb   : > { %4218 = vmatpush1.bf16.msra.mxu0 %v11204_v53  ;;  %v1058_v53 = vrot.slane %v1056_v51, 6  ;;  %v11258_v51 = vld [vmem:[%s15720_s1 + $0x430] ss:$8 sps:$4 sm:$0xff]  }
  0xdc   : > { %4219 = vmatprep.subr.bf16.mxu0 %v11209_v55  ;;  %v829_v12 = vrot.slane %v827_v57, 4  ;;  %v12654_v20 = vsel %vm12247_vm2, %v9541_v62, %v827_v57  ;;  %v763_v55 = vld [vmem:[#allocation2 + $0x50] sm:$0xff] }
  0xdd   : > { %v11246_v57 = vld [vmem:[%s15720_s1 + $0x3f0] ss:$8 sps:$4 sm:$0xff]  }
  0xde   : > { %4175 = vmatmul.mubr.bf16.gmra.mrb[4].mxu0 %v9622_v47  ;;  %v760_v47 = vld [vmem:[#allocation2 + $0x38] sm:$0xff] }
  0xdf   : > { %4220 = vmatpush1.bf16.msra.mxu0 %v11207_v54  ;;  %4184 = vmatprep.mubr.bf16.mxu0 %v9641_v59  ;;  %v731_v59 = vrot.slane %v729_v15, 4  ;;  %v12633_v7 = vpack.c.bf16 %v760_v47, %v759_v45  ;;  %v764_v54 = vld [vmem:[#allocation2 + $0x58] sm:$0xff]  ;;  %v11243_v45 = vld [vmem:[%s15720_s1 + $0x3e0] ss:$8 sps:$4 sm:$0xff]  }
  0xe0   : > { %4221 = vmatprep.subr.bf16.mxu0 %v11212_v14  ;;  %v15785_v14 = vmov 0  ;;  %v12713_v2 = vpack.c.bf16 %v764_v54, %v763_v55  ;;  %v11248_v47 = vld [vmem:[%s15720_s1 + $0x3f4] ss:$8 sps:$4 sm:$0xff]  }
  0xe1   : > { %v733_v15 = vsel %vm12247_vm2, %v731_v59, %v12394_v8  ;;  %v830_v13 = vrot.slane %v12633_v7, 5  ;;  %v15786_v14 = vsel %vm12699_vm8, 4294967295, %v15785_v14  ;;  %v767_v59 = vld [vmem:[#allocation2 + $0x70] sm:$0xff] }
  0xe2   : > { %v9676_v21 = vcombine.low %v733_v15, %v1769_v9  ;;  %15787 = vst [vmem:[#allocation8_spill] sm:$0xff] %v15786_v14  ;;  %v11563_v14 = vld [vmem:[%s15722_s3 + $0x174] ss:$8 sps:$4 sm:$0xff]  }
  0xe3   : > { %4222 = vmatpush1.bf16.msra.mxu0 %v11210_v18  ;;  %v12660_v11 = vsel %vm12247_vm2, %v829_v12, %v830_v13  ;;  %v12703_v18 = vpack.c.bf16 %v762_v49, %v761_v48 }
  0xe4   : > { %4223 = vmatprep.subr.bf16.mxu0 %v11215_v56  ;;  %v9607_v23 = vcombine.high %v12654_v20, %v12660_v11  ;;  %v1059_v56 = vsel %vm12699_vm8, %v1054_v52, %v1058_v53  ;;  %v966_v53 = vshrl.u32 %v12616_v3, 16 }
  0xe5   : > { %1079 = vst [vmem:[#allocation4 + $0x2a8] sm:$0x77] %v1059_v56  ;;  %v833_v43 = vrot.slane %v12703_v18, 5  ;;  %v969_v56 = vshll.u32 %v12616_v3, 16 }
  0xe6   : > { %4185 = vmatmul.mubr.bf16.gmra.mrb[8].mxu0 %v9640_v60  ;;  %v11224_v60 = vld [vmem:[%s15720_s1 + $0x374] ss:$8 sps:$4 sm:$0xff]  }
  0xe7   : > { %4224 = vmatpush1.bf16.msra.mxu0 %v11213_v63  ;;  %4194 = vmatprep.mubr.bf16.mxu0 %v9659_v26  ;;  %v9677_v26 = vcombine.high %v733_v15, %v1769_v9  ;;  %v765_v63 = vld [vmem:[#allocation2 + $0x60] sm:$0xff]  ;;  %v836_v9 = vrot.slane %v12713_v2, 5  ;;  %v768_v15 = vld [vmem:[#allocation2 + $0x78] sm:$0xff] }
  0xe8   : > { %4225 = vmatprep.subr.bf16.mxu0 %v11218_v0  ;;  %v766_v0 = vld [vmem:[#allocation2 + $0x68] sm:$0xff]  ;;  %v12737_v12 = vpack.c.bf16 %v768_v15, %v767_v59  ;;  %v971_v59 = vrot.slane %v969_v56, 6 }
  0xe9   : > { %v12725_v44 = vpack.c.bf16 %v766_v0, %v765_v63  ;;  %v11266_v63 = vld [vmem:[%s15720_s1 + $0x454] ss:$8 sps:$4 sm:$0xff]   ;;  %v11269_v15 = vld [vmem:[%s15720_s1 + $0x464] ss:$8 sps:$4 sm:$0xff]  }
  0xeb   : > { %4226 = vmatpush1.bf16.msra.mxu0 %v11216_v4  ;;  %v832_v4 = vrot.slane %v830_v13, 4  ;;  %v839_v13 = vrot.slane %v12725_v44, 5 }
  0xec   : > { %4227 = vmatprep.subr.bf16.mxu0 %v11221_v6  ;;  %v835_v6 = vrot.slane %v833_v43, 4 }
  0xee   : > { %4195 = vmatmul.mubr.bf16.gmra.mrb[12].mxu0 %v9658_v28  ;;  %v11225_v28 = vld [vmem:[%s15720_s1 + $0x380] ss:$8 sps:$4 sm:$0xff]   ;;  %v837_v62 = vsel %vm12247_vm2, %v835_v6, %v836_v9  ;;  %v979_v6 = vshll.u32 %v12633_v7, 16 }
  0xef   : > { %4228 = vmatpush1.bf16.msra.mxu0 %v11219_v58  ;;  %4204 = vmatprep.mubr.bf16.mxu0 %v9677_v26  ;;  %v11251_v58 = vld [vmem:[%s15720_s1 + $0x404] ss:$8 sps:$4 sm:$0xff]   ;;  %v834_v26 = vsel %vm12247_vm2, %v832_v4, %v833_v43  ;;  %v976_v4 = vshrl.u32 %v12633_v7, 16 }
  0xf0   : > { %4229 = vmatprep.subr.bf16.mxu0 %v11224_v60  ;;  %v769_v60 = vld [vmem:[#allocation2 + $0x80] sm:$0xff] }
  0xf3   : > { %4230 = vmatpush1.bf16.msra.mxu0 %v11222_v10  ;;  %v770_v10 = vld [vmem:[#allocation2 + $0x88] sm:$0xff] }
  0xf4   : > { %4231 = vmatprep.subr.bf16.mxu0 %v11227_v17  ;;  %v9606_v17 = vcombine.low %v12654_v20, %v12660_v11  ;;  %v11252_v20 = vld [vmem:[%s15720_s1 + $0x410] ss:$8 sps:$4 sm:$0xff]   ;;  %v11257_v11 = vld [vmem:[%s15720_s1 + $0x424] ss:$8 sps:$4 sm:$0xff]  }
  0xf6   : > { %4205 = vmatmul.mubr.bf16.gmra.mrb[16].mxu0 %v9676_v21  ;;  %v11249_v21 = vld [vmem:[%s15720_s1 + $0x400] ss:$8 sps:$4 sm:$0xff]  }
  0xf7   : > { %4232 = vmatpush1.bf16.msra.mxu0 %v11225_v28  ;;  %4247 = vmatprep.mubr.bf16.mxu0 %v9607_v23  ;;  %v11254_v28 = vld [vmem:[%s15720_s1 + $0x414] ss:$8 sps:$4 sm:$0xff]   ;;  %v838_v23 = vrot.slane %v836_v9, 4  ;;  %v11264_v9 = vld [vmem:[%s15720_s1 + $0x450] ss:$8 sps:$4 sm:$0xff]  }
  0xf8   : > { %4233 = vmatprep.subr.bf16.mxu0 %v11230_v27  ;;  %v9625_v27 = vcombine.high %v834_v26, %v837_v62 }
  0xf9   : > { %v840_v32 = vsel %vm12247_vm2, %v838_v23, %v839_v13  ;;  %v11275_v23 = vld [vmem:[%s15720_s1 + $0x484] ss:$8 sps:$4 sm:$0xff]  }
  0xfb   : > { %4234 = vmatpush1.bf16.msra.mxu0 %v11228_v33  ;;  %v841_v33 = vrot.slane %v839_v13, 4  ;;  %v981_v13 = vrot.slane %v979_v6, 6 }
  0xfc   : > { %4235 = vmatprep.subr.bf16.mxu0 %v11233_v34  ;;  %v842_v34 = vrot.slane %v12737_v12, 5 }
  0xfe   : > { %v843_v35 = vsel %vm12247_vm2, %v841_v33, %v842_v34  ;;  %v844_v48 = vrot.slane %v842_v34, 4 }
  0xff   : > { %4236 = vmatpush1.bf16.msra.mxu0 %v11231_v24  ;;  %v12749_v24 = vpack.c.bf16 %v770_v10, %v769_v60  ;;  %v9643_v42 = vcombine.high %v840_v32, %v843_v35 }
 0x100   : > { %4237 = vmatprep.subr.bf16.mxu0 %v11236_v30  ;;  %v874_v30 = vld [vmem:[#allocation2 + $0x10] sm:$0xf8] }
 0x101   : > { %v845_v19 = vrot.slane %v12749_v24, 5 }
 0x103   : > { %4238 = vmatpush1.bf16.msra.mxu0 %v11234_v36  ;;  %v9624_v36 = vcombine.low %v834_v26, %v837_v62  ;;  %v847_v49 = vrot.slane %v845_v19, 4  ;;  %v846_v55 = vsel %vm12247_vm2, %v844_v48, %v845_v19  ;;  %v978_v62 = vrot.slane %v976_v4, 5  ;;  %v11279_v19 = vld [vmem:[%s15720_s1 + $0x4a0] ss:$8 sps:$4 sm:$0xff]  }
 0x104   : > { %4239 = vmatprep.subr.bf16.mxu0 %v11239_v29  ;;  %v10503_v29 = vpack.c.bf16 %v875_v31, %v874_v30  ;;  %v11278_v30 = vld [vmem:[%s15720_s1 + $0x494] ss:$8 sps:$4 sm:$0xff]   ;;  %v986_v48 = vshrl.u32 %v12703_v18, 16 }
 0x105   : > { %v849_v54 = vsel %vm12247_vm2, %v847_v49, %v12394_v8  ;;  %v989_v49 = vshll.u32 %v12703_v18, 16 }
 0x106   : > { %v960_v52 = vshll.u32 %v10503_v29, 16  ;;  %v9661_v0 = vcombine.high %v846_v55, %v849_v54  ;;  %v9660_v10 = vcombine.low %v846_v55, %v849_v54  ;;  %v11290_v55 = vld [vmem:[%s15720_s1 + $0x4d4] ss:$8 sps:$4 sm:$0xff]   ;;  %v988_v54 = vrot.slane %v986_v48, 5 }
 0x107   : > { %4240 = vmatpush1.bf16.msra.mxu0 %v11237_v5  ;;  %v11263_v5 = vld [vmem:[%s15720_s1 + $0x444] ss:$8 sps:$4 sm:$0xff]   ;;  %v991_v56 = vrot.slane %v989_v49, 6  ;;  %v1036_v48 = vshrl.u32 %v12384_v1, 16 }
 0x108   : > { %4241 = vmatprep.subr.bf16.mxu0 %v11242_v22  ;;  %v957_v22 = vshrl.u32 %v10503_v29, 16  ;;  %v11287_v29 = vld [vmem:[%s15720_s1 + $0x4c4] ss:$8 sps:$4 sm:$0xff]  }
 0x109   : > { %v992_v4 = vor.u32 %v991_v56, %v988_v54  ;;  %v11308_v56 = vld [vmem:[%s15720_s1 + $0x534] ss:$8 sps:$4 sm:$0xff]  }
 0x10a   : > { %v959_v43 = vrot.slane %v957_v22, 5 }
 0x10b   : > { %4242 = vmatpush1.bf16.msra.mxu0 %v11240_v46  ;;  %v11261_v46 = vld [vmem:[%s15720_s1 + $0x440] ss:$8 sps:$4 sm:$0xff]  }
 0x10c   : > { %4243 = vmatprep.subr.bf16.mxu0 %v11245_v61  ;;  %v9642_v61 = vcombine.low %v840_v32, %v843_v35  ;;  %v11276_v32 = vld [vmem:[%s15720_s1 + $0x490] ss:$8 sps:$4 sm:$0xff]   ;;  %v11281_v35 = vld [vmem:[%s15720_s1 + $0x4a4] ss:$8 sps:$4 sm:$0xff]  }
 0x10f   : > { %4244 = vmatpush1.bf16.msra.mxu0 %v11243_v45  ;;  %v962_v45 = vrot.slane %v960_v52, 6  ;;  %v11285_v52 = vld [vmem:[%s15720_s1 + $0x4c0] ss:$8 sps:$4 sm:$0xff]  }
 0x110   : > { %4245 = vmatprep.subr.bf16.mxu0 %v11248_v47  ;;  %v968_v47 = vrot.slane %v966_v53, 5 }
 0x111   : > { %v963_v60 = vor.u32 %v962_v45, %v959_v43  ;;  %v11288_v43 = vld [vmem:[%s15720_s1 + $0x4d0] ss:$8 sps:$4 sm:$0xff]   ;;  %v1006_v45 = vshrl.u32 %v12725_v44, 16 }
 0x112   : > { %v972_v26 = vor.u32 %v971_v59, %v968_v47  ;;  %v1009_v47 = vshll.u32 %v12725_v44, 16  ;;  %v11293_v59 = vld [vmem:[%s15720_s1 + $0x4e4] ss:$8 sps:$4 sm:$0xff]  }
 0x113   : > { %4246 = vmatpush1.bf16.msra.mxu0 %v11246_v57  ;;  %v852_v57 = vsel %vm12247_vm2, %v734_v16, %v851_v38  ;;  %v12807_v38 = vor.u32 %v981_v13, %v978_v62  ;;  %v11296_v62 = vld [vmem:[%s15720_s1 + $0x4f4] ss:$8 sps:$4 sm:$0xff]  }
 0x114   : > { %4298 = vmatprep.subr.bf16.mxu0 %v11251_v58  ;;  %v1770_v58 = vld [vmem:[#allocation4 + $0x2a0] sm:$0x77]  ;;  %v974_v16 = vrot.slane %v972_v26, 4 }
 0x115   : > { %v9679_v8 = vcombine.high %v852_v57, %v1770_v58  ;;  %v984_v13 = vrot.slane %v12807_v38, 4 }
 0x116   : > { %4248 = vmatmul.mubr.bf16.vlgmr.msra.gmra.mrb[0].mxu0 %v9606_v17  ;;  %v11267_v17 = vld [vmem:[%s15720_s1 + $0x460] ss:$8 sps:$4 sm:$0xff]   ;;  %v12822_v34 = vsel %vm12699_vm8, %v974_v16, %v12807_v38 }
 0x117   : > { %4299 = vmatpush1.bf16.msra.mxu0 %v11249_v21  ;;  %4257 = vmatprep.mubr.bf16.mxu0 %v9625_v27  ;;  %v11272_v21 = vld [vmem:[%s15720_s1 + $0x474] ss:$8 sps:$4 sm:$0xff]   ;;  %v11270_v27 = vld [vmem:[%s15720_s1 + $0x470] ss:$8 sps:$4 sm:$0xff]  }
 0x118   : > { %4300 = vmatprep.subr.bf16.mxu0 %v11254_v28  ;;  %v964_v28 = vrot.slane %v963_v60, 4  ;;  %v1016_v60 = vshrl.u32 %v12737_v12, 16 }
 0x11a   : > { %v12817_v33 = vsel %vm12699_vm8, %v964_v28, %v972_v26  ;;  %v1019_v26 = vshll.u32 %v12737_v12, 16  ;;  %v1018_v28 = vrot.slane %v1016_v60, 5  ;;  %v1081_v60 = vld [vmem:[#allocation2 + $0x18] sm:$0xf0] }
 0x11b   : > { %4301 = vmatpush1.bf16.msra.mxu0 %v11252_v20  ;;  %v9678_v20 = vcombine.low %v852_v57, %v1770_v58  ;;  %v9609_v31 = vcombine.high %v12817_v33, %v12822_v34  ;;  %v1008_v57 = vrot.slane %v1006_v45, 5  ;;  %v1011_v58 = vrot.slane %v1009_v47, 6  ;;  %v11311_v45 = vld [vmem:[%s15720_s1 + $0x544] ss:$8 sps:$4 sm:$0xff]  }
 0x11c   : > { %4302 = vmatprep.subr.bf16.mxu0 %v11257_v11  ;;  %v11273_v11 = vld [vmem:[%s15720_s1 + $0x480] ss:$8 sps:$4 sm:$0xff]   ;;  %v1021_v16 = vrot.slane %v1019_v26, 6  ;;  %v11312_v26 = vld [vmem:[%s15720_s1 + $0x550] ss:$8 sps:$4 sm:$0xff]  }
 0x11e   : > { %4258 = vmatmul.mubr.bf16.gmra.mrb[4].mxu0 %v9624_v36  ;;  %v11284_v36 = vld [vmem:[%s15720_s1 + $0x4b4] ss:$8 sps:$4 sm:$0xff]  }
 0x11f   : > { %4303 = vmatpush1.bf16.msra.mxu0 %v11255_v40  ;;  %4267 = vmatprep.mubr.bf16.mxu0 %v9643_v42  ;;  %v1100_v40 = vld [vmem:[#allocation2 + $0xb0] sm:$0x3]  ;;  %v1188_v42 = vrot.slane %v12543_v37, 6  ;;  %v11368_v37 = vld [vmem:[%s15720_s1 + $0x674] ss:$8 sps:$4 sm:$0xff]  }
 0x120   : > { %4304 = vmatprep.subr.bf16.mxu0 %v11260_v41  ;;  %v11282_v41 = vld [vmem:[%s15720_s1 + $0x4b0] ss:$8 sps:$4 sm:$0xff]  }
 0x121   : > { %v1190_v22 = vrot.slane %v1188_v42, 4 }
 0x123   : > { %4305 = vmatpush1.bf16.msra.mxu0 %v11258_v51  ;;  %v1101_v51 = vld [vmem:[#allocation2 + $0xb8] sm:$0x3] }
 0x124   : > { %4306 = vmatprep.subr.bf16.mxu0 %v11263_v5  ;;  %v10524_v5 = vpack.c.bf16 %v1101_v51, %v1100_v40  ;;  %v11302_v40 = vld [vmem:[%s15720_s1 + $0x514] ss:$8 sps:$4 sm:$0xff]   ;;  %v11305_v51 = vld [vmem:[%s15720_s1 + $0x524] ss:$8 sps:$4 sm:$0xff]  }
 0x126   : > { %4268 = vmatmul.mubr.bf16.gmra.mrb[8].mxu0 %v9642_v61  ;;  %v1191_v53 = vrot.slane %v10524_v5, 6  ;;  %v999_v61 = vshll.u32 %v12713_v2, 16 }
 0x127   : > { %4307 = vmatpush1.bf16.msra.mxu0 %v11261_v46  ;;  %4277 = vmatprep.mubr.bf16.mxu0 %v9661_v0  ;;  %v996_v46 = vshrl.u32 %v12713_v2, 16 }
 0x128   : > { %4308 = vmatprep.subr.bf16.mxu0 %v11266_v63  ;;  %v15788_v63 = vmov 0  ;;  %v1192_v0 = vsel %vm12864_vm11, %v1190_v22, %v1191_v53 }
 0x129   : > { %v15789_v63 = vsel %vm12864_vm11, 4294967295, %v15788_v63  ;;  %1212 = vst [vmem:[#allocation4 + $0x2b0] sm:$0x77] %v1192_v0  ;;  %v998_v6 = vrot.slane %v996_v46, 5 }
 0x12a   : > { %15790 = vst [vmem:[#allocation9_spill] sm:$0xff] %v15789_v63 }
 0x12b   : > { %4309 = vmatpush1.bf16.msra.mxu0 %v11264_v9  ;;  %v1001_v9 = vrot.slane %v999_v61, 6 }
 0x12c   : > { %4310 = vmatprep.subr.bf16.mxu0 %v11269_v15  ;;  %v11291_v15 = vld [vmem:[%s15720_s1 + $0x4e0] ss:$8 sps:$4 sm:$0xff]  }
 0x12e   : > { %4278 = vmatmul.mubr.bf16.gmra.mrb[12].mxu0 %v9660_v10  ;;  %v994_v10 = vrot.slane %v992_v4, 4 }
 0x12f   : > { %4311 = vmatpush1.bf16.msra.mxu0 %v11267_v17  ;;  %4287 = vmatprep.mubr.bf16.mxu0 %v9679_v8  ;;  %v1002_v17 = vor.u32 %v1001_v9, %v998_v6  ;;  %v1012_v8 = vor.u32 %v1011_v58, %v1008_v57  ;;  %v11309_v6 = vld [vmem:[%s15720_s1 + $0x540] ss:$8 sps:$4 sm:$0xff]   ;;  %v1080_v58 = vld [vmem:[#allocation2 + $0x10] sm:$0xf0] }
 0x130   : > { %4312 = vmatprep.subr.bf16.mxu0 %v11272_v21  ;;  %v11294_v21 = vld [vmem:[%s15720_s1 + $0x4f0] ss:$8 sps:$4 sm:$0xff]  }
 0x131   : > { %v1003_v38 = vsel %vm12699_vm8, %v994_v10, %v1002_v17  ;;  %v1771_v10 = vld [vmem:[#allocation4 + $0x2a8] sm:$0x77] }
 0x133   : > { %4313 = vmatpush1.bf16.msra.mxu0 %v11270_v27  ;;  %v11299_v27 = vld [vmem:[%s15720_s1 + $0x504] ss:$8 sps:$4 sm:$0xff]  }
 0x134   : > { %4314 = vmatprep.subr.bf16.mxu0 %v11275_v23  ;;  %v993_v23 = vsel %vm12699_vm8, %v984_v13, %v992_v4 }
 0x135   : > { %v9626_v53 = vcombine.low %v993_v23, %v1003_v38 }
 0x136   : > { %4288 = vmatmul.mubr.bf16.gmra.mrb[16].mxu0 %v9678_v20  ;;  %v1026_v20 = vshrl.u32 %v12749_v24, 16 }
 0x137   : > { %4315 = vmatpush1.bf16.msra.mxu0 %v11273_v11  ;;  %4330 = vmatprep.mubr.bf16.mxu0 %v9609_v31  ;;  %v1029_v11 = vshll.u32 %v12749_v24, 16  ;;  %v11297_v31 = vld [vmem:[%s15720_s1 + $0x500] ss:$8 sps:$4 sm:$0xff]  }
 0x138   : > { %4316 = vmatprep.subr.bf16.mxu0 %v11278_v30  ;;  %v9608_v30 = vcombine.low %v12817_v33, %v12822_v34  ;;  %v1039_v33 = vshll.u32 %v12384_v1, 16  ;;  %v11300_v34 = vld [vmem:[%s15720_s1 + $0x510] ss:$8 sps:$4 sm:$0xff]   ;;  %v1038_v1 = vrot.slane %v1036_v48, 5 }
 0x139   : > { %v1232_v48 = vld [vmem:[#allocation2 + $0xb8] sm:$0xff] }
 0x13b   : > { %4317 = vmatpush1.bf16.msra.mxu0 %v11276_v32  ;;  %v9627_v32 = vcombine.high %v993_v23, %v1003_v38 }
 0x13c   : > { %4318 = vmatprep.subr.bf16.mxu0 %v11281_v35  ;;  %v1004_v35 = vrot.slane %v1002_v17, 4  ;;  %v10514_v17 = vpack.c.bf16 %v1081_v60, %v1080_v58  ;;  %v11345_v58 = vld [vmem:[%s15720_s1 + $0x600] ss:$8 sps:$4 sm:$0xff]  }
 0x13e   : > { %v1013_v49 = vsel %vm12699_vm8, %v1004_v35, %v1012_v8  ;;  %v9564_v23 = vrot.slane %v10514_v17, 10  ;;  %v11326_v35 = vld [vmem:[%s15720_s1 + $0x594] ss:$8 sps:$4 sm:$0xff]  }
 0x13f   : > { %4319 = vmatpush1.bf16.msra.mxu0 %v11279_v19  ;;  %v1014_v19 = vrot.slane %v1012_v8, 4  ;;  %v1096_v17 = vld [vmem:[#allocation2 + $0x90] sm:$0xff] }
 0x140   : > { %4320 = vmatprep.subr.bf16.mxu0 %v11284_v36  ;;  %v1022_v36 = vor.u32 %v1021_v16, %v1018_v28  ;;  %v11315_v28 = vld [vmem:[%s15720_s1 + $0x560] ss:$8 sps:$4 sm:$0xff]  }
 0x142   : > { %v1023_v5 = vsel %vm12699_vm8, %v1014_v19, %v1022_v36  ;;  %v1024_v46 = vrot.slane %v1022_v36, 4  ;;  %v11324_v19 = vld [vmem:[%s15720_s1 + $0x590] ss:$8 sps:$4 sm:$0xff]   ;;  %v11329_v36 = vld [vmem:[%s15720_s1 + $0x5a4] ss:$8 sps:$4 sm:$0xff]  }
 0x143   : > { %4321 = vmatpush1.bf16.msra.mxu0 %v11282_v41  ;;  %v1028_v41 = vrot.slane %v1026_v20, 5  ;;  %v9645_v54 = vcombine.high %v1013_v49, %v1023_v5  ;;  %v9644_v4 = vcombine.low %v1013_v49, %v1023_v5  ;;  %v11323_v20 = vld [vmem:[%s15720_s1 + $0x584] ss:$8 sps:$4 sm:$0xff]   ;;  %v11330_v49 = vld [vmem:[%s15720_s1 + $0x5b0] ss:$8 sps:$4 sm:$0xff]  }
 0x144   : > { %4322 = vmatprep.subr.bf16.mxu0 %v11287_v29  ;;  %v1031_v29 = vrot.slane %v1029_v11, 6  ;;  %v11335_v5 = vld [vmem:[%s15720_s1 + $0x5c4] ss:$8 sps:$4 sm:$0xff]  }
 0x146   : > { %v1032_v22 = vor.u32 %v1031_v29, %v1028_v41  ;;  %v11332_v41 = vld [vmem:[%s15720_s1 + $0x5b4] ss:$8 sps:$4 sm:$0xff]  }
 0x147   : > { %4323 = vmatpush1.bf16.msra.mxu0 %v11285_v52  ;;  %v1041_v52 = vrot.slane %v1039_v33, 6  ;;  %v1231_v29 = vld [vmem:[#allocation2 + $0xb0] sm:$0xff] }
 0x148   : > { %4324 = vmatprep.subr.bf16.mxu0 %v11290_v55  ;;  %v11303_v55 = vld [vmem:[%s15720_s1 + $0x520] ss:$8 sps:$4 sm:$0xff]   ;;  %v1034_v61 = vrot.slane %v1032_v22, 4  ;;  %v1033_v47 = vsel %vm12699_vm8, %v1024_v46, %v1032_v22  ;;  %v12992_v33 = vpack.c.bf16 %v1232_v48, %v1231_v29  ;;  %v11336_v46 = vld [vmem:[%s15720_s1 + $0x5d0] ss:$8 sps:$4 sm:$0xff]  }
 0x149   : > { %v1042_v0 = vor.u32 %v1041_v52, %v1038_v1  ;;  %v11362_v29 = vld [vmem:[%s15720_s1 + $0x654] ss:$8 sps:$4 sm:$0xff]  }
 0x14a   : > { %v1318_v1 = vrot.slane %v12992_v33, 6 }
 0x14b   : > { %4325 = vmatpush1.bf16.msra.mxu0 %v11288_v43  ;;  %v11306_v43 = vld [vmem:[%s15720_s1 + $0x530] ss:$8 sps:$4 sm:$0xff]   ;;  %v1044_v57 = vrot.slane %v1042_v0, 4 }
 0x14c   : > { %4326 = vmatprep.subr.bf16.mxu0 %v11293_v59  ;;  %v1043_v59 = vsel %vm12699_vm8, %v1034_v61, %v1042_v0  ;;  %v1320_v52 = vrot.slane %v1318_v1, 4  ;;  %v11341_v61 = vld [vmem:[%s15720_s1 + $0x5e4] ss:$8 sps:$4 sm:$0xff]   ;;  %v1170_v0 = vrot.slane %v12703_v18, 6 }
 0x14d   : > { %v9663_v9 = vcombine.high %v1033_v47, %v1043_v59  ;;  %v1053_v13 = vsel %vm12699_vm8, %v1044_v57, %v12690_v50  ;;  %v9662_v8 = vcombine.low %v1033_v47, %v1043_v59  ;;  %v1167_v50 = vrot.slane %v12633_v7, 6  ;;  %v11347_v18 = vld [vmem:[%s15720_s1 + $0x604] ss:$8 sps:$4 sm:$0xff]  }
 0x14e   : > { %v9681_v16 = vcombine.high %v1053_v13, %v1771_v10  ;;  %v9680_v7 = vcombine.low %v1053_v13, %v1771_v10  ;;  %v1172_v59 = vrot.slane %v1170_v0, 4  ;;  %v1176_v57 = vrot.slane %v12725_v44, 6  ;;  %v1097_v44 = vld [vmem:[#allocation2 + $0x98] sm:$0xff] }
 0x14f   : > { %4327 = vmatpush1.bf16.msra.mxu0 %v11291_v15  ;;  %v11314_v15 = vld [vmem:[%s15720_s1 + $0x554] ss:$8 sps:$4 sm:$0xff]   ;;  %v1169_v47 = vrot.slane %v1167_v50, 4  ;;  %v1179_v10 = vrot.slane %v12737_v12, 6 }
 0x150   : > { %4328 = vmatprep.subr.bf16.mxu0 %v11296_v62  ;;  %v11317_v62 = vld [vmem:[%s15720_s1 + $0x564] ss:$8 sps:$4 sm:$0xff]   ;;  %v1178_v13 = vrot.slane %v1176_v57, 4 }
 0x152   : > { %v1180_v12 = vsel %vm12864_vm11, %v1178_v13, %v1179_v10  ;;  %v1364_v13 = vld [vmem:[#allocation2 + $0xc8] sm:$0x7] }
 0x153   : > { %4329 = vmatpush1.bf16.msra.mxu0 %v11294_v21  ;;  %v1164_v21 = vrot.slane %v12616_v3, 6  ;;  %v11318_v3 = vld [vmem:[%s15720_s1 + $0x570] ss:$8 sps:$4 sm:$0xff]  }
 0x154   : > { %4381 = vmatprep.subr.bf16.mxu0 %v11299_v27  ;;  %v11320_v27 = vld [vmem:[%s15720_s1 + $0x574] ss:$8 sps:$4 sm:$0xff]  }
 0x155   : > { %v1166_v38 = vrot.slane %v1164_v21, 4  ;;  %v12966_v11 = vsel %vm12864_vm11, %v9564_v23, %v1164_v21  ;;  %v11348_v21 = vld [vmem:[%s15720_s1 + $0x610] ss:$8 sps:$4 sm:$0xff]  }
 0x156   : > { %4331 = vmatmul.mubr.bf16.vlgmr.msra.gmra.mrb[0].mxu0 %v9608_v30 }
 0x157   : > { %4382 = vmatpush1.bf16.msra.mxu0 %v11297_v31  ;;  %4340 = vmatprep.mubr.bf16.mxu0 %v9627_v32  ;;  %v12970_v30 = vsel %vm12864_vm11, %v1166_v38, %v1167_v50  ;;  %v11321_v31 = vld [vmem:[%s15720_s1 + $0x580] ss:$8 sps:$4 sm:$0xff]  }
 0x158   : > { %4383 = vmatprep.subr.bf16.mxu0 %v11302_v40  ;;  %v9611_v32 = vcombine.high %v12966_v11, %v12970_v30  ;;  %v11327_v40 = vld [vmem:[%s15720_s1 + $0x5a0] ss:$8 sps:$4 sm:$0xff]  }
 0x159   : > { %v11351_v38 = vld [vmem:[%s15720_s1 + $0x620] ss:$8 sps:$4 sm:$0xff]  }
 0x15b   : > { %4384 = vmatpush1.bf16.msra.mxu0 %v11300_v34  ;;  %v1233_v34 = vld [vmem:[#allocation2 + $0xc0] sm:$0x3] }
 0x15c   : > { %4385 = vmatprep.subr.bf16.mxu0 %v11305_v51  ;;  %v1234_v51 = vld [vmem:[#allocation2 + $0xc8] sm:$0x3] }
 0x15d   : > { %v10535_v22 = vpack.c.bf16 %v1234_v51, %v1233_v34  ;;  %v1213_v34 = vld [vmem:[#allocation2 + $0x20] sm:$0xf0]  ;;  %v1214_v51 = vld [vmem:[#allocation2 + $0x28] sm:$0xf0] }
 0x15e   : > { %4341 = vmatmul.mubr.bf16.gmra.mrb[4].mxu0 %v9626_v53 }
 0x15f   : > { %4386 = vmatpush1.bf16.msra.mxu0 %v11303_v55  ;;  %4350 = vmatprep.mubr.bf16.mxu0 %v9645_v54  ;;  %v1321_v53 = vrot.slane %v10535_v22, 6  ;;  %v11333_v55 = vld [vmem:[%s15720_s1 + $0x5c0] ss:$8 sps:$4 sm:$0xff]   ;;  %v11338_v54 = vld [vmem:[%s15720_s1 + $0x5d4] ss:$8 sps:$4 sm:$0xff]  }
 0x160   : > { %4387 = vmatprep.subr.bf16.mxu0 %v11308_v56  ;;  %v1218_v22 = vld [vmem:[#allocation2 + $0x48] sm:$0xff] }
 0x161   : > { %v1322_v56 = vsel %vm12864_vm11, %v1320_v52, %v1321_v53  ;;  %v11360_v52 = vld [vmem:[%s15720_s1 + $0x650] ss:$8 sps:$4 sm:$0xff]   ;;  %v11365_v53 = vld [vmem:[%s15720_s1 + $0x664] ss:$8 sps:$4 sm:$0xff]  }
 0x162   : > { %1342 = vst [vmem:[#allocation4 + $0x2b8] sm:$0x77] %v1322_v56  ;;  %v10525_v56 = vpack.c.bf16 %v1214_v51, %v1213_v34  ;;  %v11384_v51 = vld [vmem:[%s15720_s1 + $0x6d0] ss:$8 sps:$4 sm:$0xff]  }
 0x163   : > { %4388 = vmatpush1.bf16.msra.mxu0 %v11306_v43  ;;  %v11339_v43 = vld [vmem:[%s15720_s1 + $0x5e0] ss:$8 sps:$4 sm:$0xff]  }
 0x164   : > { %4389 = vmatprep.subr.bf16.mxu0 %v11311_v45  ;;  %v11344_v45 = vld [vmem:[%s15720_s1 + $0x5f4] ss:$8 sps:$4 sm:$0xff]  }
 0x166   : > { %4351 = vmatmul.mubr.bf16.gmra.mrb[8].mxu0 %v9644_v4  ;;  %v1173_v4 = vrot.slane %v12713_v2, 6  ;;  %v9610_v2 = vcombine.low %v12966_v11, %v12970_v30 }
 0x167   : > { %4390 = vmatpush1.bf16.msra.mxu0 %v11309_v6  ;;  %4360 = vmatprep.mubr.bf16.mxu0 %v9663_v9  ;;  %v11342_v6 = vld [vmem:[%s15720_s1 + $0x5f0] ss:$8 sps:$4 sm:$0xff]   ;;  %v1171_v9 = vsel %vm12864_vm11, %v1169_v47, %v1170_v0  ;;  %v9576_v47 = vrot.slane %v10525_v56, 10  ;;  %v11392_v56 = vld [vmem:[%s15720_s1 + $0x6f4] ss:$8 sps:$4 sm:$0xff]  }
 0x168   : > { %4391 = vmatprep.subr.bf16.mxu0 %v11314_v15  ;;  %v1174_v15 = vsel %vm12864_vm11, %v1172_v59, %v1173_v4 }
 0x169   : > { %v9629_v60 = vcombine.high %v1171_v9, %v1174_v15  ;;  %v9628_v23 = vcombine.low %v1171_v9, %v1174_v15 }
 0x16b   : > { %4392 = vmatpush1.bf16.msra.mxu0 %v11312_v26  ;;  %v11350_v26 = vld [vmem:[%s15720_s1 + $0x614] ss:$8 sps:$4 sm:$0xff]  }
 0x16c   : > { %4393 = vmatprep.subr.bf16.mxu0 %v11317_v62  ;;  %v1175_v62 = vrot.slane %v1173_v4, 4  ;;  %v11366_v4 = vld [vmem:[%s15720_s1 + $0x670] ss:$8 sps:$4 sm:$0xff]  }
 0x16e   : > { %4361 = vmatmul.mubr.bf16.gmra.mrb[12].mxu0 %v9662_v8  ;;  %v11353_v8 = vld [vmem:[%s15720_s1 + $0x624] ss:$8 sps:$4 sm:$0xff]  }
 0x16f   : > { %4394 = vmatpush1.bf16.msra.mxu0 %v11315_v28  ;;  %4370 = vmatprep.mubr.bf16.mxu0 %v9681_v16  ;;  %v1177_v28 = vsel %vm12864_vm11, %v1175_v62, %v1176_v57  ;;  %v13055_v16 = vpack.c.bf16 %v1097_v44, %v1096_v17  ;;  %v11369_v57 = vld [vmem:[%s15720_s1 + $0x680] ss:$8 sps:$4 sm:$0xff]   ;;  %v1515_v44 = vshrl.u32 %v12992_v33, 16 }
 0x170   : > { %4395 = vmatprep.subr.bf16.mxu0 %v11320_v27  ;;  %v1182_v27 = vrot.slane %v12749_v24, 6  ;;  %v9647_v50 = vcombine.high %v1177_v28, %v1180_v12  ;;  %v11354_v24 = vld [vmem:[%s15720_s1 + $0x630] ss:$8 sps:$4 sm:$0xff]   ;;  %v1363_v62 = vld [vmem:[#allocation2 + $0xc0] sm:$0x7] }
 0x171   : > { %v13065_v30 = vrot.slane %v13055_v16, 6  ;;  %v10546_v17 = vpack.c.bf16 %v1364_v13, %v1363_v62 }
 0x172   : > { %v1184_v11 = vrot.slane %v1182_v27, 4 }
 0x173   : > { %4396 = vmatpush1.bf16.msra.mxu0 %v11318_v3  ;;  %v11356_v3 = vld [vmem:[%s15720_s1 + $0x634] ss:$8 sps:$4 sm:$0xff]   ;;  %v1187_v48 = vrot.slane %v13065_v30, 4 }
 0x174   : > { %4397 = vmatprep.subr.bf16.mxu0 %v11323_v20  ;;  %v1181_v20 = vrot.slane %v1179_v10, 4  ;;  %v11375_v10 = vld [vmem:[%s15720_s1 + $0x6a0] ss:$8 sps:$4 sm:$0xff]  }
 0x176   : > { %4371 = vmatmul.mubr.bf16.gmra.mrb[16].mxu0 %v9680_v7  ;;  %v11359_v7 = vld [vmem:[%s15720_s1 + $0x644] ss:$8 sps:$4 sm:$0xff]  }
 0x177   : > { %4398 = vmatpush1.bf16.msra.mxu0 %v11321_v31  ;;  %4413 = vmatprep.mubr.bf16.mxu0 %v9611_v32  ;;  %v1183_v31 = vsel %vm12864_vm11, %v1181_v20, %v1182_v27  ;;  %v1186_v32 = vsel %vm12864_vm11, %v1184_v11, %v13065_v30  ;;  %v1528_v27 = vshll.u32 %v10546_v17, 16  ;;  %v1219_v11 = vld [vmem:[#allocation2 + $0x50] sm:$0xff] }
 0x178   : > { %4399 = vmatprep.subr.bf16.mxu0 %v11326_v35  ;;  %v1215_v35 = vld [vmem:[#allocation2 + $0x30] sm:$0xff]  ;;  %v9664_v0 = vcombine.low %v1183_v31, %v1186_v32 }
 0x179   : > { %v1530_v20 = vrot.slane %v1528_v27, 7  ;;  %v1344_v27 = vld [vmem:[#allocation2 + $0x28] sm:$0xe0] }
 0x17b   : > { %4400 = vmatpush1.bf16.msra.mxu0 %v11324_v19  ;;  %v1216_v19 = vld [vmem:[#allocation2 + $0x38] sm:$0xff] }
 0x17c   : > { %4401 = vmatprep.subr.bf16.mxu0 %v11329_v36  ;;  %v9646_v36 = vcombine.low %v1177_v28, %v1180_v12  ;;  %v1518_v28 = vshll.u32 %v12992_v33, 16  ;;  %v1525_v12 = vshrl.u32 %v10546_v17, 16  ;;  %v1229_v17 = vld [vmem:[#allocation2 + $0xa0] sm:$0xff] }
 0x17f   : > { %4402 = vmatpush1.bf16.msra.mxu0 %v11327_v40  ;;  %v11357_v40 = vld [vmem:[%s15720_s1 + $0x640] ss:$8 sps:$4 sm:$0xff]  }
 0x180   : > { %4403 = vmatprep.subr.bf16.mxu0 %v11332_v41  ;;  %v9665_v41 = vcombine.high %v1183_v31, %v1186_v32  ;;  %v11381_v32 = vld [vmem:[%s15720_s1 + $0x6c0] ss:$8 sps:$4 sm:$0xff]  }
 0x183   : > { %4404 = vmatpush1.bf16.msra.mxu0 %v11330_v49  ;;  %v13085_v49 = vpack.c.bf16 %v1216_v19, %v1215_v35  ;;  %v11386_v19 = vld [vmem:[%s15720_s1 + $0x6d4] ss:$8 sps:$4 sm:$0xff]  }
 0x184   : > { %4405 = vmatprep.subr.bf16.mxu0 %v11335_v5  ;;  %v1217_v5 = vld [vmem:[#allocation2 + $0x40] sm:$0xff] }
 0x187   : > { %4406 = vmatpush1.bf16.msra.mxu0 %v11333_v55  ;;  %v1189_v55 = vsel %vm12864_vm11, %v1187_v48, %v1188_v42 }
 0x188   : > { %4407 = vmatprep.subr.bf16.mxu0 %v11338_v54  ;;  %v1772_v54 = vld [vmem:[#allocation4 + $0x2b0] sm:$0x77] }
 0x189   : > { %v9682_v15 = vcombine.low %v1189_v55, %v1772_v54 }
 0x18b   : > { %4408 = vmatpush1.bf16.msra.mxu0 %v11336_v46  ;;  %v13099_v46 = vpack.c.bf16 %v1218_v22, %v1217_v5  ;;  %v11389_v5 = vld [vmem:[%s15720_s1 + $0x6e4] ss:$8 sps:$4 sm:$0xff]  }
 0x18c   : > { %4409 = vmatprep.subr.bf16.mxu0 %v11341_v61  ;;  %v1294_v61 = vrot.slane %v13085_v49, 6 }
 0x18d   : > { %v1297_v59 = vrot.slane %v13099_v46, 6 }
 0x18e   : > { %v1296_v42 = vrot.slane %v1294_v61, 4 }
 0x18f   : > { %4410 = vmatpush1.bf16.msra.mxu0 %v11339_v43  ;;  %v11363_v43 = vld [vmem:[%s15720_s1 + $0x660] ss:$8 sps:$4 sm:$0xff]  }
 0x190   : > { %4411 = vmatprep.subr.bf16.mxu0 %v11344_v45  ;;  %v9683_v45 = vcombine.high %v1189_v55, %v1772_v54  ;;  %v13123_v9 = vsel %vm12864_vm11, %v1296_v42, %v1297_v59  ;;  %v1224_v55 = vld [vmem:[#allocation2 + $0x78] sm:$0xff]  ;;  %v11387_v54 = vld [vmem:[%s15720_s1 + $0x6e0] ss:$8 sps:$4 sm:$0xff]  }
 0x191   : > { %v11390_v42 = vld [vmem:[%s15720_s1 + $0x6f0] ss:$8 sps:$4 sm:$0xff]  }
 0x193   : > { %4412 = vmatpush1.bf16.msra.mxu0 %v11342_v6  ;;  %v11371_v6 = vld [vmem:[%s15720_s1 + $0x684] ss:$8 sps:$4 sm:$0xff]  }
 0x194   : > { %4464 = vmatprep.subr.bf16.mxu0 %v11347_v18  ;;  %v13117_v18 = vsel %vm12864_vm11, %v9576_v47, %v1294_v61  ;;  %v1299_v61 = vrot.slane %v1297_v59, 4  ;;  %v1226_v47 = vld [vmem:[#allocation2 + $0x88] sm:$0xff] }
 0x196   : > { %4414 = vmatmul.mubr.bf16.vlgmr.msra.gmra.mrb[0].mxu0 %v9610_v2  ;;  %v9613_v2 = vcombine.high %v13117_v18, %v13123_v9 }
 0x197   : > { %4465 = vmatpush1.bf16.msra.mxu0 %v11345_v58  ;;  %4423 = vmatprep.mubr.bf16.mxu0 %v9629_v60  ;;  %v11374_v58 = vld [vmem:[%s15720_s1 + $0x694] ss:$8 sps:$4 sm:$0xff]   ;;  %v11372_v60 = vld [vmem:[%s15720_s1 + $0x690] ss:$8 sps:$4 sm:$0xff]  }
 0x198   : > { %4466 = vmatprep.subr.bf16.mxu0 %v11350_v26  ;;  %v11377_v26 = vld [vmem:[%s15720_s1 + $0x6a4] ss:$8 sps:$4 sm:$0xff]  }
 0x19b   : > { %4467 = vmatpush1.bf16.msra.mxu0 %v11348_v21  ;;  %v11380_v21 = vld [vmem:[%s15720_s1 + $0x6b4] ss:$8 sps:$4 sm:$0xff]  }
 0x19c   : > { %4468 = vmatprep.subr.bf16.mxu0 %v11353_v8  ;;  %v1517_v8 = vrot.slane %v1515_v44, 6  ;;  %v1230_v44 = vld [vmem:[#allocation2 + $0xa8] sm:$0xff] }
 0x19e   : > { %4424 = vmatmul.mubr.bf16.gmra.mrb[4].mxu0 %v9628_v23  ;;  %v11378_v23 = vld [vmem:[%s15720_s1 + $0x6b0] ss:$8 sps:$4 sm:$0xff]  }
 0x19f   : > { %4469 = vmatpush1.bf16.msra.mxu0 %v11351_v38  ;;  %4433 = vmatprep.mubr.bf16.mxu0 %v9647_v50  ;;  %v1520_v38 = vrot.slane %v1518_v28, 7  ;;  %v1527_v50 = vrot.slane %v1525_v12, 6  ;;  %v13222_v28 = vpack.c.bf16 %v1230_v44, %v1229_v17  ;;  %v1343_v12 = vld [vmem:[#allocation2 + $0x20] sm:$0xe0]  ;;  %v15794_v17 = vmov 0 }
 0x1a0   : > { %4470 = vmatprep.subr.bf16.mxu0 %v11356_v3  ;;  %v11383_v3 = vld [vmem:[%s15720_s1 + $0x6c4] ss:$8 sps:$4 sm:$0xff]   ;;  %v15795_v17 = vsel %vm13267_vm3, 4294967295, %v15794_v17  ;;  %v11411_v44 = vld [vmem:[%s15720_s1 + $0x760] ss:$8 sps:$4 sm:$0xff]  }
 0x1a1   : > { %v1531_v31 = vor.u32 %v1530_v20, %v1527_v50  ;;  %v11404_v20 = vld [vmem:[%s15720_s1 + $0x734] ss:$8 sps:$4 sm:$0xff]   ;;  %15796 = vst [vmem:[#allocation11_spill] sm:$0xff] %v15795_v17 }
 0x1a3   : > { %4471 = vmatpush1.bf16.msra.mxu0 %v11354_v24  ;;  %v1220_v24 = vld [vmem:[#allocation2 + $0x58] sm:$0xff] }
 0x1a4   : > { %4472 = vmatprep.subr.bf16.mxu0 %v11359_v7  ;;  %v13153_v7 = vor.u32 %v1520_v38, %v1517_v8  ;;  %v11399_v38 = vld [vmem:[%s15720_s1 + $0x720] ss:$8 sps:$4 sm:$0xff]  }
 0x1a6   : > { %4434 = vmatmul.mubr.bf16.gmra.mrb[8].mxu0 %v9646_v36  ;;  %v1523_v35 = vrot.slane %v13153_v7, 4  ;;  %v13162_v36 = vpack.c.bf16 %v1220_v24, %v1219_v11  ;;  %v1315_v24 = vrot.slane %v13222_v28, 6 }
 0x1a7   : > { %4473 = vmatpush1.bf16.msra.mxu0 %v11357_v40  ;;  %4443 = vmatprep.mubr.bf16.mxu0 %v9665_v41  ;;  %v15791_v40 = vmov 0  ;;  %v1221_v41 = vld [vmem:[#allocation2 + $0x60] sm:$0xff] }
 0x1a8   : > { %4474 = vmatprep.subr.bf16.mxu0 %v11362_v29  ;;  %v15792_v40 = vsel %vm13164_vm14, 4294967295, %v15791_v40  ;;  %v1222_v29 = vld [vmem:[#allocation2 + $0x68] sm:$0xff]  ;;  %v1532_v34 = vsel %vm13164_vm14, %v1523_v35, %v1531_v31  ;;  %v11402_v31 = vld [vmem:[%s15720_s1 + $0x730] ss:$8 sps:$4 sm:$0xff]  }
 0x1a9   : > { %15793 = vst [vmem:[#allocation10_spill] sm:$0xff] %v15792_v40  ;;  %1552 = vst [vmem:[#allocation4 + $0x2c0] sm:$0x77] %v1532_v34  ;;  %v13176_v22 = vpack.c.bf16 %v1222_v29, %v1221_v41  ;;  %v1316_v29 = vsel %vm12864_vm11, %v1187_v48, %v1315_v24  ;;  %v1435_v34 = vshrl.u32 %v13085_v49, 16 }
 0x1ab   : > { %4475 = vmatpush1.bf16.msra.mxu0 %v11360_v52  ;;  %v1300_v52 = vrot.slane %v13162_v36, 6  ;;  %v1437_v48 = vrot.slane %v1435_v34, 6  ;;  %v11494_v34 = vld [vmem:[%s15722_s3 + $0x10] ss:$8 sps:$4 sm:$0xff]  }
 0x1ac   : > { %4476 = vmatprep.subr.bf16.mxu0 %v11365_v53  ;;  %v1223_v53 = vld [vmem:[#allocation2 + $0x70] sm:$0xff] }
 0x1ad   : > { %v1301_v59 = vsel %vm12864_vm11, %v1299_v61, %v1300_v52 }
 0x1ae   : > { %4444 = vmatmul.mubr.bf16.gmra.mrb[12].mxu0 %v9664_v0  ;;  %v1302_v0 = vrot.slane %v1300_v52, 4  ;;  %v1317_v52 = vrot.slane %v1315_v24, 4 }
 0x1af   : > { %4477 = vmatpush1.bf16.msra.mxu0 %v11363_v43  ;;  %4453 = vmatprep.mubr.bf16.mxu0 %v9683_v45  ;;  %v1303_v43 = vrot.slane %v13176_v22, 6  ;;  %v13188_v45 = vpack.c.bf16 %v1224_v55, %v1223_v53  ;;  %v11405_v53 = vld [vmem:[%s15720_s1 + $0x740] ss:$8 sps:$4 sm:$0xff]  }
 0x1b0   : > { %4478 = vmatprep.subr.bf16.mxu0 %v11368_v37  ;;  %v1225_v37 = vld [vmem:[#allocation2 + $0x80] sm:$0xff] }
 0x1b1   : > { %v1305_v62 = vrot.slane %v1303_v43, 4 }
 0x1b3   : > { %4479 = vmatpush1.bf16.msra.mxu0 %v11366_v4  ;;  %v11395_v4 = vld [vmem:[%s15720_s1 + $0x704] ss:$8 sps:$4 sm:$0xff]  }
 0x1b4   : > { %4480 = vmatprep.subr.bf16.mxu0 %v11371_v6  ;;  %v1304_v6 = vsel %vm12864_vm11, %v1302_v0, %v1303_v43  ;;  %v1445_v0 = vshrl.u32 %v13099_v46, 16  ;;  %v1448_v43 = vshll.u32 %v13099_v46, 16 }
 0x1b6   : > { %4454 = vmatmul.mubr.bf16.gmra.mrb[16].mxu0 %v9682_v15  ;;  %v13200_v15 = vpack.c.bf16 %v1226_v47, %v1225_v37  ;;  %v1573_v37 = vld [vmem:[#allocation2 + $0xc0] sm:$0xf]  ;;  %v1574_v47 = vld [vmem:[#allocation2 + $0xc8] sm:$0xf] }
 0x1b7   : > { %4481 = vmatpush1.bf16.msra.mxu0 %v11369_v57  ;;  %4496 = vmatprep.mubr.bf16.mxu0 %v9613_v2  ;;  %v1306_v57 = vrot.slane %v13188_v45, 6  ;;  %v9612_v2 = vcombine.low %v13117_v18, %v13123_v9  ;;  %v11396_v18 = vld [vmem:[%s15720_s1 + $0x710] ss:$8 sps:$4 sm:$0xff]   ;;  %v11401_v9 = vld [vmem:[%s15720_s1 + $0x724] ss:$8 sps:$4 sm:$0xff]  }
 0x1b8   : > { %4482 = vmatprep.subr.bf16.mxu0 %v11374_v58  ;;  %v11393_v58 = vld [vmem:[%s15720_s1 + $0x700] ss:$8 sps:$4 sm:$0xff]  }
 0x1b9   : > { %v1308_v13 = vrot.slane %v1306_v57, 4 }
 0x1bb   : > { %4483 = vmatpush1.bf16.msra.mxu0 %v11372_v60  ;;  %v9631_v60 = vcombine.high %v1301_v59, %v1304_v6 }
 0x1bc   : > { %4484 = vmatprep.subr.bf16.mxu0 %v11377_v26  ;;  %v11398_v26 = vld [vmem:[%s15720_s1 + $0x714] ss:$8 sps:$4 sm:$0xff]  }
 0x1bf   : > { %4485 = vmatpush1.bf16.msra.mxu0 %v11375_v10  ;;  %v1309_v10 = vrot.slane %v13200_v15, 6 }
 0x1c0   : > { %4486 = vmatprep.subr.bf16.mxu0 %v11380_v21  ;;  %v1307_v21 = vsel %vm12864_vm11, %v1305_v62, %v1306_v57  ;;  %v1450_v62 = vrot.slane %v1448_v43, 7  ;;  %v11429_v43 = vld [vmem:[%s15720_s1 + $0x7c0] ss:$8 sps:$4 sm:$0xff]  }
 0x1c1   : > { %v1310_v8 = vsel %vm12864_vm11, %v1308_v13, %v1309_v10  ;;  %v1311_v11 = vrot.slane %v1309_v10, 4 }
 0x1c2   : > { %v9649_v50 = vcombine.high %v1307_v21, %v1310_v8 }
 0x1c3   : > { %4487 = vmatpush1.bf16.msra.mxu0 %v11378_v23  ;;  %v9630_v23 = vcombine.low %v1301_v59, %v1304_v6  ;;  %v1313_v41 = vsel %vm12864_vm11, %v1311_v11, %v13065_v30  ;;  %v11410_v30 = vld [vmem:[%s15720_s1 + $0x754] ss:$8 sps:$4 sm:$0xff]   ;;  %v10557_v59 = vpack.c.bf16 %v1574_v47, %v1573_v37  ;;  %v11413_v6 = vld [vmem:[%s15720_s1 + $0x764] ss:$8 sps:$4 sm:$0xff]   ;;  %v11417_v11 = vld [vmem:[%s15720_s1 + $0x780] ss:$8 sps:$4 sm:$0xff]  }
 0x1c4   : > { %4488 = vmatprep.subr.bf16.mxu0 %v11383_v3  ;;  %v10536_v3 = vpack.c.bf16 %v1344_v27, %v1343_v12  ;;  %v9667_v55 = vcombine.high %v1313_v41, %v1316_v29  ;;  %v9666_v10 = vcombine.low %v1313_v41, %v1316_v29  ;;  %v11420_v41 = vld [vmem:[%s15720_s1 + $0x790] ss:$8 sps:$4 sm:$0xff]   ;;  %v11425_v29 = vld [vmem:[%s15720_s1 + $0x7a4] ss:$8 sps:$4 sm:$0xff]   ;;  %v11434_v37 = vld [vmem:[%s15720_s1 + $0x7d4] ss:$8 sps:$4 sm:$0xff]  }
 0x1c5   : > { %v1664_v13 = vrot.slane %v10557_v59, 7  ;;  %v1468_v59 = vshll.u32 %v13176_v22, 16 }
 0x1c6   : > { %v1429_v35 = vshll.u32 %v10536_v3, 16 }
 0x1c7   : > { %4489 = vmatpush1.bf16.msra.mxu0 %v11381_v32  ;;  %v1426_v32 = vshrl.u32 %v10536_v3, 16 }
 0x1c8   : > { %4490 = vmatprep.subr.bf16.mxu0 %v11386_v19  ;;  %v11407_v19 = vld [vmem:[%s15720_s1 + $0x744] ss:$8 sps:$4 sm:$0xff]  }
 0x1cb   : > { %4491 = vmatpush1.bf16.msra.mxu0 %v11384_v51  ;;  %v1438_v51 = vshll.u32 %v13085_v49, 16 }
 0x1cc   : > { %4492 = vmatprep.subr.bf16.mxu0 %v11389_v5  ;;  %v9648_v5 = vcombine.low %v1307_v21, %v1310_v8  ;;  %v11416_v21 = vld [vmem:[%s15720_s1 + $0x774] ss:$8 sps:$4 sm:$0xff]  }
 0x1cd   : > { %v1440_v61 = vrot.slane %v1438_v51, 7  ;;  %v11495_v51 = vld [vmem:[%s15722_s3 + $0x24] ss:$8 sps:$4 sm:$0xff]  }
 0x1cf   : > { %4493 = vmatpush1.bf16.msra.mxu0 %v11387_v54  ;;  %v1428_v54 = vrot.slane %v1426_v32, 6  ;;  %v11489_v32 = vld [vmem:[%s15722_s3 + $0x4] ss:$8 sps:$4 sm:$0xff]  }
 0x1d0   : > { %4494 = vmatprep.subr.bf16.mxu0 %v11392_v56  ;;  %v1431_v56 = vrot.slane %v1429_v35, 7  ;;  %v11491_v35 = vld [vmem:[%s15722_s3] ss:$8 sps:$4 sm:$0xff]   ;;  %8469 = vmatprep.subr.bf16.mxu1 %v11489_v32  ;;  %v11510_v32 = vld [vmem:[%s15722_s3 + $0x74] ss:$8 sps:$4 sm:$0xff]  }
 0x1d1   : > { %8470 = vmatpush1.bf16.msra.mxu1 %v11491_v35  ;;  %v11438_v35 = vld [vmem:[%s15720_s1 + $0x7f0] ss:$8 sps:$4 sm:$0xff]  }
 0x1d2   : > { %v1432_v57 = vor.u32 %v1431_v56, %v1428_v54  ;;  %v11426_v54 = vld [vmem:[%s15720_s1 + $0x7b0] ss:$8 sps:$4 sm:$0xff]   ;;  %v11431_v56 = vld [vmem:[%s15720_s1 + $0x7c4] ss:$8 sps:$4 sm:$0xff]  }
 0x1d3   : > { %4495 = vmatpush1.bf16.msra.mxu0 %v11390_v42  ;;  %v11408_v42 = vld [vmem:[%s15720_s1 + $0x750] ss:$8 sps:$4 sm:$0xff]  }
 0x1d4   : > { %4547 = vmatprep.subr.bf16.mxu0 %v11395_v4  ;;  %v1319_v4 = vsel %vm12864_vm11, %v1317_v52, %v1318_v1  ;;  %v1433_v8 = vrot.slane %v1432_v57, 4  ;;  %v11428_v52 = vld [vmem:[%s15720_s1 + $0x7b4] ss:$8 sps:$4 sm:$0xff]  }
 0x1d5   : > { %v11504_v57 = vld [vmem:[%s15722_s3 + $0x54] ss:$8 sps:$4 sm:$0xff]  }
 0x1d6   : > { %4497 = vmatmul.mubr.bf16.vlgmr.msra.gmra.mrb[0].mxu0 %v9612_v2  ;;  %v1661_v2 = vrot.slane %v12992_v33, 7  ;;  %v11519_v33 = vld [vmem:[%s15722_s3 + $0xa4] ss:$8 sps:$4 sm:$0xff]  }
 0x1d7   : > { %4548 = vmatpush1.bf16.msra.mxu0 %v11393_v58  ;;  %4506 = vmatprep.mubr.bf16.mxu0 %v9631_v60  ;;  %v1773_v58 = vld [vmem:[#allocation4 + $0x2b8] sm:$0x77]  ;;  %v1441_v60 = vor.u32 %v1440_v61, %v1437_v48  ;;  %v1458_v48 = vshll.u32 %v13162_v36, 16 }
 0x1d8   : > { %4549 = vmatprep.subr.bf16.mxu0 %v11398_v26  ;;  %v1447_v26 = vrot.slane %v1445_v0, 6  ;;  %v1663_v1 = vrot.slane %v1661_v2, 4  ;;  %v11500_v61 = vld [vmem:[%s15722_s3 + $0x30] ss:$8 sps:$4 sm:$0xff]   ;;  %v11501_v0 = vld [vmem:[%s15722_s3 + $0x44] ss:$8 sps:$4 sm:$0xff]  }
 0x1d9   : > { %v1443_v12 = vrot.slane %v1441_v60, 4 }
 0x1da   : > { %v13279_v27 = vor.u32 %v1450_v62, %v1447_v26  ;;  %v1478_v26 = vshll.u32 %v13188_v45, 16  ;;  %v11437_v62 = vld [vmem:[%s15720_s1 + $0x7e4] ss:$8 sps:$4 sm:$0xff]  }
 0x1db   : > { %4550 = vmatpush1.bf16.msra.mxu0 %v11396_v18  ;;  %v9685_v18 = vcombine.high %v1319_v4, %v1773_v58 }
 0x1dc   : > { %4551 = vmatprep.subr.bf16.mxu0 %v11401_v9  ;;  %v1665_v9 = vsel %vm13267_vm3, %v1663_v1, %v1664_v13  ;;  %v13294_v3 = vsel %vm13164_vm14, %v1443_v12, %v13279_v27  ;;  %v1485_v12 = vshrl.u32 %v13200_v15, 16 }
 0x1dd   : > { %1685 = vst [vmem:[#allocation4 + $0x2c8] sm:$0x77] %v1665_v9  ;;  %v11435_v9 = vld [vmem:[%s15720_s1 + $0x7e0] ss:$8 sps:$4 sm:$0xff]  }
 0x1de   : > { %4507 = vmatmul.mubr.bf16.gmra.mrb[4].mxu0 %v9630_v23  ;;  %v11414_v23 = vld [vmem:[%s15720_s1 + $0x770] ss:$8 sps:$4 sm:$0xff]  }
 0x1df   : > { %4552 = vmatpush1.bf16.msra.mxu0 %v11399_v38  ;;  %4516 = vmatprep.mubr.bf16.mxu0 %v9649_v50  ;;  %v11419_v38 = vld [vmem:[%s15720_s1 + $0x784] ss:$8 sps:$4 sm:$0xff]   ;;  %v13289_v50 = vsel %vm13164_vm14, %v1433_v8, %v1441_v60  ;;  %v1475_v60 = vshrl.u32 %v13188_v45, 16  ;;  %v1480_v8 = vrot.slane %v1478_v26, 7 }
 0x1e0   : > { %4553 = vmatprep.subr.bf16.mxu0 %v11404_v20  ;;  %v9684_v20 = vcombine.low %v1319_v4, %v1773_v58  ;;  %v9615_v24 = vcombine.high %v13289_v50, %v13294_v3  ;;  %v1465_v4 = vshrl.u32 %v13176_v22, 16  ;;  %v11432_v58 = vld [vmem:[%s15720_s1 + $0x7d0] ss:$8 sps:$4 sm:$0xff]  }
 0x1e2   : > { %v1467_v1 = vrot.slane %v1465_v4, 6 }
 0x1e3   : > { %4554 = vmatpush1.bf16.msra.mxu0 %v11402_v31  ;;  %v11422_v31 = vld [vmem:[%s15720_s1 + $0x794] ss:$8 sps:$4 sm:$0xff]  }
 0x1e4   : > { %4555 = vmatprep.subr.bf16.mxu0 %v11407_v19  ;;  %v11492_v19 = vld [vmem:[%s15722_s3 + $0x14] ss:$8 sps:$4 sm:$0xff]  }
 0x1e5   : > { %8471 = vmatprep.subr.bf16.mxu1 %v11492_v19 }
 0x1e6   : > { %4517 = vmatmul.mubr.bf16.gmra.mrb[8].mxu0 %v9648_v5  ;;  %v11423_v5 = vld [vmem:[%s15720_s1 + $0x7a0] ss:$8 sps:$4 sm:$0xff]   ;;  %8472 = vmatpush1.bf16.msra.mxu1 %v11494_v34 }
 0x1e7   : > { %4556 = vmatpush1.bf16.msra.mxu0 %v11405_v53  ;;  %4526 = vmatprep.mubr.bf16.mxu0 %v9667_v55  ;;  %v11497_v53 = vld [vmem:[%s15722_s3 + $0x20] ss:$8 sps:$4 sm:$0xff]   ;;  %v11498_v55 = vld [vmem:[%s15722_s3 + $0x34] ss:$8 sps:$4 sm:$0xff]  }
 0x1e8   : > { %4557 = vmatprep.subr.bf16.mxu0 %v11410_v30  ;;  %8473 = vmatprep.subr.bf16.mxu1 %v11495_v51  ;;  %v1455_v30 = vshrl.u32 %v13162_v36, 16 }
 0x1ea   : > { %8474 = vmatpush1.bf16.msra.mxu1 %v11497_v53  ;;  %v1457_v47 = vrot.slane %v1455_v30, 6  ;;  %v11512_v53 = vld [vmem:[%s15722_s3 + $0x70] ss:$8 sps:$4 sm:$0xff]  }
 0x1eb   : > { %4558 = vmatpush1.bf16.msra.mxu0 %v11408_v42  ;;  %8475 = vmatprep.subr.bf16.mxu1 %v11498_v55  ;;  %v1460_v42 = vrot.slane %v1458_v48, 7  ;;  %v9614_v55 = vcombine.low %v13289_v50, %v13294_v3 }
 0x1ec   : > { %4559 = vmatprep.subr.bf16.mxu0 %v11413_v6  ;;  %v11503_v6 = vld [vmem:[%s15722_s3 + $0x40] ss:$8 sps:$4 sm:$0xff]  }
 0x1ed   : > { %v1461_v13 = vor.u32 %v1460_v42, %v1457_v47  ;;  %v11515_v47 = vld [vmem:[%s15722_s3 + $0x80] ss:$8 sps:$4 sm:$0xff]   ;;  %v11444_v42 = vld [vmem:[%s15720_s1 + $0x810] ss:$8 sps:$4 sm:$0xff]  }
 0x1ee   : > { %4527 = vmatmul.mubr.bf16.gmra.mrb[12].mxu0 %v9666_v10  ;;  %8476 = vmatpush1.bf16.msra.mxu1 %v11500_v61  ;;  %v1470_v10 = vrot.slane %v1468_v59, 7  ;;  %v11449_v59 = vld [vmem:[%s15720_s1 + $0x824] ss:$8 sps:$4 sm:$0xff]  }
 0x1ef   : > { %4560 = vmatpush1.bf16.msra.mxu0 %v11411_v44  ;;  %4536 = vmatprep.mubr.bf16.mxu0 %v9685_v18  ;;  %v11506_v44 = vld [vmem:[%s15722_s3 + $0x50] ss:$8 sps:$4 sm:$0xff]   ;;  %v11507_v18 = vld [vmem:[%s15722_s3 + $0x64] ss:$8 sps:$4 sm:$0xff]  }
 0x1f0   : > { %4561 = vmatprep.subr.bf16.mxu0 %v11416_v21  ;;  %8477 = vmatprep.subr.bf16.mxu1 %v11501_v0  ;;  %v1477_v21 = vrot.slane %v1475_v60, 6  ;;  %v11446_v0 = vld [vmem:[%s15720_s1 + $0x814] ss:$8 sps:$4 sm:$0xff]  }
 0x1f2   : > { %8478 = vmatpush1.bf16.msra.mxu1 %v11503_v6  ;;  %v1481_v19 = vor.u32 %v1480_v8, %v1477_v21  ;;  %v11455_v21 = vld [vmem:[%s15720_s1 + $0x844] ss:$8 sps:$4 sm:$0xff]  }
 0x1f3   : > { %4562 = vmatpush1.bf16.msra.mxu0 %v11414_v23  ;;  %8479 = vmatprep.subr.bf16.mxu1 %v11504_v57  ;;  %v1488_v23 = vshll.u32 %v13200_v15, 16 }
 0x1f4   : > { %4563 = vmatprep.subr.bf16.mxu0 %v11419_v38  ;;  %v11440_v38 = vld [vmem:[%s15720_s1 + $0x7f4] ss:$8 sps:$4 sm:$0xff]   ;;  %v1483_v48 = vrot.slane %v1481_v19, 4 }
 0x1f6   : > { %4537 = vmatmul.mubr.bf16.gmra.mrb[16].mxu0 %v9684_v20  ;;  %v1453_v20 = vrot.slane %v13279_v27, 4  ;;  %8480 = vmatpush1.bf16.msra.mxu1 %v11506_v44  ;;  %v1490_v27 = vrot.slane %v1488_v23, 7 }
 0x1f7   : > { %4564 = vmatpush1.bf16.msra.mxu0 %v11417_v11  ;;  %4579 = vmatprep.mubr.bf16.mxu0 %v9615_v24  ;;  %v1463_v11 = vrot.slane %v1461_v13, 4  ;;  %v1471_v24 = vor.u32 %v1470_v10, %v1467_v1  ;;  %v11452_v1 = vld [vmem:[%s15720_s1 + $0x834] ss:$8 sps:$4 sm:$0xff]  }
 0x1f8   : > { %4565 = vmatprep.subr.bf16.mxu0 %v11422_v31  ;;  %v11509_v31 = vld [vmem:[%s15722_s3 + $0x60] ss:$8 sps:$4 sm:$0xff]   ;;  %8481 = vmatprep.subr.bf16.mxu1 %v11507_v18  ;;  %v1462_v34 = vsel %vm13164_vm14, %v1453_v20, %v1461_v13 }
 0x1f9   : > { %v1472_v51 = vsel %vm13164_vm14, %v1463_v11, %v1471_v24  ;;  %v11458_v11 = vld [vmem:[%s15720_s1 + $0x854] ss:$8 sps:$4 sm:$0xff]  }
 0x1fa   : > { %8482 = vmatpush1.bf16.msra.mxu1 %v11509_v31  ;;  %v9633_v30 = vcombine.high %v1462_v34, %v1472_v51  ;;  %v9632_v26 = vcombine.low %v1462_v34, %v1472_v51  ;;  %v1553_v31 = vld [vmem:[#allocation2 + $0x20] sm:$0xc0]  ;;  %v1637_v34 = vrot.slane %v13085_v49, 7  ;;  %v11462_v49 = vld [vmem:[%s15720_s1 + $0x870] ss:$8 sps:$4 sm:$0xff]  }
 0x1fb   : > { %4566 = vmatpush1.bf16.msra.mxu0 %v11420_v41  ;;  %v1487_v41 = vrot.slane %v1485_v12, 6  ;;  %8483 = vmatprep.subr.bf16.mxu1 %v11510_v32  ;;  %v1554_v32 = vld [vmem:[#allocation2 + $0x28] sm:$0xc0] }
 0x1fc   : > { %4567 = vmatprep.subr.bf16.mxu0 %v11425_v29  ;;  %v11443_v29 = vld [vmem:[%s15720_s1 + $0x804] ss:$8 sps:$4 sm:$0xff]  }
 0x1fd   : > { %v1491_v61 = vor.u32 %v1490_v27, %v1487_v41  ;;  %v1774_v27 = vld [vmem:[#allocation4 + $0x2c0] sm:$0x77] }
 0x1fe   : > { %8484 = vmatpush1.bf16.msra.mxu1 %v11512_v53  ;;  %v11464_v53 = vld [vmem:[%s15720_s1 + $0x874] ss:$8 sps:$4 sm:$0xff]  }
 0x1ff   : > { %4568 = vmatpush1.bf16.msra.mxu0 %v11423_v5  ;;  %v1495_v5 = vshrl.u32 %v13055_v16, 16  ;;  %v1492_v6 = vsel %vm13164_vm14, %v1483_v48, %v1491_v61  ;;  %v1493_v10 = vrot.slane %v1491_v61, 4 }
 0x200   : > { %4569 = vmatprep.subr.bf16.mxu0 %v11428_v52  ;;  %v1498_v52 = vshll.u32 %v13055_v16, 16  ;;  %v1473_v16 = vrot.slane %v1471_v24, 4 }
 0x201   : > { %v1497_v50 = vrot.slane %v1495_v5, 6  ;;  %v11459_v5 = vld [vmem:[%s15720_s1 + $0x860] ss:$8 sps:$4 sm:$0xff]  }
 0x202   : > { %v1500_v3 = vrot.slane %v1498_v52, 7  ;;  %v1482_v4 = vsel %vm13164_vm14, %v1473_v16, %v1481_v19  ;;  %v11461_v19 = vld [vmem:[%s15720_s1 + $0x864] ss:$8 sps:$4 sm:$0xff]  }
 0x203   : > { %4570 = vmatpush1.bf16.msra.mxu0 %v11426_v54  ;;  %v11513_v54 = vld [vmem:[%s15722_s3 + $0x84] ss:$8 sps:$4 sm:$0xff]   ;;  %v9651_v13 = vcombine.high %v1482_v4, %v1492_v6  ;;  %v9650_v23 = vcombine.low %v1482_v4, %v1492_v6  ;;  %v11477_v4 = vld [vmem:[%s15720_s1 + $0x8c0] ss:$8 sps:$4 sm:$0xff]   ;;  %v11480_v6 = vld [vmem:[%s15720_s1 + $0x8d0] ss:$8 sps:$4 sm:$0xff]  }
 0x204   : > { %4571 = vmatprep.subr.bf16.mxu0 %v11431_v56  ;;  %v11441_v56 = vld [vmem:[%s15720_s1 + $0x800] ss:$8 sps:$4 sm:$0xff]   ;;  %8485 = vmatprep.subr.bf16.mxu1 %v11513_v54  ;;  %v1501_v57 = vor.u32 %v1500_v3, %v1497_v50  ;;  %v1639_v54 = vrot.slane %v1637_v34, 4  ;;  %v11468_v50 = vld [vmem:[%s15720_s1 + $0x890] ss:$8 sps:$4 sm:$0xff]  }
 0x205   : > { %8486 = vmatpush1.bf16.msra.mxu1 %v11515_v47  ;;  %v11473_v3 = vld [vmem:[%s15720_s1 + $0x8a4] ss:$8 sps:$4 sm:$0xff]   ;;  %v11474_v47 = vld [vmem:[%s15720_s1 + $0x8b0] ss:$8 sps:$4 sm:$0xff]  }
 0x206   : > { %v1503_v44 = vrot.slane %v1501_v57, 4  ;;  %v1502_v8 = vsel %vm13164_vm14, %v1493_v10, %v1501_v57  ;;  %v11485_v57 = vld [vmem:[%s15720_s1 + $0x8e4] ss:$8 sps:$4 sm:$0xff]   ;;  %v11486_v10 = vld [vmem:[%s15720_s1 + $0x8f0] ss:$8 sps:$4 sm:$0xff]  }
 0x207   : > { %4572 = vmatpush1.bf16.msra.mxu0 %v11429_v43  ;;  %v1505_v43 = vshrl.u32 %v13222_v28, 16 }
 0x208   : > { %4573 = vmatprep.subr.bf16.mxu0 %v11434_v37  ;;  %v1508_v37 = vshll.u32 %v13222_v28, 16 }
 0x20a   : > { %v1510_v60 = vrot.slane %v1508_v37, 7  ;;  %v11476_v37 = vld [vmem:[%s15720_s1 + $0x8b4] ss:$8 sps:$4 sm:$0xff]  }
 0x20b   : > { %4574 = vmatpush1.bf16.msra.mxu0 %v11432_v58  ;;  %v1507_v58 = vrot.slane %v1505_v43, 6  ;;  %v11471_v43 = vld [vmem:[%s15720_s1 + $0x8a0] ss:$8 sps:$4 sm:$0xff]  }
 0x20c   : > { %4575 = vmatprep.subr.bf16.mxu0 %v11437_v62  ;;  %v11447_v62 = vld [vmem:[%s15720_s1 + $0x820] ss:$8 sps:$4 sm:$0xff]  }
 0x20d   : > { %v1511_v18 = vor.u32 %v1510_v60, %v1507_v58  ;;  %v1643_v58 = vrot.slane %v13162_v36, 7  ;;  %v11483_v60 = vld [vmem:[%s15720_s1 + $0x8e0] ss:$8 sps:$4 sm:$0xff]  }
 0x20f   : > { %4576 = vmatpush1.bf16.msra.mxu0 %v11435_v9  ;;  %v11450_v9 = vld [vmem:[%s15720_s1 + $0x830] ss:$8 sps:$4 sm:$0xff]   ;;  %v1512_v12 = vsel %vm13164_vm14, %v1503_v44, %v1511_v18  ;;  %v1513_v24 = vrot.slane %v1511_v18, 4  ;;  %v1649_v18 = vrot.slane %v13188_v45, 7 }
 0x210   : > { %4577 = vmatprep.subr.bf16.mxu0 %v11440_v38  ;;  %v11453_v38 = vld [vmem:[%s15720_s1 + $0x840] ss:$8 sps:$4 sm:$0xff]   ;;  %v9669_v20 = vcombine.high %v1502_v8, %v1512_v12  ;;  %v9668_v51 = vcombine.low %v1502_v8, %v1512_v12 }
 0x211   : > { %v1522_v41 = vsel %vm13164_vm14, %v1513_v24, %v13153_v7  ;;  %v1640_v7 = vrot.slane %v13099_v46, 7  ;;  %v11465_v46 = vld [vmem:[%s15720_s1 + $0x880] ss:$8 sps:$4 sm:$0xff]  }
 0x212   : > { %v9687_v52 = vcombine.high %v1522_v41, %v1774_v27  ;;  %v9686_v48 = vcombine.low %v1522_v41, %v1774_v27  ;;  %v1658_v41 = vrot.slane %v13222_v28, 7 }
 0x213   : > { %4578 = vmatpush1.bf16.msra.mxu0 %v11438_v35  ;;  %v11456_v35 = vld [vmem:[%s15720_s1 + $0x850] ss:$8 sps:$4 sm:$0xff]   ;;  %v1641_v16 = vsel %vm13267_vm3, %v1639_v54, %v1640_v7  ;;  %v11516_v54 = vld [vmem:[%s15722_s3 + $0x94] ss:$8 sps:$4 sm:$0xff]  }
 0x214   : > { %4630 = vmatprep.subr.bf16.mxu0 %v11443_v29  ;;  %v10547_v29 = vpack.c.bf16 %v1554_v32, %v1553_v31  ;;  %8487 = vmatprep.subr.bf16.mxu1 %v11516_v54 }
 0x216   : > { %4580 = vmatmul.mubr.bf16.vlgmr.msra.gmra.mrb[0].mxu0 %v9614_v55  ;;  %v9599_v55 = vrot.slane %v10547_v29, 11 }
 0x217   : > { %4631 = vmatpush1.bf16.msra.mxu0 %v11441_v56  ;;  %4589 = vmatprep.mubr.bf16.mxu0 %v9633_v30  ;;  %v11467_v56 = vld [vmem:[%s15720_s1 + $0x884] ss:$8 sps:$4 sm:$0xff]  }
 0x218   : > { %4632 = vmatprep.subr.bf16.mxu0 %v11446_v0  ;;  %v1638_v30 = vsel %vm13267_vm3, %v9599_v55, %v1637_v34  ;;  %v11470_v0 = vld [vmem:[%s15720_s1 + $0x894] ss:$8 sps:$4 sm:$0xff]  }
 0x219   : > { %v9617_v61 = vcombine.high %v1638_v30, %v1641_v16  ;;  %v9616_v8 = vcombine.low %v1638_v30, %v1641_v16  ;;  %v11525_v30 = vld [vmem:[%s15722_s3 + $0xc4] ss:$8 sps:$4 sm:$0xff]   ;;  %v11527_v16 = vld [vmem:[%s15722_s3 + $0xc0] ss:$8 sps:$4 sm:$0xff]  }
 0x21b   : > { %4633 = vmatpush1.bf16.msra.mxu0 %v11444_v42  ;;  %v11479_v42 = vld [vmem:[%s15720_s1 + $0x8c4] ss:$8 sps:$4 sm:$0xff]  }
 0x21c   : > { %4634 = vmatprep.subr.bf16.mxu0 %v11449_v59  ;;  %v11482_v59 = vld [vmem:[%s15720_s1 + $0x8d4] ss:$8 sps:$4 sm:$0xff]  }
 0x21e   : > { %4590 = vmatmul.mubr.bf16.gmra.mrb[4].mxu0 %v9632_v26  ;;  %v11488_v26 = vld [vmem:[%s15720_s1 + $0x8f4] ss:$8 sps:$4 sm:$0xff]  }
 0x21f   : > { %4635 = vmatpush1.bf16.msra.mxu0 %v11447_v62  ;;  %4599 = vmatprep.mubr.bf16.mxu0 %v9651_v13  ;;  %v1642_v62 = vrot.slane %v1640_v7, 4  ;;  %v1645_v13 = vrot.slane %v1643_v58, 4  ;;  %v11518_v7 = vld [vmem:[%s15722_s3 + $0x90] ss:$8 sps:$4 sm:$0xff]  }
 0x220   : > { %4636 = vmatprep.subr.bf16.mxu0 %v11452_v1  ;;  %v1646_v1 = vrot.slane %v13176_v22, 7  ;;  %8488 = vmatpush1.bf16.msra.mxu1 %v11518_v7 }
 0x221   : > { %v1644_v36 = vsel %vm13267_vm3, %v1642_v62, %v1643_v58  ;;  %8489 = vmatprep.subr.bf16.mxu1 %v11519_v33  ;;  %v4962_v62 = vld [vmem:[#allocation3] sm:$0xfe] }
 0x222   : > { %v1647_v44 = vsel %vm13267_vm3, %v1645_v13, %v1646_v1  ;;  %v1648_v22 = vrot.slane %v1646_v1, 4  ;;  %v4963_v13 = vld [vmem:[#allocation3 + $0x8] sm:$0xfe] }
 0x223   : > { %4637 = vmatpush1.bf16.msra.mxu0 %v11450_v9  ;;  %v1567_v9 = vld [vmem:[#allocation2 + $0x90] sm:$0xff]  ;;  %v9635_v12 = vcombine.high %v1644_v36, %v1647_v44  ;;  %v9634_v45 = vcombine.low %v1644_v36, %v1647_v44 }
 0x224   : > { %4638 = vmatprep.subr.bf16.mxu0 %v11455_v21  ;;  %v1568_v21 = vld [vmem:[#allocation2 + $0x98] sm:$0xff] }
 0x226   : > { %4600 = vmatmul.mubr.bf16.gmra.mrb[8].mxu0 %v9650_v23  ;;  %v1651_v23 = vrot.slane %v1649_v18, 4 }
 0x227   : > { %4639 = vmatpush1.bf16.msra.mxu0 %v11453_v38  ;;  %4609 = vmatprep.mubr.bf16.mxu0 %v9669_v20  ;;  %v1652_v38 = vrot.slane %v13200_v15, 7  ;;  %v10554_v20 = vpack.c.bf16 %v1568_v21, %v1567_v9 }
 0x228   : > { %4640 = vmatprep.subr.bf16.mxu0 %v11458_v11  ;;  %v1650_v11 = vsel %vm13267_vm3, %v1648_v22, %v1649_v18 }
 0x229   : > { %v1653_v24 = vsel %vm13267_vm3, %v1651_v23, %v1652_v38  ;;  %v1655_v31 = vrot.slane %v10554_v20, 7 }
 0x22a   : > { %v9653_v32 = vcombine.high %v1650_v11, %v1653_v24  ;;  %v9652_v29 = vcombine.low %v1650_v11, %v1653_v24 }
 0x22b   : > { %4641 = vmatpush1.bf16.msra.mxu0 %v11456_v35  ;;  %v1654_v35 = vrot.slane %v1652_v38, 4 }
 0x22c   : > { %4642 = vmatprep.subr.bf16.mxu0 %v11461_v19  ;;  %v1657_v19 = vrot.slane %v1655_v31, 4 }
 0x22d   : > { %v1656_v15 = vsel %vm13267_vm3, %v1654_v35, %v1655_v31 }
 0x22e   : > { %4610 = vmatmul.mubr.bf16.gmra.mrb[12].mxu0 %v9668_v51  ;;  %v1659_v27 = vsel %vm13267_vm3, %v1657_v19, %v1658_v41  ;;  %v1660_v51 = vrot.slane %v1658_v41, 4 }
 0x22f   : > { %4643 = vmatpush1.bf16.msra.mxu0 %v11459_v5  ;;  %4619 = vmatprep.mubr.bf16.mxu0 %v9687_v52  ;;  %v9671_v34 = vcombine.high %v1656_v15, %v1659_v27  ;;  %v1775_v52 = vld [vmem:[#allocation4 + $0x2c8] sm:$0x77]  ;;  %v9670_v28 = vcombine.low %v1656_v15, %v1659_v27 }
 0x230   : > { %4644 = vmatprep.subr.bf16.mxu0 %v11464_v53  ;;  %v1662_v5 = vsel %vm13267_vm3, %v1660_v51, %v1661_v2  ;;  %v11521_v2 = vld [vmem:[%s15722_s3 + $0xa0] ss:$8 sps:$4 sm:$0xff]  }
 0x231   : > { %v9689_v53 = vcombine.high %v1662_v5, %v1775_v52  ;;  %v9688_v55 = vcombine.low %v1662_v5, %v1775_v52  ;;  %8490 = vmatpush1.bf16.msra.mxu1 %v11521_v2 }
 0x233   : > { %4645 = vmatpush1.bf16.msra.mxu0 %v11462_v49  ;;  %v11522_v49 = vld [vmem:[%s15722_s3 + $0xb4] ss:$8 sps:$4 sm:$0xff]  }
 0x234   : > { %4646 = vmatprep.subr.bf16.mxu0 %v11467_v56  ;;  %v11524_v56 = vld [vmem:[%s15722_s3 + $0xb0] ss:$8 sps:$4 sm:$0xff]   ;;  %8491 = vmatprep.subr.bf16.mxu1 %v11522_v49 }
 0x235   : > { %8492 = vmatpush1.bf16.msra.mxu1 %v11524_v56 }
 0x236   : > { %4620 = vmatmul.mubr.bf16.gmra.mrb[16].mxu0 %v9686_v48  ;;  %8493 = vmatprep.subr.bf16.mxu1 %v11525_v30  ;;  %v11528_v48 = vld [vmem:[%s15722_s3 + $0xd4] ss:$8 sps:$4 sm:$0xff]  }
 0x237   : > { %4647 = vmatpush1.bf16.msra.mxu0 %v11465_v46  ;;  %4662 = vmatprep.mubr.bf16.mxu0 %v9617_v61  ;;  %v11530_v46 = vld [vmem:[%s15722_s3 + $0xd0] ss:$8 sps:$4 sm:$0xff]   ;;  %v11531_v61 = vld [vmem:[%s15722_s3 + $0xe4] ss:$8 sps:$4 sm:$0xff]  }
 0x238   : > { %4648 = vmatprep.subr.bf16.mxu0 %v11470_v0  ;;  %v11533_v0 = vld [vmem:[%s15722_s3 + $0xe0] ss:$8 sps:$4 sm:$0xff]  }
 0x239   : > { %8494 = vmatpush1.bf16.msra.mxu1 %v11527_v16 }
 0x23a   : > { %8495 = vmatprep.subr.bf16.mxu1 %v11528_v48 }
 0x23b   : > { %4649 = vmatpush1.bf16.msra.mxu0 %v11468_v50  ;;  %v11534_v50 = vld [vmem:[%s15722_s3 + $0xf4] ss:$8 sps:$4 sm:$0xff]  }
 0x23c   : > { %4650 = vmatprep.subr.bf16.mxu0 %v11473_v3  ;;  %v11536_v3 = vld [vmem:[%s15722_s3 + $0xf0] ss:$8 sps:$4 sm:$0xff]  }
 0x23d   : > { %8496 = vmatpush1.bf16.msra.mxu1 %v11530_v46 }
 0x23e   : > { %8497 = vmatprep.subr.bf16.mxu1 %v11531_v61 }
 0x23f   : > { %4651 = vmatpush1.bf16.msra.mxu0 %v11471_v43  ;;  %v11539_v43 = vld [vmem:[%s15722_s3 + $0x104] ss:$8 sps:$4 sm:$0xff]  }
 0x240   : > { %4652 = vmatprep.subr.bf16.mxu0 %v11476_v37  ;;  %v2066_v37 = vlaneseq }
 0x241   : > { %8498 = vmatpush1.bf16.msra.mxu1 %v11533_v0 }
 0x242   : > { %8499 = vmatprep.subr.bf16.mxu1 %v11534_v50 }
 0x243   : > { %4653 = vmatpush1.bf16.msra.mxu0 %v11474_v47  ;;  %v13595_v47 = vshrl.u32 %v2066_v37, 7 }
 0x244   : > { %4654 = vmatprep.subr.bf16.mxu0 %v11479_v42 }
 0x245   : > { %8500 = vmatpush1.bf16.msra.mxu1 %v11536_v3  ;;  %15797 = vst [vmem:[#allocation12_spill] sm:$0xff] %v13595_v47  ;;  %v15726_v42 = vsub.s32 0, %v13595_v47 }
 0x246   : > { %8552 = vmatprep.subr.bf16.mxu1 %v11539_v43 }
 0x247   : > { %4655 = vmatpush1.bf16.msra.mxu0 %v11477_v4  ;;  %v2064_v4 = vld [vmem:[%s15721_s2] sm:$0x3] }
 0x248   : > { %4656 = vmatprep.subr.bf16.mxu0 %v11482_v59  ;;  %v15725_v59 = vsub.s32 1, %v13595_v47 }
 0x24b   : > { %4657 = vmatpush1.bf16.msra.mxu0 %v11480_v6  ;;  %v13604_v6 = vrot.slane %v2064_v4, %v15726_v42 }
 0x24c   : > { %4658 = vmatprep.subr.bf16.mxu0 %v11485_v57  ;;  %v13608_v57 = vrot.slane %v2064_v4, %v15725_v59 }
 0x24f   : > { %4659 = vmatpush1.bf16.msra.mxu0 %v11483_v60 }
 0x250   : > { %4660 = vmatprep.subr.bf16.mxu0 %v11488_v26 }
 0x253   : > { %4661 = vmatpush1.bf16.msra.mxu0 %v11486_v10 }
 0x256   : > { %4663 = vmatmul.mubr.bf16.vlgmr.msra.gmra.mrb[0].mxu0 %v9616_v8  ;;  %v10568_v8 = vpack.c.bf16 %v4963_v13, %v4962_v62 }
 0x257   : > { %4672 = vmatprep.mubr.bf16.mxu0 %v9635_v12 }
 0x258   : > { %v5033_v31 = vshrl.u32 %v10568_v8, 16 }
 0x25a   : > { %v5035_v51 = vrot.slane %v5033_v31, 4 }
 0x25e   : > { %4673 = vmatmul.mubr.bf16.gmra.mrb[4].mxu0 %v9634_v45  ;;  %v5036_v45 = vshll.u32 %v10568_v8, 16 }
 0x25f   : > { %4682 = vmatprep.mubr.bf16.mxu0 %v9653_v32 }
 0x260   : > { %v5038_v5 = vrot.slane %v5036_v45, 5 }
 0x262   : > { %v5039_v61 = vor.u32 %v5038_v5, %v5035_v51 }
 0x264   : > { %v13640_v8 = vrot.slane %v5039_v61, 4 }
 0x266   : > { %4683 = vmatmul.mubr.bf16.gmra.mrb[8].mxu0 %v9652_v29 }
 0x267   : > { %4692 = vmatprep.mubr.bf16.mxu0 %v9671_v34 }
 0x26e   : > { %4693 = vmatmul.mubr.bf16.gmra.mrb[12].mxu0 %v9670_v28 }
 0x26f   : > { %4702 = vmatprep.mubr.bf16.mxu0 %v9689_v53  ;;  %v5151_v53 = vld [vmem:[#allocation3] sm:$0xfc] }
 0x276   : > { %4703 = vmatmul.mubr.bf16.gmra.mrb[16].mxu0 %v9688_v55  ;;  %v5152_v55 = vld [vmem:[#allocation3 + $0x8] sm:$0xfc] }
 0x277   : > { %v10578_v0 = vpack.c.bf16 %v5152_v55, %v5151_v53 }
 0x329   : > { %v4664_v58 = vpop.f32.mrb[0].mxu0 }
 0x32a   : > { %v10655_v60 = vadd.f32 %v4664_v58, %v13604_v6  ;;  %v4666_v26 = vpop.f32.mrb[1].mxu0 }
 0x32b   : > { %v10656_v1 = vadd.f32 %v4666_v26, %v13608_v57  ;;  %v4668_v10 = vpop.f32.mrb[2].mxu0 }
 0x32c   : > { %v4713_v36 = vmax.f32 %v10655_v60, 0.0  ;;  %v10657_v44 = vadd.f32 %v4668_v10, %v13604_v6  ;;  %v4670_v18 = vpop.f32.mrb[3].mxu0 }
 0x32d   : > { %v4714_v9 = vmax.f32 %v10656_v1, 0.0  ;;  %v10658_v21 = vadd.f32 %v4670_v18, %v13608_v57 }
 0x32e   : > { %v4761_v12 = vrot.slane %v4713_v36, 5  ;;  %v4715_v22 = vmax.f32 %v10657_v44, 0.0 }
 0x32f   : > { %v4762_v23 = vrot.slane %v4714_v9, 5  ;;  %v4716_v38 = vmax.f32 %v10658_v21, 0.0 }
 0x330   : > { %4765 = vst [vmem:[#allocation3 + $0x10] sm:$0xf8] %v4761_v12  ;;  %4767 = vst [vmem:[#allocation3 + $0x20] sm:$0x7] %v4761_v12  ;;  %v4774_v20 = vrot.slane %v4715_v22, 5  ;;  %v13642_v12 = vrot.slane %v10578_v0, 9 }
 0x331   : > { %4766 = vst [vmem:[#allocation3 + $0x18] sm:$0xf8] %v4762_v23  ;;  %4768 = vst [vmem:[#allocation3 + $0x28] sm:$0x7] %v4762_v23  ;;  %v4775_v11 = vrot.slane %v4716_v38, 5  ;;  %v4674_v24 = vpop.f32.mrb[4].mxu0 }
 0x332   : > { %4784 = vst [vmem:[#allocation3 + $0x20] sm:$0xe0] %v4774_v20  ;;  %v10659_v32 = vadd.f32 %v4674_v24, %v13604_v6  ;;  %v4676_v35 = vpop.f32.mrb[5].mxu0 }
 0x333   : > { %4785 = vst [vmem:[#allocation3 + $0x28] sm:$0xe0] %v4775_v11  ;;  %v10660_v19 = vadd.f32 %v4676_v35, %v13608_v57  ;;  %v4678_v41 = vpop.f32.mrb[6].mxu0 }
 0x334   : > { %v4717_v15 = vmax.f32 %v10659_v32, 0.0  ;;  %v10661_v27 = vadd.f32 %v4678_v41, %v13604_v6  ;;  %v4680_v29 = vpop.f32.mrb[7].mxu0 }
 0x335   : > { %v4718_v34 = vmax.f32 %v10660_v19, 0.0  ;;  %v10662_v9 = vadd.f32 %v4680_v29, %v13608_v57 }
 0x336   : > { %v4776_v52 = vrot.slane %v4717_v15, 5  ;;  %v4719_v28 = vmax.f32 %v10661_v27, 0.0 }
 0x337   : > { %v4874_v54 = vld [vmem:[#allocation3 + $0x10] sm:$0xff]  ;;  %v13617_v33 = vrot.slane %v4718_v34, 5 }
 0x338   : > { %v5389_v7 = vld [vmem:[#allocation3 + $0x10] sm:$0xf8]  ;;  %v4875_v2 = vld [vmem:[#allocation3 + $0x18] sm:$0xff]  ;;  %v4777_v49 = vsel %vm703_vm0, %v4774_v20, %v4776_v52  ;;  %4798 = vst [vmem:[#allocation3 + $0x30] sm:$0x80] %v4776_v52  ;;  %v13620_v56 = vrot.slane %v4719_v28, 5 }
 0x339   : > { %v13622_v30 = vpack.c.bf16 %v4875_v2, %v4874_v54  ;;  %v5390_v16 = vld [vmem:[#allocation3 + $0x18] sm:$0xf8]  ;;  %v4876_v48 = vld [vmem:[#allocation3 + $0x20] sm:$0xff]  ;;  %4786 = vst [vmem:[#allocation3 + $0x30] sm:$0x1f] %v4777_v49  ;;  %v4779_v46 = vsel %vm703_vm0, %v4775_v11, %v13617_v33  ;;  %v13631_v62 = vpop.f32.mrb[8].mxu0 }
 0x33a   : > { %4799 = vst [vmem:[#allocation3 + $0x38] sm:$0x80] %v13617_v33  ;;  %v5270_v50 = vld [vmem:[#allocation3 + $0x10] sm:$0xfc]  ;;  %v5271_v3 = vld [vmem:[#allocation3 + $0x18] sm:$0xfc]  ;;  %v10598_v43 = vpack.c.bf16 %v5390_v16, %v5389_v7  ;;  %v4791_v37 = vsel %vm703_vm0, %v4776_v52, %v13620_v56 }
 0x33b   : > { %4787 = vst [vmem:[#allocation3 + $0x38] sm:$0x1f] %v4779_v46  ;;  %v5592_v4 = vld [vmem:[#allocation3 + $0x10] sm:$0xf0]  ;;  %v5042_v58 = vshll.u32 %v13622_v30, 16  ;;  %v5046_v60 = vshrl.u32 %v13622_v30, 16  ;;  %v10588_v18 = vpack.c.bf16 %v5271_v3, %v5270_v50 }
 0x33c   : > { %v4877_v26 = vld [vmem:[#allocation3 + $0x28] sm:$0xff]  ;;  %4800 = vst [vmem:[#allocation3 + $0x40] sm:$0x7f] %v4791_v37  ;;  %v5469_v13 = vshrl.u32 %v10598_v43, 16  ;;  %v5472_v1 = vshll.u32 %v10598_v43, 16  ;;  %v13635_v44 = vpop.f32.mrb[9].mxu0 }
 0x33d   : > { %v5593_v10 = vld [vmem:[#allocation3 + $0x18] sm:$0xf0]  ;;  %v13633_v36 = vpack.c.bf16 %v4877_v26, %v4876_v48  ;;  %v13638_v21 = vpop.f32.mrb[10].mxu0  ;;  %v13644_v22 = vrot.slane %v5042_v58, 5  ;;  %v5048_v23 = vrot.slane %v5046_v60, 4  ;;  %v15728_v24 = vrot.slane %v13622_v30, 5 }
 0x33e   : > { %v5852_v38 = vld [vmem:[#allocation3 + $0x20] sm:$0xe0]  ;;  %v5471_v31 = vrot.slane %v5469_v13, 5  ;;  %v10609_v45 = vpack.c.bf16 %v5593_v10, %v5592_v4  ;;  %v5853_v35 = vld [vmem:[#allocation3 + $0x28] sm:$0xe0]  ;;  %v4690_v19 = vpop.f32.mrb[11].mxu0 }
 0x33f   : > { %15798 = vst [vmem:[#allocation13_spill] sm:$0xff] %v13633_v36  ;;  %v5052_v20 = vshll.u32 %v13633_v36, 16  ;;  %v5056_v11 = vshrl.u32 %v13633_v36, 16  ;;  %4954 = vst [vmem:[#allocation4 + $0x90] sm:$0xff] %v13633_v36  ;;  %v5722_v32 = vld [vmem:[#allocation3 + $0x20] sm:$0xf0]  ;;  %v5049_v55 = vor.u32 %v5048_v23, %v13644_v22  ;;  %v10631_v61 = vpack.c.bf16 %v5853_v35, %v5852_v38 }
 0x340   : > { %v5474_v41 = vrot.slane %v5472_v1, 6  ;;  %v6059_v15 = vld [vmem:[#allocation3 + $0x20] sm:$0xc0]  ;;  %v4878_v34 = vld [vmem:[#allocation3 + $0x30] sm:$0xff]  ;;  %v13652_v51 = vrot.slane %v10588_v18, 9  ;;  %v4720_v28 = vmax.f32 %v10662_v9, 0.0  ;;  %v10666_v59 = vadd.f32 %v4690_v19, %v13608_v57 }
 0x341   : > { %v13650_v27 = vrot.slane %v5052_v20, 5  ;;  %v5058_v29 = vrot.slane %v5056_v11, 4  ;;  %v5723_v5 = vld [vmem:[#allocation3 + $0x28] sm:$0xf0]  ;;  %v4694_v53 = vpop.f32.mrb[12].mxu0  ;;  %v13656_v54 = vrot.slane %v13633_v36, 5 }
 0x342   : > { %v4879_v52 = vld [vmem:[#allocation3 + $0x38] sm:$0xff]  ;;  %v5480_v7 = vrot.slane %v5056_v11, 5  ;;  %v5483_v2 = vrot.slane %v5052_v20, 6  ;;  %v6060_v49 = vld [vmem:[#allocation3 + $0x28] sm:$0xc0]  ;;  %v4696_v16 = vpop.f32.mrb[13].mxu0  ;;  %v5475_v3 = vor.u32 %v5474_v41, %v5471_v31  ;;  %v10620_v37 = vpack.c.bf16 %v5723_v5, %v5722_v32 }
 0x343   : > { %v13660_v48 = vrot.slane %v15728_v24, 4  ;;  %v13662_v46 = vrot.slane %v10609_v45, 10  ;;  %v13664_v0 = vpack.c.bf16 %v4879_v52, %v4878_v34  ;;  %v4698_v50 = vpop.f32.mrb[14].mxu0  ;;  %v5059_v43 = vor.u32 %v5058_v29, %v13650_v27  ;;  %v13721_v19 = vld [vmem:[#allocation3 + $0x40] sm:$0xff] }
 0x344   : > { %v4700_v4 = vpop.f32.mrb[15].mxu0  ;;  %v15727_v58 = vrot.slane %v13633_v36, 6  ;;  %v5932_v60 = vshrl.u32 %v10631_v61, 16  ;;  %v5935_v26 = vshll.u32 %v10631_v61, 16  ;;  %v10642_v13 = vpack.c.bf16 %v6060_v49, %v6059_v15 }
 0x345   : > { %15799 = vst [vmem:[#allocation14_spill] sm:$0xff] %v13662_v46  ;;  %4955 = vst [vmem:[#allocation4 + $0xd8] sm:$0xff] %v13664_v0  ;;  %v13669_v1 = vrot.slane %v5049_v55, 4  ;;  %v13672_v18 = vor.u32 %v5483_v2, %v5480_v7  ;;  %v13675_v9 = vshll.u32 %v13664_v0, 16  ;;  %v13682_v20 = vshrl.u32 %v13664_v0, 16  ;;  %v6189_v7 = vld [vmem:[#allocation4] sm:$0xff] }
 0x346   : > { %v13677_v23 = vrot.slane %v5932_v60, 6  ;;  %v13679_v38 = vrot.slane %v5935_v26, 7  ;;  %v13684_v11 = vrot.slane %v5475_v3, 4  ;;  %v4792_v31 = vrot.slane %v4720_v28, 5 }
 0x347   : > { %15800 = vst [vmem:[#allocation15_spill] sm:$0xff] %v13672_v18  ;;  %v13686_v45 = vrot.slane %v5059_v43, 4  ;;  %v13690_v32 = vrot.slane %v15727_v58, 4  ;;  %v13692_v35 = vrot.slane %v10620_v37, 10  ;;  %v13694_v41 = vrot.slane %v10642_v13, 11 }
 0x348   : > { %15801 = vst [vmem:[#allocation16_spill] sm:$0xff] %v13684_v11  ;;  %v15730_v5 = vrot.slane %v13664_v0, 5  ;;  %v13704_v2 = vrot.slane %v13664_v0, 6  ;;  %v4793_v3 = vsel %vm703_vm0, %v13617_v33, %v4792_v31  ;;  %v10663_v37 = vadd.f32 %v13631_v62, %v13604_v6 }
 0x349   : > { %15802 = vst [vmem:[#allocation17_spill] sm:$0xff] %v13690_v32  ;;  %15803 = vst [vmem:[#allocation18_spill] sm:$0xff] %v13692_v35  ;;  %v4704_v15 = vpop.f32.mrb[16].mxu0  ;;  %v10664_v60 = vadd.f32 %v13635_v44, %v13608_v57  ;;  %v10665_v26 = vadd.f32 %v13638_v21, %v13604_v6  ;;  %v10667_v42 = vadd.f32 %v4694_v53, %v13604_v6  ;;  %v4724_v62 = vmax.f32 %v10666_v59, 0.0 }
 0x34a   : > { %15804 = vst [vmem:[#allocation19_spill] sm:$0xff] %v13694_v41  ;;  %v4706_v52 = vpop.f32.mrb[17].mxu0  ;;  %15805 = vst [vmem:[#allocation20_spill] sm:$0xff] %v13704_v2  ;;  %v10668_v58 = vadd.f32 %v4696_v16, %v13608_v57  ;;  %v4721_v33 = vmax.f32 %v10663_v37, 0.0  ;;  %v10669_v10 = vadd.f32 %v4698_v50, %v13604_v6  ;;  %v10670_v44 = vadd.f32 %v4700_v4, %v13608_v57 }
 0x34b   : > { %v4708_v49 = vpop.f32.mrb[18].mxu0  ;;  %4801 = vst [vmem:[#allocation3 + $0x48] sm:$0x7f] %v4793_v3  ;;  %v4722_v29 = vmax.f32 %v10664_v60, 0.0  ;;  %v4723_v3 = vmax.f32 %v10665_v26, 0.0  ;;  %v4725_v24 = vmax.f32 %v10667_v42, 0.0  ;;  %v10078_v50 = vcombine.low %v6189_v7, %v13622_v30 }
 0x34c   : > { %v4710_v43 = vpop.f32.mrb[19].mxu0  ;;  %v4726_v61 = vmax.f32 %v10668_v58, 0.0  ;;  %v4804_v21 = vrot.slane %v4721_v33, 5  ;;  %v4727_v34 = vmax.f32 %v10669_v10, 0.0  ;;  %v4819_v53 = vrot.slane %v4724_v62, 5 }
 0x34d   : > { %v4806_v55 = vrot.slane %v4722_v29, 5  ;;  %v4818_v13 = vrot.slane %v4723_v3, 5  ;;  %v4830_v28 = vrot.slane %v4725_v24, 5  ;;  %v4728_v37 = vmax.f32 %v10670_v44, 0.0  ;;  %v11537_v58 = vld [vmem:[%s15722_s3 + $0x100] ss:$8 sps:$4 sm:$0xff]  }
 0x34e   : > { %v4831_v16 = vrot.slane %v4726_v61, 5  ;;  %v4805_v60 = vsel %vm703_vm0, %v13620_v56, %v4804_v21  ;;  %4814 = vst [vmem:[#allocation3 + $0x60] sm:$0x1] %v4804_v21  ;;  %v13726_v59 = vrot.slane %v4727_v34, 5  ;;  %4823 = vst [vmem:[#allocation3 + $0x68] sm:$0xf8] %v4819_v53  ;;  %v10079_v56 = vcombine.high %v6189_v7, %v13622_v30 }
 0x34f   : > { %v4807_v42 = vsel %vm703_vm0, %v4792_v31, %v4806_v55  ;;  %4815 = vst [vmem:[#allocation3 + $0x68] sm:$0x1] %v4806_v55  ;;  %4822 = vst [vmem:[#allocation3 + $0x60] sm:$0xf8] %v4818_v13  ;;  %v13731_v24 = vrot.slane %v4728_v37, 5  ;;  %v10671_v10 = vadd.f32 %v4704_v15, %v13604_v6  ;;  %v13739_v31 = vadd.f32 %v4706_v52, %v13608_v57 }
 0x350   : > { %4824 = vst [vmem:[#allocation3 + $0x70] sm:$0x7] %v4818_v13  ;;  %4812 = vst [vmem:[#allocation3 + $0x50] sm:$0xfe] %v4805_v60  ;;  %v11546_v29 = vld [vmem:[#allocation4 + $0x94] ss:$72 sps:$4 sm:$0xff]   ;;  %v4833_v55 = vsel %vm703_vm0, %v4830_v28, %v13726_v59  ;;  %v13752_v61 = vadd.f32 %v4708_v49, %v13604_v6  ;;  %v13755_v15 = vadd.f32 %v4710_v43, %v13608_v57  ;;  %8501 = vmatprep.mubr.bf16.mxu1 %v10079_v56 }
 0x351   : > { %4813 = vst [vmem:[#allocation3 + $0x58] sm:$0xfe] %v4807_v42  ;;  %4825 = vst [vmem:[#allocation3 + $0x78] sm:$0x7] %v4819_v53  ;;  %v11542_v7 = vld [vmem:[%s15722_s3 + $0x114] ss:$8 sps:$4 sm:$0xff]   ;;  %v13768_v6 = vsel %vm12309_vm5, %v13640_v8, %v13644_v22  ;;  %v15806_v57 = vor.u32 %v13679_v38, %v13677_v23  ;;  %8502 = vmatmul.mubr.bf16.vlgmr.msra.gmra.mrb[0].mxu1 %v10078_v50 }
 0x352   : > { %v13729_v4 = vld [vmem:[#allocation3 + $0x48] sm:$0xff]  ;;  %4840 = vst [vmem:[#allocation3 + $0x70] sm:$0xe0] %v4830_v28  ;;  %4841 = vst [vmem:[#allocation3 + $0x78] sm:$0xe0] %v4831_v16  ;;  %v13759_v52 = vrot.slane %v15730_v5, 4  ;;  %v4835_v28 = vsel %vm703_vm0, %v4831_v16, %v13731_v24  ;;  %8553 = vmatpush1.bf16.msra.mxu1 %v11537_v58  ;;  %8511 = vmatprep.mubr.bf16.mxu1 %v11546_v29 }
 0x353   : > { %v13743_v34 = vpack.c.bf16 %v13729_v4, %v13721_v19  ;;  %4854 = vst [vmem:[#allocation3 + $0x80] sm:$0x80] %v13726_v59  ;;  %4842 = vst [vmem:[#allocation3 + $0x80] sm:$0x1f] %v4833_v55  ;;  %v13773_v49 = vrot.slane %v15806_v57, 4  ;;  %v15808_v43 = vrot.slane %v13675_v9, 5  ;;  %8554 = vmatprep.subr.bf16.mxu1 %v11542_v7 }
 0x354   : > { %4855 = vst [vmem:[#allocation3 + $0x88] sm:$0x80] %v13731_v24  ;;  %v15809_v26 = vrot.slane %v13682_v20, 4  ;;  %4843 = vst [vmem:[#allocation3 + $0x88] sm:$0x1f] %v4835_v28  ;;  %v15810_v22 = vrot.slane %v13682_v20, 5 }
 0x355   : > { %15807 = vst [vmem:[#allocation21_spill] sm:$0xff] %v13773_v49  ;;  %v13783_v3 = vshll.u32 %v13743_v34, 16  ;;  %v11540_v8 = vld [vmem:[%s15722_s3 + $0x110] ss:$8 sps:$4 sm:$0xff]   ;;  %v15811_v23 = vrot.slane %v13675_v9, 6  ;;  %v13795_v62 = vshrl.u32 %v13743_v34, 16 }
 0x356   : > { %v13779_v13 = vor.u32 %v15809_v26, %v15808_v43  ;;  %v15729_v44 = vrot.slane %v13743_v34, 5  ;;  %v11545_v21 = vld [vmem:[%s15722_s3 + $0x124] ss:$8 sps:$4 sm:$0xff]   ;;  %v15813_v37 = vrot.slane %v13664_v0, 7  ;;  %v4729_v42 = vmax.f32 %v10671_v10, 0.0  ;;  %v13807_v56 = vld [vmem:[#allocation3 + $0x60] sm:$0xff]  ;;  %8555 = vmatpush1.bf16.msra.mxu1 %v11540_v8 }
 0x357   : > { %v13792_v38 = vor.u32 %v15811_v23, %v15810_v22  ;;  %v11548_v50 = vld [vmem:[#allocation4 + $0x90] ss:$72 sps:$4 sm:$0xff]   ;;  %v4730_v58 = vmax.f32 %v13739_v31, 0.0  ;;  %v15731_v28 = vrot.slane %v13743_v34, 6  ;;  %v13812_v29 = vld [vmem:[#allocation3 + $0x50] sm:$0xff]  ;;  %v13822_v10 = vsel %vm12309_vm5, %v13669_v1, %v13650_v27  ;;  %8556 = vmatprep.subr.bf16.mxu1 %v11545_v21 }
 0x358   : > { %v13805_v60 = vrot.slane %v15813_v37, 4  ;;  %v13814_v57 = vld [vmem:[#allocation3 + $0x58] sm:$0xff]  ;;  %v13816_v43 = vld [vmem:[#allocation3 + $0x68] sm:$0xff]  ;;  %v13827_v31 = vrot.slane %v15729_v44, 4  ;;  %v13865_v55 = vrot.slane %v4729_v42, 5 }
 0x359   : > { %15812 = vst [vmem:[#allocation22_spill] sm:$0xff] %v13792_v38  ;;  %v13831_v26 = vpack.c.bf16 %v13814_v57, %v13812_v29  ;;  %v13835_v22 = vpack.c.bf16 %v13816_v43, %v13807_v56  ;;  %v13837_v23 = vld [vmem:[#allocation3 + $0x70] sm:$0xff]  ;;  %v13839_v37 = vld [vmem:[#allocation3 + $0x78] sm:$0xff]  ;;  %v11551_v44 = vld [vmem:[%s15722_s3 + $0x134] ss:$8 sps:$4 sm:$0xff]   ;;  %v13859_v53 = vrot.slane %v15731_v28, 4  ;;  %8512 = vmatmul.mubr.bf16.gmra.mrb[4].mxu1 %v11548_v50 }
 0x35a   : > { %15814 = vst [vmem:[#allocation23_spill] sm:$0xff] %v13805_v60  ;;  %v11543_v27 = vld [vmem:[%s15722_s3 + $0x120] ss:$8 sps:$4 sm:$0xff]   ;;  %v13847_v33 = vpack.c.bf16 %v13839_v37, %v13837_v23  ;;  %v11549_v16 = vld [vmem:[%s15722_s3 + $0x130] ss:$8 sps:$4 sm:$0xff]   ;;  %v15816_v28 = vrot.slane %v13743_v34, 7 }
 0x35b   : > { %v13855_v8 = vshll.u32 %v13831_v26, 16  ;;  %15815 = vst [vmem:[#allocation24_spill] sm:$0xff] %v13859_v53  ;;  %v13862_v7 = vshrl.u32 %v13831_v26, 16  ;;  %8557 = vmatpush1.bf16.msra.mxu1 %v11543_v27  ;;  %v13876_v60 = vrot.slane %v4730_v58, 5  ;;  %v11554_v42 = vld [vmem:[%s15722_s3 + $0x144] ss:$8 sps:$4 sm:$0xff]  }
 0x35c   : > { %v13874_v47 = vrot.slane %v15816_v28, 4  ;;  %8558 = vmatprep.subr.bf16.mxu1 %v11551_v44  ;;  %v13884_v21 = vshll.u32 %v13835_v22, 16  ;;  %v15818_v5 = vrot.slane %v13831_v26, 5  ;;  %v5096_v58 = vshrl.u32 %v13835_v22, 16  ;;  %v11552_v50 = vld [vmem:[%s15722_s3 + $0x140] ss:$8 sps:$4 sm:$0xff]  }
 0x35d   : > { %v15819_v41 = vrot.slane %v13831_v26, 6  ;;  %v13911_v17 = vshll.u32 %v13847_v33, 16  ;;  %v15821_v49 = vrot.slane %v13831_v26, 7  ;;  %v15824_v27 = vrot.slane %v13835_v22, 5  ;;  %v4889_v46 = vld [vmem:[#allocation3 + $0x88] sm:$0xff] }
 0x35e   : > { %15817 = vst [vmem:[#allocation25_spill] sm:$0xff] %v13874_v47  ;;  %v13889_v28 = vrot.slane %v15818_v5, 4  ;;  %v5098_v1 = vrot.slane %v5096_v58, 4  ;;  %v11557_v5 = vld [vmem:[%s15722_s3 + $0x154] ss:$8 sps:$4 sm:$0xff]   ;;  %v5520_v47 = vrot.slane %v5096_v58, 5 }
 0x35f   : > { %8559 = vmatpush1.bf16.msra.mxu1 %v11549_v16  ;;  %v13904_v44 = vrot.slane %v15819_v41, 4  ;;  %v13918_v41 = vrot.slane %v15821_v49, 4  ;;  %v15823_v16 = vrot.slane %v13884_v21, 5  ;;  %v5523_v40 = vrot.slane %v13884_v21, 6 }
 0x360   : > { %8560 = vmatprep.subr.bf16.mxu1 %v11554_v42  ;;  %v11555_v42 = vld [vmem:[%s15722_s3 + $0x150] ss:$8 sps:$4 sm:$0xff]   ;;  %v5106_v49 = vshrl.u32 %v13847_v33, 16  ;;  %v5533_v38 = vrot.slane %v13911_v17, 6  ;;  %v15748_v2 = vrot.slane %v13847_v33, 5  ;;  %v15749_v53 = vrot.slane %v13847_v33, 6 }
 0x361   : > { %15820 = vst [vmem:[#allocation26_spill] sm:$0xff] %v13904_v44  ;;  %15822 = vst [vmem:[#allocation27_spill] sm:$0xff] %v13918_v41  ;;  %v13922_v35 = vor.u32 %v5098_v1, %v15823_v16  ;;  %v13930_v44 = vrot.slane %v15824_v27, 4  ;;  %v5973_v41 = vrot.slane %v5096_v58, 6  ;;  %v5976_v1 = vrot.slane %v13884_v21, 7  ;;  %v4888_v27 = vld [vmem:[#allocation3 + $0x80] sm:$0xff] }
 0x362   : > { %v11558_v16 = vld [vmem:[%s15722_s3 + $0x160] ss:$8 sps:$4 sm:$0xff]   ;;  %v5108_v63 = vrot.slane %v5106_v49, 4  ;;  %v13944_v36 = vor.u32 %v5523_v40, %v5520_v47  ;;  %v5530_v58 = vrot.slane %v5106_v49, 5  ;;  %v4847_v40 = vsel %vm703_vm0, %v13726_v59, %v13865_v55 }
 0x363   : > { %8561 = vmatpush1.bf16.msra.mxu1 %v11552_v50  ;;  %v11560_v50 = vld [vmem:[%s15722_s3 + $0x164] ss:$8 sps:$4 sm:$0xff]   ;;  %v13955_v11 = vor.u32 %v5976_v1, %v5973_v41  ;;  %v15830_v47 = vrot.slane %v13911_v17, 5  ;;  %v5983_v18 = vrot.slane %v5106_v49, 6  ;;  %4856 = vst [vmem:[#allocation3 + $0x90] sm:$0x7f] %v4847_v40 }
 0x364   : > { %8562 = vmatprep.subr.bf16.mxu1 %v11557_v5  ;;  %v15825_v5 = vrot.slane %v13835_v22, 6  ;;  %v13972_v1 = vor.u32 %v5533_v38, %v5530_v58  ;;  %v15750_v59 = vrot.slane %v13847_v33, 7  ;;  %v13980_v49 = vrot.slane %v15748_v2, 4  ;;  %v15875_v39 = vld [vmem:[#allocation22_spill] sm:$0xff] }
 0x365   : > { %15829 = vst [vmem:[#allocation30_spill] sm:$0xff] %v13955_v11  ;;  %v11930_v2 = vpack.c.bf16 %v13814_v57, %v13729_v4  ;;  %v11932_v4 = vpack.c.bf16 %v13839_v37, %v13816_v43  ;;  %v15835_v57 = vrot.slane %v13675_v9, 5  ;;  %v5070_v43 = vrot.slane %v13779_v13, 4 }
 0x366   : > { %v13940_v32 = vrot.slane %v15825_v5, 4  ;;  %v15827_v5 = vrot.slane %v13835_v22, 7  ;;  %v14003_v41 = vrot.slane %v15750_v59, 4  ;;  %v15836_v37 = vrot.slane %v13783_v3, 5 }
 0x367   : > { %8563 = vmatpush1.bf16.msra.mxu1 %v11555_v42  ;;  %v13957_v42 = vpack.c.bf16 %v4889_v46, %v4888_v27  ;;  %v11561_v46 = vld [vmem:[%s15722_s3 + $0x170] ss:$8 sps:$4 sm:$0xff]   ;;  %8521 = vmatprep.mubr.bf16.mxu1 %v11930_v2  ;;  %v15840_v13 = vrot.slane %v13911_v17, 5 }
 0x368   : > { %15826 = vst [vmem:[#allocation28_spill] sm:$0xff] %v13940_v32  ;;  %8564 = vmatprep.subr.bf16.mxu1 %v11560_v50  ;;  %v13952_v32 = vrot.slane %v15827_v5, 4  ;;  %v13964_v50 = vor.u32 %v5108_v63, %v15830_v47  ;;  %v5986_v5 = vrot.slane %v13911_v17, 7  ;;  %v11566_v63 = vld [vmem:[%s15722_s3 + $0x184] ss:$8 sps:$4 sm:$0xff]   ;;  %v13995_v47 = vrot.slane %v15749_v53, 4 }
 0x369   : > { %v13985_v27 = vshll.u32 %v13957_v42, 16  ;;  %v13988_v40 = vshrl.u32 %v13957_v42, 16  ;;  %v15751_v38 = vrot.slane %v13957_v42, 5  ;;  %15832 = vst [vmem:[#allocation32_spill] sm:$0xff] %v14003_v41  ;;  %v4731_v41 = vmax.f32 %v13752_v61, 0.0 }
 0x36a   : > { %15828 = vst [vmem:[#allocation29_spill] sm:$0xff] %v13952_v32  ;;  %v5110_v58 = vrot.slane %v13964_v50, 4  ;;  %v11569_v50 = vld [vmem:[%s15722_s3 + $0x194] ss:$8 sps:$4 sm:$0xff]   ;;  %v11931_v32 = vpack.c.bf16 %v13812_v29, %v13721_v19  ;;  %v11572_v19 = vld [vmem:[%s15722_s3 + $0x1a4] ss:$8 sps:$4 sm:$0xff]  }
 0x36b   : > { %8565 = vmatpush1.bf16.msra.mxu1 %v11558_v16  ;;  %v13982_v16 = vor.u32 %v5986_v5, %v5983_v18  ;;  %v11564_v18 = vld [vmem:[%s15722_s3 + $0x180] ss:$8 sps:$4 sm:$0xff]   ;;  %v5118_v53 = vrot.slane %v13988_v40, 4  ;;  %v4849_v5 = vsel %vm703_vm0, %v13731_v24, %v13876_v60  ;;  %v14017_v59 = vrot.slane %v15751_v38, 4  ;;  %v11567_v24 = vld [vmem:[%s15722_s3 + $0x190] ss:$8 sps:$4 sm:$0xff]  }
 0x36c   : > { %8566 = vmatprep.subr.bf16.mxu1 %v11563_v14  ;;  %4857 = vst [vmem:[#allocation3 + $0x98] sm:$0x7f] %v4849_v5  ;;  %v5543_v14 = vrot.slane %v13985_v27, 6  ;;  %v15833_v38 = vrot.slane %v13957_v42, 6  ;;  %v4732_v5 = vmax.f32 %v13755_v15, 0.0  ;;  %v4860_v29 = vrot.slane %v4731_v41, 5  ;;  %8522 = vmatmul.mubr.bf16.gmra.mrb[8].mxu1 %v11931_v32 }
 0x36d   : > { %15831 = vst [vmem:[#allocation31_spill] sm:$0xff] %v13982_v16  ;;  %8531 = vmatprep.mubr.bf16.mxu1 %v11932_v4  ;;  %v11570_v15 = vld [vmem:[%s15722_s3 + $0x1a0] ss:$8 sps:$4 sm:$0xff]   ;;  %v15837_v41 = vrot.slane %v13795_v62, 4  ;;  %v11575_v17 = vld [vmem:[%s15722_s3 + $0x1b4] ss:$8 sps:$4 sm:$0xff]  }
 0x36e   : > { %v14031_v11 = vrot.slane %v15833_v38, 4  ;;  %v14045_v38 = vsel %vm12309_vm5, %v13686_v45, %v15835_v57  ;;  %v4862_v2 = vrot.slane %v4732_v5, 5  ;;  %v5993_v45 = vrot.slane %v13988_v40, 6  ;;  %v4890_v5 = vld [vmem:[#allocation3 + $0x90] sm:$0x3f] }
 0x36f   : > { %8567 = vmatpush1.bf16.msra.mxu1 %v11561_v46  ;;  %v5114_v46 = vrot.slane %v13985_v27, 5  ;;  %v5079_v32 = vor.u32 %v15837_v41, %v15836_v37  ;;  %v4980_v4 = vld [vmem:[#allocation3 + $0x90] sm:$0x7f]  ;;  %v4861_v16 = vsel %vm703_vm0, %v13865_v55, %v4860_v29  ;;  %4870 = vst [vmem:[#allocation3 + $0xb0] sm:$0x1] %v4860_v29 }
 0x370   : > { %8568 = vmatprep.subr.bf16.mxu1 %v11566_v63  ;;  %v5540_v63 = vrot.slane %v13988_v40, 5  ;;  %15834 = vst [vmem:[#allocation33_spill] sm:$0xff] %v14031_v11  ;;  %v5169_v57 = vld [vmem:[#allocation3 + $0x90] sm:$0xff]  ;;  %v15841_v11 = vrot.slane %v13922_v35, 4  ;;  %4868 = vst [vmem:[#allocation3 + $0xa0] sm:$0xfe] %v4861_v16  ;;  %v4863_v40 = vsel %vm703_vm0, %v13876_v60, %v4862_v2 }
 0x371   : > { %v14072_v41 = vsel %vm12309_vm5, %v5110_v58, %v5114_v46  ;;  %4871 = vst [vmem:[#allocation3 + $0xb8] sm:$0x1] %v4862_v2  ;;  %v15842_v35 = vrot.slane %v13783_v3, 5  ;;  %v5080_v55 = vrot.slane %v5079_v32, 4  ;;  %v15843_v58 = vrot.slane %v13682_v20, 6 }
 0x372   : > { %v14068_v37 = vsel %vm12309_vm5, %v15841_v11, %v15840_v13  ;;  %v15844_v16 = vrot.slane %v13675_v9, 7  ;;  %v5119_v60 = vor.u32 %v5118_v53, %v5114_v46  ;;  %4869 = vst [vmem:[#allocation3 + $0xa8] sm:$0xfe] %v4863_v40  ;;  %v11933_v13 = vpack.c.bf16 %v13837_v23, %v13807_v56  ;;  %v11573_v53 = vld [vmem:[%s15722_s3 + $0x1b0] ss:$8 sps:$4 sm:$0xff]  }
 0x373   : > { %8569 = vmatpush1.bf16.msra.mxu1 %v11564_v18  ;;  %v15838_v18 = vrot.slane %v13855_v8, 5  ;;  %v14083_v11 = vsel %vm12309_vm5, %v5070_v43, %v15842_v35  ;;  %v4891_v2 = vld [vmem:[#allocation3 + $0x98] sm:$0x3f]  ;;  %v15845_v20 = vrot.slane %v13855_v8, 5  ;;  %v15847_v23 = vrot.slane %v13622_v30, 5 }
 0x374   : > { %8570 = vmatprep.subr.bf16.mxu1 %v11569_v50  ;;  %v15839_v50 = vrot.slane %v13862_v7, 4  ;;  %v14089_v29 = vor.u32 %v15844_v16, %v15843_v58  ;;  %v10567_v43 = vpack.c.bf16 %v4891_v2, %v4890_v5  ;;  %v14132_v30 = vor.u32 %v5543_v14, %v5540_v63  ;;  %8532 = vmatmul.mubr.bf16.gmra.mrb[12].mxu1 %v11933_v13  ;;  %v11576_v63 = vld [vmem:[%s15722_s3 + $0x1c0] ss:$8 sps:$4 sm:$0xff]  }
 0x375   : > { %v14100_v9 = vsel %vm12309_vm5, %v5080_v55, %v15845_v20  ;;  %v14116_v46 = vsel %vm12247_vm2, %v13642_v12, %v15847_v23  ;;  %vm9244_vm0 = vcmask 1045504  }
 0x376   : > { %v5089_v61 = vor.u32 %v15839_v50, %v15838_v18  ;;  %v4981_v18 = vld [vmem:[#allocation3 + $0x98] sm:$0x7f]  ;;  %4961 = vst [vmem:[#allocation4 + $0x288] sm:$0x77] %v10567_v43  ;;  %v5409_v13 = vld [vmem:[#allocation3 + $0xb0] sm:$0x1] }
 0x377   : > { %8571 = vmatpush1.bf16.msra.mxu1 %v11567_v24  ;;  %v5170_v50 = vld [vmem:[#allocation3 + $0x98] sm:$0xff]  ;;  %v10577_v35 = vpack.c.bf16 %v4981_v18, %v4980_v4  ;;  %v15850_v4 = vrot.slane %v13957_v42, 7  ;;  %v5740_v43 = vld [vmem:[#allocation3 + $0xb0] sm:$0xff] }
 0x378   : > { %8572 = vmatprep.subr.bf16.mxu1 %v11572_v19  ;;  %v5090_v24 = vrot.slane %v5089_v61, 4  ;;  %v5996_v19 = vrot.slane %v13985_v27, 7  ;;  %v14094_v32 = vpack.c.bf16 %v5170_v50, %v5169_v57  ;;  %v15846_v27 = vrot.slane %v13884_v21, 5  ;;  %v5288_v50 = vld [vmem:[#allocation3 + $0xa0] sm:$0xff]  ;;  %v5613_v14 = vld [vmem:[#allocation3 + $0xb8] sm:$0x3] }
 0x379   : > { %v14122_v61 = vsel %vm12247_vm2, %v13660_v48, %v13656_v54  ;;  %v15849_v21 = vrot.slane %v13656_v54, 4  ;;  %v14136_v12 = vrot.slane %v15850_v4, 4  ;;  %v5122_v57 = vshll.u32 %v10577_v35, 16  ;;  %v11578_v48 = vld [vmem:[%s15722_s3 + $0x1c4] ss:$8 sps:$4 sm:$0xff]   ;;  %v5289_v23 = vld [vmem:[#allocation3 + $0xa8] sm:$0xff] }
 0x37a   : > { %v14109_v56 = vsel %vm12309_vm5, %v5090_v24, %v15846_v27  ;;  %v14141_v40 = vor.u32 %v5996_v19, %v5993_v45  ;;  %v5126_v55 = vshrl.u32 %v10577_v35, 16  ;;  %v15756_v24 = vrot.slane %v14094_v32, 5  ;;  %v11581_v45 = vld [vmem:[%s15722_s3 + $0x1d4] ss:$8 sps:$4 sm:$0xff]   ;;  %v5612_v27 = vld [vmem:[#allocation3 + $0xb0] sm:$0x3] }
 0x37b   : > { %8573 = vmatpush1.bf16.msra.mxu1 %v11570_v15  ;;  %v15848_v15 = vrot.slane %v13664_v0, 5  ;;  %15851 = vst [vmem:[#allocation34_spill] sm:$0xff] %v14136_v12  ;;  %v5124_v58 = vrot.slane %v5122_v57, 5  ;;  %v5120_v19 = vrot.slane %v5119_v60, 4  ;;  %v5551_v2 = vshll.u32 %v14094_v32, 16 }
 0x37c   : > { %8574 = vmatprep.subr.bf16.mxu1 %v11575_v17  ;;  %v5548_v17 = vshrl.u32 %v14094_v32, 16  ;;  %v5128_v4 = vrot.slane %v5126_v55, 4  ;;  %v14169_v57 = vpack.c.bf16 %v5289_v23, %v5288_v50  ;;  %v5410_v35 = vld [vmem:[#allocation3 + $0xb8] sm:$0x1]  ;;  %v15757_v55 = vrot.slane %v14094_v32, 7 }
 0x37d   : > { %v14130_v5 = vsel %vm12247_vm2, %v15849_v21, %v15848_v15  ;;  %v5741_v15 = vld [vmem:[#allocation3 + $0xb8] sm:$0xff]  ;;  %v14173_v20 = vsel %vm12309_vm5, %v5120_v19, %v5124_v58  ;;  %v10608_v16 = vpack.c.bf16 %v5410_v35, %v5409_v13  ;;  %v14179_v18 = vrot.slane %v5551_v2, 6  ;;  %v11579_v50 = vld [vmem:[%s15722_s3 + $0x1d0] ss:$8 sps:$4 sm:$0xff]  }
 0x37e   : > { %v14177_v60 = vpack.c.bf16 %v5741_v15, %v5740_v43  ;;  %v15758_v21 = vshrl.u32 %v14169_v57, 16  ;;  %v15852_v25 = vrot.slane %v14094_v32, 6  ;;  %v11584_v35 = vld [vmem:[%s15722_s3 + $0x1e4] ss:$8 sps:$4 sm:$0xff]   ;;  %v14195_v23 = vrot.slane %v5548_v17, 6 }
 0x37f   : > { %8575 = vmatpush1.bf16.msra.mxu1 %v11573_v53  ;;  %v14167_v53 = vrot.slane %v15756_v24, 4  ;;  %v10619_v24 = vpack.c.bf16 %v5613_v14, %v5612_v27  ;;  %v14197_v14 = vshll.u32 %v10608_v16, 16  ;;  %v5129_v27 = vor.u32 %v5128_v4, %v5124_v58 }
 0x380   : > { %8576 = vmatprep.subr.bf16.mxu1 %v11578_v48  ;;  %v14175_v48 = vrot.slane %v5548_v17, 5  ;;  %v14188_v19 = vrot.slane %v15852_v25, 4  ;;  %v14199_v15 = vrot.slane %v5551_v2, 7  ;;  %v14208_v43 = vrot.slane %v15757_v55, 4 }
 0x381   : > { %v5366_v17 = vrot.slane %v14169_v57, 5  ;;  %v14213_v16 = vrot.slane %v15758_v21, 5  ;;  %v14215_v58 = vrot.slane %v10619_v24, 6  ;;  %v15854_v2 = vshll.u32 %v14169_v57, 16  ;;  %v11582_v21 = vld [vmem:[%s15722_s3 + $0x1e0] ss:$8 sps:$4 sm:$0xff]  }
 0x382   : > { %15853 = vst [vmem:[#allocation35_spill] sm:$0xff] %v14208_v43  ;;  %v15855_v13 = vrot.slane %v14169_v57, 6  ;;  %v15856_v43 = vrot.slane %v14177_v60, 6  ;;  %v15857_v12 = vrot.slane %v13743_v34, 5  ;;  %v6021_v24 = vshrl.u32 %v14177_v60, 16 }
 0x383   : > { %8577 = vmatpush1.bf16.msra.mxu1 %v11576_v63  ;;  %v6270_v63 = vld [vmem:[#allocation4 + $0x288] sm:$0x77]  ;;  %v14219_v4 = vrot.slane %v15854_v2, 6  ;;  %v5130_v2 = vrot.slane %v5129_v27, 4  ;;  %5269 = vst [vmem:[#allocation4 + $0x298] sm:$0x77] %v14167_v53 }
 0x384   : > { %8578 = vmatprep.subr.bf16.mxu1 %v11581_v45  ;;  %v14223_v45 = vrot.slane %v15855_v13, 4  ;;  %v10151_v55 = vcombine.high %v13957_v42, %v6270_v63  ;;  %v10150_v25 = vcombine.low %v13957_v42, %v6270_v63  ;;  %v14236_v13 = vrot.slane %v15856_v43, 4 }
 0x385   : > { %5150 = vst [vmem:[#allocation4 + $0x290] sm:$0x77] %v5130_v2  ;;  %v15858_v43 = vrot.slane %v13831_v26, 5 }
 0x386   : > { %8541 = vmatprep.mubr.bf16.mxu1 %v10151_v55  ;;  %v15861_v55 = vrot.slane %v13847_v33, 5 }
 0x387   : > { %8579 = vmatpush1.bf16.msra.mxu1 %v11579_v50  ;;  %v11587_v50 = vld [vmem:[%s15722_s3 + $0x1f4] ss:$8 sps:$4 sm:$0xff]   ;;  %v14257_v63 = vsel %vm12247_vm2, %v13827_v31, %v15858_v43 }
 0x388   : > { %8580 = vmatprep.subr.bf16.mxu1 %v11584_v35  ;;  %v14245_v35 = vsel %vm12247_vm2, %v13759_v52, %v15857_v12  ;;  %8542 = vmatmul.mubr.bf16.gmra.mrb[16].mxu1 %v10150_v25  ;;  %v15859_v52 = vcombine.high %v13768_v6, %v13822_v10  ;;  %v11585_v12 = vld [vmem:[%s15722_s3 + $0x1f0] ss:$8 sps:$4 sm:$0xff]   ;;  %v15860_v25 = vrot.slane %v13835_v22, 5  ;;  %v14277_v31 = vsel %vm12247_vm2, %v13930_v44, %v15861_v55  ;;  %v15871_v55 = vld [vmem:[#allocation15_spill] sm:$0xff] }
 0x389   : > { %15862 = vst [vmem:[#allocation36_spill] sm:$0xff] %v14277_v31  ;;  %v14310_v44 = vsel %vm12247_vm2, %v13652_v51, %v13656_v54  ;;  %v11593_v51 = vld [vmem:[%s15722_s3 + $0x214] ss:$8 sps:$4 sm:$0xff]   ;;  %v5701_v31 = vsel %vm12864_vm11, %v14223_v45, %v14215_v58 }
 0x38a   : > { %8584 = vmatprep.mubr.bf16.mxu1 %v15859_v52  ;;  %v14270_v2 = vsel %vm12247_vm2, %v13889_v28, %v15860_v25  ;;  %v6024_v52 = vshll.u32 %v14177_v60, 16  ;;  %v11590_v28 = vld [vmem:[%s15722_s3 + $0x204] ss:$8 sps:$4 sm:$0xff]   ;;  %15867 = vst [vmem:[#allocation39_spill] sm:$0xff] %v14310_v44  ;;  %v5368_v25 = vrot.slane %v5366_v17, 4  ;;  %v15872_v44 = vld [vmem:[#allocation16_spill] sm:$0xff] }
 0x38b   : > { %8581 = vmatpush1.bf16.msra.mxu1 %v11582_v21  ;;  %v15863_v21 = vrot.slane %v13957_v42, 5  ;;  %5721 = vst [vmem:[#allocation4 + $0x2b0] sm:$0x77] %v5701_v31  ;;  %v5742_v31 = vld [vmem:[#allocation3 + $0xc0] sm:$0x3] }
 0x38c   : > { %8582 = vmatprep.subr.bf16.mxu1 %v11587_v50  ;;  %5388 = vst [vmem:[#allocation4 + $0x2a0] sm:$0x77] %v5368_v25  ;;  %v15881_v25 = vrot.slane %v13862_v7, 5 }
 0x38d   : > { %v14284_v43 = vsel %vm12247_vm2, %v13980_v49, %v15863_v21  ;;  %v15865_v21 = vrot.slane %v14094_v32, 5  ;;  %v15869_v49 = vshrl.u32 %v14169_v57, 16 }
 0x38e   : > { %15864 = vst [vmem:[#allocation37_spill] sm:$0xff] %v14284_v43  ;;  %v15887_v43 = vld [vmem:[#allocation14_spill] sm:$0xff] }
 0x38f   : > { %v14303_v50 = vsel %vm12247_vm2, %v14017_v59, %v15865_v21  ;;  %8583 = vmatpush1.bf16.msra.mxu1 %v11585_v12  ;;  %v11588_v59 = vld [vmem:[%s15722_s3 + $0x200] ss:$8 sps:$4 sm:$0xff]   ;;  %v14341_v27 = vrot.slane %v15869_v49, 6  ;;  %v15870_v12 = vcombine.low %v13768_v6, %v13822_v10  ;;  %v14351_v21 = vsel %vm12699_vm8, %v15872_v44, %v15871_v55  ;;  %v11591_v6 = vld [vmem:[%s15722_s3 + $0x210] ss:$8 sps:$4 sm:$0xff]  }
 0x390   : > { %15866 = vst [vmem:[#allocation38_spill] sm:$0xff] %v14303_v50  ;;  %8635 = vmatprep.subr.bf16.mxu1 %v11590_v28  ;;  %v14337_v28 = vsel %vm12247_vm2, %v14167_v53, %v5366_v17  ;;  %15874 = vst [vmem:[#allocation15_spill] sm:$0xff] %v14351_v21  ;;  %v15876_v53 = vrot.slane %v15871_v55, 4  ;;  %v15878_v49 = vcombine.high %v14045_v38, %v14083_v11  ;;  %v5496_v55 = vrot.slane %v15875_v39, 4 }
 0x391   : > { %15868 = vst [vmem:[#allocation40_spill] sm:$0xff] %v14337_v28  ;;  %v15882_v10 = vrot.slane %v13855_v8, 6  ;;  %v15883_v44 = vrot.slane %v13944_v36, 4  ;;  %v5564_v21 = vor.u32 %v14219_v4, %v14213_v16  ;;  %v15892_v4 = vrot.slane %v13743_v34, 6 }
 0x392   : > { %8585 = vmatmul.mubr.bf16.vlgmr.msra.gmra.mrb[0].mxu1 %v15870_v12  ;;  %v14358_v17 = vsel %vm12699_vm8, %v15876_v53, %v15875_v39  ;;  %v15879_v12 = vrot.slane %v13795_v62, 5  ;;  %v15880_v53 = vrot.slane %v13783_v3, 6  ;;  %vm9275_vm2 = vcmask 1043456  }
 0x393   : > { %15877 = vst [vmem:[#allocation16_spill] sm:$0xff] %v14358_v17  ;;  %8594 = vmatprep.mubr.bf16.mxu1 %v15878_v49  ;;  %8636 = vmatpush1.bf16.msra.mxu1 %v11588_v59  ;;  %v6023_v49 = vrot.slane %v6021_v24, 6  ;;  %v11596_v59 = vld [vmem:[%s15722_s3 + $0x224] ss:$8 sps:$4 sm:$0xff]   ;;  %v5514_v28 = vor.u32 %v15882_v10, %v15881_v25  ;;  %v14387_v39 = vsel %vm12699_vm8, %v15883_v44, %v13972_v1  ;;  %v15884_v24 = vrot.slane %v13972_v1, 4  ;;  %v15885_v1 = vld [vmem:[#allocation13_spill] sm:$0xff] }
 0x394   : > { %v5504_v54 = vor.u32 %v15880_v53, %v15879_v12  ;;  %8637 = vmatprep.subr.bf16.mxu1 %v11593_v51  ;;  %v6026_v12 = vrot.slane %v6024_v52, 7  ;;  %v5546_v25 = vrot.slane %v14132_v30, 4  ;;  %v5554_v44 = vor.u32 %v14179_v18, %v14175_v48  ;;  %v15889_v18 = vld [vmem:[#allocation20_spill] sm:$0xff]  ;;  %v15890_v48 = vld [vmem:[#allocation17_spill] sm:$0xff] }
 0x395   : > { %v14394_v51 = vsel %vm12699_vm8, %v15884_v24, %v14132_v30  ;;  %v5516_v17 = vrot.slane %v5514_v28, 4  ;;  %v15886_v50 = vrot.slane %v15885_v1, 6  ;;  %v14423_v16 = vsel %vm12864_vm11, %v15890_v48, %v15889_v18 }
 0x396   : > { %v14398_v53 = vsel %vm12699_vm8, %v5496_v55, %v5504_v54  ;;  %v5506_v10 = vrot.slane %v5504_v54, 4  ;;  %v11594_v54 = vld [vmem:[%s15722_s3 + $0x220] ss:$8 sps:$4 sm:$0xff]   ;;  %15891 = vst [vmem:[#allocation8_spill] sm:$0xff] %v14423_v16  ;;  %v15895_v55 = vld [vmem:[#allocation24_spill] sm:$0xff]  ;;  %v14479_v48 = vor.u32 %v6026_v12, %v6023_v49  ;;  %v15905_v16 = vld [vmem:[#allocation33_spill] sm:$0xff] }
 0x397   : > { %v14410_v52 = vsel %vm12864_vm11, %v15887_v43, %v15886_v50  ;;  %8638 = vmatpush1.bf16.msra.mxu1 %v11591_v6  ;;  %v15893_v43 = vrot.slane %v15889_v18, 4  ;;  %v15894_v6 = vrot.slane %v13831_v26, 6  ;;  %v15900_v49 = vld [vmem:[#allocation26_spill] sm:$0xff] }
 0x398   : > { %v14417_v30 = vsel %vm12699_vm8, %v5506_v10, %v5514_v28  ;;  %8639 = vmatprep.subr.bf16.mxu1 %v11596_v59  ;;  %v11599_v10 = vld [vmem:[%s15722_s3 + $0x234] ss:$8 sps:$4 sm:$0xff]   ;;  %v5566_v59 = vrot.slane %v5564_v21, 4 }
 0x399   : > { %v14431_v50 = vsel %vm12864_vm11, %v15893_v43, %v15892_v4  ;;  %v14438_v28 = vsel %vm12864_vm11, %v15895_v55, %v15894_v6  ;;  %v14450_v4 = vsel %vm12699_vm8, %v5516_v17, %v13944_v36  ;;  %v14454_v43 = vsel %vm12699_vm8, %v5546_v25, %v5554_v44  ;;  %v11602_v6 = vld [vmem:[%s15722_s3 + $0x244] ss:$8 sps:$4 sm:$0xff]  }
 0x39a   : > { %v15896_v36 = vcombine.low %v14045_v38, %v14083_v11  ;;  %v15897_v55 = vshll.u32 %v14169_v57, 16  ;;  %v15898_v38 = vcombine.high %v14100_v9, %v14109_v56  ;;  %v11597_v11 = vld [vmem:[%s15722_s3 + $0x230] ss:$8 sps:$4 sm:$0xff]   ;;  %v15904_v25 = vrot.slane %v14094_v32, 6 }
 0x39b   : > { %8640 = vmatpush1.bf16.msra.mxu1 %v11594_v54  ;;  %v15901_v54 = vrot.slane %v13847_v33, 6 }
 0x39c   : > { %8595 = vmatmul.mubr.bf16.gmra.mrb[4].mxu1 %v15896_v36  ;;  %v14477_v1 = vrot.slane %v15897_v55, 7  ;;  %v5556_v36 = vrot.slane %v5554_v44, 4  ;;  %8641 = vmatprep.subr.bf16.mxu1 %v11599_v10  ;;  %v15899_v55 = vrot.slane %v13835_v22, 6  ;;  %v15903_v44 = vrot.slane %v13957_v42, 6 }
 0x39d   : > { %8604 = vmatprep.mubr.bf16.mxu1 %v15898_v38  ;;  %v15902_v38 = vld [vmem:[#allocation28_spill] sm:$0xff] }
 0x39e   : > { %v14495_v12 = vsel %vm12864_vm11, %v15900_v49, %v15899_v55  ;;  %v14502_v17 = vsel %vm12864_vm11, %v15902_v38, %v15901_v54  ;;  %v14509_v10 = vsel %vm12864_vm11, %v13995_v47, %v15903_v44  ;;  %v14516_v55 = vsel %vm12864_vm11, %v15905_v16, %v15904_v25  ;;  %v15919_v44 = vld [vmem:[#allocation31_spill] sm:$0xff]  ;;  %v15920_v47 = vld [vmem:[#allocation30_spill] sm:$0xff] }
 0x39f   : > { %v14520_v49 = vsel %vm12699_vm8, %v5556_v36, %v5564_v21  ;;  %v15906_v54 = vrot.slane %v14197_v14, 6  ;;  %v15907_v21 = vrot.slane %v14169_v57, 6  ;;  %8642 = vmatpush1.bf16.msra.mxu1 %v11597_v11  ;;  %v15908_v36 = vld [vmem:[#allocation18_spill] sm:$0xff]  ;;  %v15913_v11 = vld [vmem:[#allocation21_spill] sm:$0xff]  ;;  %v15917_v25 = vrot.slane %v13862_v7, 6 }
 0x3a0   : > { %8643 = vmatprep.subr.bf16.mxu1 %v11602_v6  ;;  %v15909_v6 = vcombine.low %v14100_v9, %v14109_v56  ;;  %v11603_v9 = vld [vmem:[%s15722_s3 + $0x250] ss:$8 sps:$4 sm:$0xff]   ;;  %v15918_v16 = vrot.slane %v13855_v8, 7 }
 0x3a1   : > { %v5571_v38 = vsel %vm12699_vm8, %v5566_v59, %v15906_v54  ;;  %v14539_v14 = vsel %vm12864_vm11, %v14188_v19, %v15907_v21  ;;  %v11600_v59 = vld [vmem:[%s15722_s3 + $0x240] ss:$8 sps:$4 sm:$0xff]   ;;  %v14552_v54 = vsel %vm12864_vm11, %v15908_v36, %v15889_v18  ;;  %v11605_v19 = vld [vmem:[%s15722_s3 + $0x254] ss:$8 sps:$4 sm:$0xff]   ;;  %v5743_v18 = vld [vmem:[#allocation3 + $0xc8] sm:$0x3]  ;;  %v15910_v21 = vcombine.high %v14068_v37, %v14072_v41 }
 0x3a2   : > { %5591 = vst [vmem:[#allocation4 + $0x2a8] sm:$0x77] %v5571_v38  ;;  %v10630_v56 = vpack.c.bf16 %v5743_v18, %v5742_v31  ;;  %v14593_v36 = vsel %vm13164_vm14, %v15913_v11, %v14089_v29  ;;  %v14599_v31 = vld [vmem:[#allocation4 + $0x290] sm:$0x77]  ;;  %v15915_v18 = vrot.slane %v13795_v62, 6  ;;  %v5967_v11 = vor.u32 %v15918_v16, %v15917_v25 }
 0x3a3   : > { %8644 = vmatpush1.bf16.msra.mxu1 %v11600_v59  ;;  %v5949_v59 = vrot.slane %v14089_v29, 4  ;;  %v15921_v29 = vrot.slane %v15920_v47, 4  ;;  %v5872_v25 = vld [vmem:[#allocation3 + $0xc0] sm:$0x7]  ;;  %v10153_v16 = vcombine.high %v14173_v20, %v14599_v31 }
 0x3a4   : > { %8605 = vmatmul.mubr.bf16.gmra.mrb[8].mxu1 %v15909_v6  ;;  %v15911_v6 = vrot.slane %v14177_v60, 6  ;;  %8645 = vmatprep.subr.bf16.mxu1 %v11605_v19  ;;  %v5830_v7 = vrot.slane %v10630_v56, 6  ;;  %v11606_v56 = vld [vmem:[%s15722_s3 + $0x260] ss:$8 sps:$4 sm:$0xff]   ;;  %v5969_v24 = vrot.slane %v5967_v11, 4 }
 0x3a5   : > { %8614 = vmatprep.mubr.bf16.mxu1 %v15910_v21  ;;  %v11608_v21 = vld [vmem:[%s15722_s3 + $0x264] ss:$8 sps:$4 sm:$0xff]   ;;  %v14614_v19 = vsel %vm13164_vm14, %v15921_v29, %v15919_v44 }
 0x3a6   : > { %v14587_v58 = vsel %vm12864_vm11, %v14223_v45, %v15911_v6  ;;  %v15916_v45 = vrot.slane %v13783_v3, 7  ;;  %15922 = vst [vmem:[#allocation13_spill] sm:$0xff] %v14614_v19  ;;  %v5873_v3 = vld [vmem:[#allocation3 + $0xc8] sm:$0x7]  ;;  %v5831_v8 = vsel %vm12864_vm11, %v14236_v13, %v5830_v7  ;;  %v6007_v13 = vor.u32 %v14199_v15, %v14195_v23  ;;  %v15930_v19 = vld [vmem:[#allocation23_spill] sm:$0xff] }
 0x3a7   : > { %15912 = vst [vmem:[#allocation22_spill] sm:$0xff] %v14587_v58  ;;  %v15923_v58 = vrot.slane %v15919_v44, 4  ;;  %8646 = vmatpush1.bf16.msra.mxu1 %v11603_v9  ;;  %v11611_v9 = vld [vmem:[%s15722_s3 + $0x274] ss:$8 sps:$4 sm:$0xff]   ;;  %5851 = vst [vmem:[#allocation4 + $0x2b8] sm:$0x77] %v5831_v8  ;;  %v15931_v23 = vcombine.low %v14068_v37, %v14072_v41 }
 0x3a8   : > { %v5957_v6 = vor.u32 %v15916_v45, %v15915_v18  ;;  %v15925_v45 = vrot.slane %v14169_v57, 7  ;;  %8647 = vmatprep.subr.bf16.mxu1 %v11608_v21  ;;  %v10641_v21 = vpack.c.bf16 %v5873_v3, %v5872_v25  ;;  %v15926_v7 = vrot.slane %v13664_v0, 7  ;;  %v11609_v37 = vld [vmem:[%s15722_s3 + $0x270] ss:$8 sps:$4 sm:$0xff]   ;;  %v11614_v3 = vld [vmem:[%s15722_s3 + $0x284] ss:$8 sps:$4 sm:$0xff]  }
 0x3a9   : > { %v14621_v62 = vsel %vm13164_vm14, %v15923_v58, %v14141_v40  ;;  %v14681_v0 = vsel %vm13164_vm14, %v5969_v24, %v15920_v47 }
 0x3aa   : > { %15924 = vst [vmem:[#allocation14_spill] sm:$0xff] %v14621_v62  ;;  %v14631_v29 = vrot.slane %v15925_v45, 4  ;;  %v14635_v44 = vsel %vm13164_vm14, %v5949_v59, %v5957_v6  ;;  %v5959_v58 = vrot.slane %v5957_v6, 4  ;;  %v5999_v59 = vrot.slane %v14141_v40, 4  ;;  %v15927_v45 = vld [vmem:[#allocation19_spill] sm:$0xff] }
 0x3ab   : > { %v6017_v40 = vor.u32 %v14477_v1, %v14341_v27  ;;  %v14666_v8 = vsel %vm13267_vm3, %v15927_v45, %v15926_v7  ;;  %v15929_v6 = vrot.slane %v13743_v34, 7  ;;  %v6009_v27 = vrot.slane %v6007_v13, 4  ;;  %8648 = vmatpush1.bf16.msra.mxu1 %v11606_v56  ;;  %v15933_v45 = vld [vmem:[#allocation25_spill] sm:$0xff]  ;;  %v15942_v34 = vld [vmem:[#allocation34_spill] sm:$0xff] }
 0x3ac   : > { %v14655_v18 = vsel %vm13164_vm14, %v5959_v58, %v5967_v11  ;;  %8615 = vmatmul.mubr.bf16.gmra.mrb[12].mxu1 %v15931_v23  ;;  %v14685_v15 = vsel %vm13164_vm14, %v5999_v59, %v6007_v13  ;;  %8649 = vmatprep.subr.bf16.mxu1 %v11611_v9  ;;  %v6034_v25 = vshll.u32 %v10641_v21, 16  ;;  %v15932_v56 = vrot.slane %v13831_v26, 7  ;;  %v15944_v58 = vld [vmem:[#allocation35_spill] sm:$0xff] }
 0x3ad   : > { %v14673_v11 = vsel %vm13267_vm3, %v15930_v19, %v15929_v6  ;;  %8624 = vmatprep.mubr.bf16.mxu1 %v10153_v16  ;;  %v10111_v41 = vcombine.high %v14655_v18, %v14681_v0  ;;  %v10110_v1 = vcombine.low %v14655_v18, %v14681_v0  ;;  %v6019_v47 = vrot.slane %v6017_v40, 4  ;;  %v11626_v62 = vld [vmem:[%s15722_s3 + $0x2c4] ss:$8 sps:$4 sm:$0xff]   ;;  %v11888_v18 = vld [vmem:[%s15722_s3 + $0x840] ss:$8 sps:$4 sm:$0xff]  }
 0x3ae   : > { %v6031_v19 = vshrl.u32 %v10641_v21, 16  ;;  %v14701_v16 = vsel %vm13164_vm14, %v6009_v27, %v6017_v40  ;;  %v14710_v59 = vsel %vm13267_vm3, %v15933_v45, %v15932_v56  ;;  %v6036_v40 = vrot.slane %v6034_v25, 7  ;;  %v15935_v21 = vld [vmem:[#allocation27_spill] sm:$0xff]  ;;  %v15937_v27 = vld [vmem:[#allocation29_spill] sm:$0xff] }
 0x3af   : > { %v10147_v9 = vcombine.high %v14685_v15, %v14701_v16  ;;  %v10146_v6 = vcombine.low %v14685_v15, %v14701_v16  ;;  %v14719_v24 = vsel %vm13164_vm14, %v6019_v47, %v14479_v48  ;;  %v15934_v26 = vrot.slane %v13835_v22, 7  ;;  %v15939_v47 = vld [vmem:[#allocation32_spill] sm:$0xff]  ;;  %v6080_v25 = vld [vmem:[#allocation3 + $0xc8] sm:$0xf]  ;;  %8650 = vmatpush1.bf16.msra.mxu1 %v11609_v37 }
 0x3b0   : > { %v6033_v13 = vrot.slane %v6031_v19, 6  ;;  %v15936_v23 = vrot.slane %v13847_v33, 7  ;;  %v15938_v45 = vrot.slane %v13957_v42, 7  ;;  %v6079_v22 = vld [vmem:[#allocation3 + $0xc0] sm:$0xf]  ;;  %v10152_v37 = vcombine.low %v14173_v20, %v14599_v31  ;;  %8651 = vmatprep.subr.bf16.mxu1 %v11614_v3 }
 0x3b1   : > { %v14726_v7 = vsel %vm13267_vm3, %v15935_v21, %v15934_v26  ;;  %v11612_v26 = vld [vmem:[%s15722_s3 + $0x280] ss:$8 sps:$4 sm:$0xff]   ;;  %v15941_v21 = vrot.slane %v14094_v32, 7  ;;  %v10652_v31 = vpack.c.bf16 %v6080_v25, %v6079_v22  ;;  %v15945_v3 = vrot.slane %v14177_v60, 7  ;;  %v11623_v22 = vld [vmem:[%s15722_s3 + $0x2b4] ss:$8 sps:$4 sm:$0xff]  }
 0x3b2   : > { %v14733_v56 = vsel %vm13267_vm3, %v15937_v27, %v15936_v23  ;;  %v14740_v19 = vsel %vm13267_vm3, %v15939_v47, %v15938_v45  ;;  %v15940_v27 = vrot.slane %v14177_v60, 7  ;;  %v11617_v47 = vld [vmem:[%s15722_s3 + $0x294] ss:$8 sps:$4 sm:$0xff]   ;;  %v6037_v33 = vor.u32 %v6036_v40, %v6033_v13  ;;  %v11615_v60 = vld [vmem:[%s15722_s3 + $0x290] ss:$8 sps:$4 sm:$0xff]  }
 0x3b3   : > { %v14765_v42 = vsel %vm13267_vm3, %v15942_v34, %v15941_v21  ;;  %v10083_v23 = vcombine.high %v14116_v46, %v14122_v61  ;;  %v14781_v32 = vsel %vm13267_vm3, %v14631_v29, %v15945_v3  ;;  %v15946_v34 = vrot.slane %v14479_v48, 4  ;;  %8652 = vmatpush1.bf16.msra.mxu1 %v11612_v26  ;;  %v11620_v48 = vld [vmem:[%s15722_s3 + $0x2a4] ss:$8 sps:$4 sm:$0xff]   ;;  %v11618_v40 = vld [vmem:[%s15722_s3 + $0x2a0] ss:$8 sps:$4 sm:$0xff]  }
 0x3b4   : > { %v6166_v45 = vrot.slane %v15940_v27, 4  ;;  %v15943_v27 = vrot.slane %v14169_v57, 7  ;;  %8625 = vmatmul.mubr.bf16.gmra.mrb[16].mxu1 %v10152_v37  ;;  %v6167_v29 = vrot.slane %v10652_v31, 7  ;;  %8653 = vmatprep.subr.bf16.mxu1 %v11617_v47  ;;  %v11621_v25 = vld [vmem:[%s15722_s3 + $0x2b0] ss:$8 sps:$4 sm:$0xff]   ;;  %v16001_v16 = vcombine.high %v14666_v8, %v14673_v11 }
 0x3b5   : > { %v6038_v13 = vsel %vm13164_vm14, %v15946_v34, %v6037_v33  ;;  %8667 = vmatprep.mubr.bf16.mxu1 %v10083_v23  ;;  %v11624_v26 = vld [vmem:[%s15722_s3 + $0x2c0] ss:$8 sps:$4 sm:$0xff]   ;;  %v11629_v33 = vld [vmem:[%s15722_s3 + $0x2d4] ss:$8 sps:$4 sm:$0xff]   ;;  %v11627_v21 = vld [vmem:[%s15722_s3 + $0x2d0] ss:$8 sps:$4 sm:$0xff]   ;;  %v15947_v34 = vcombine.low %v14116_v46, %v14122_v61 }
 0x3b6   : > { %v14774_v20 = vsel %vm13267_vm3, %v15944_v58, %v15943_v27  ;;  %6058 = vst [vmem:[#allocation4 + $0x2c0] sm:$0x77] %v6038_v13  ;;  %v6168_v38 = vsel %vm13267_vm3, %v6166_v45, %v6167_v29  ;;  %v11632_v23 = vld [vmem:[%s15722_s3 + $0x2e4] ss:$8 sps:$4 sm:$0xff]   ;;  %v11630_v45 = vld [vmem:[%s15722_s3 + $0x2e0] ss:$8 sps:$4 sm:$0xff]   ;;  %v15948_v13 = vcombine.high %v14130_v5, %v14245_v35 }
 0x3b7   : > { %v10149_v57 = vcombine.high %v14765_v42, %v14774_v20  ;;  %v10148_v58 = vcombine.low %v14765_v42, %v14774_v20  ;;  %6188 = vst [vmem:[#allocation4 + $0x2c8] sm:$0x77] %v6168_v38  ;;  %8654 = vmatpush1.bf16.msra.mxu1 %v11615_v60  ;;  %v11635_v37 = vld [vmem:[%s15722_s3 + $0x2f4] ss:$8 sps:$4 sm:$0xff]   ;;  %v11633_v47 = vld [vmem:[%s15722_s3 + $0x2f0] ss:$8 sps:$4 sm:$0xff]   ;;  %v15950_v38 = vcombine.high %v14257_v63, %v14270_v2 }
 0x3b8   : > { %8655 = vmatprep.subr.bf16.mxu1 %v11620_v48  ;;  %v11638_v27 = vld [vmem:[%s15722_s3 + $0x304] ss:$8 sps:$4 sm:$0xff]   ;;  %v11636_v31 = vld [vmem:[%s15722_s3 + $0x300] ss:$8 sps:$4 sm:$0xff]   ;;  %v11641_v3 = vld [vmem:[%s15722_s3 + $0x314] ss:$8 sps:$4 sm:$0xff]   ;;  %v15949_v48 = vcombine.low %v14130_v5, %v14245_v35 }
 0x3b9   : > { %v11639_v60 = vld [vmem:[%s15722_s3 + $0x310] ss:$8 sps:$4 sm:$0xff]   ;;  %v11644_v29 = vld [vmem:[%s15722_s3 + $0x324] ss:$8 sps:$4 sm:$0xff]   ;;  %v11642_v46 = vld [vmem:[%s15722_s3 + $0x320] ss:$8 sps:$4 sm:$0xff]  }
 0x3ba   : > { %v11647_v61 = vld [vmem:[%s15722_s3 + $0x334] ss:$8 sps:$4 sm:$0xff]   ;;  %v9216_v20 = vld [vmem:[%s12119_s16] sm:$0xff] }
 0x3bb   : > { %8656 = vmatpush1.bf16.msra.mxu1 %v11618_v40  ;;  %v11645_v40 = vld [vmem:[%s15722_s3 + $0x330] ss:$8 sps:$4 sm:$0xff]   ;;  %v11893_v0 = vld [vmem:[%s15722_s3 + $0x854] ss:$8 sps:$4 sm:$0xff]  }
 0x3bc   : > { %8657 = vmatprep.subr.bf16.mxu1 %v11623_v22  ;;  %v11650_v22 = vld [vmem:[%s15722_s3 + $0x344] ss:$8 sps:$4 sm:$0xff]   ;;  %v11905_v15 = vld [vmem:[%s15722_s3 + $0x894] ss:$8 sps:$4 sm:$0xff]  }
 0x3bf   : > { %8658 = vmatpush1.bf16.msra.mxu1 %v11621_v25  ;;  %v11648_v25 = vld [vmem:[%s15722_s3 + $0x340] ss:$8 sps:$4 sm:$0xff]  }
 0x3c0   : > { %8659 = vmatprep.subr.bf16.mxu1 %v11626_v62  ;;  %v11653_v62 = vld [vmem:[%s15722_s3 + $0x354] ss:$8 sps:$4 sm:$0xff]  }
 0x3c3   : > { %8660 = vmatpush1.bf16.msra.mxu1 %v11624_v26  ;;  %v15951_v26 = vcombine.low %v14257_v63, %v14270_v2 }
 0x3c4   : > { %8661 = vmatprep.subr.bf16.mxu1 %v11629_v33  ;;  %v15952_v33 = vld [vmem:[#allocation36_spill] sm:$0xff] }
 0x3c7   : > { %8662 = vmatpush1.bf16.msra.mxu1 %v11627_v21  ;;  %v15953_v21 = vld [vmem:[#allocation37_spill] sm:$0xff] }
 0x3c8   : > { %8663 = vmatprep.subr.bf16.mxu1 %v11632_v23  ;;  %v15954_v23 = vcombine.high %v15952_v33, %v15953_v21 }
 0x3cb   : > { %8664 = vmatpush1.bf16.msra.mxu1 %v11630_v45  ;;  %v11651_v45 = vld [vmem:[%s15722_s3 + $0x350] ss:$8 sps:$4 sm:$0xff]  }
 0x3cc   : > { %8665 = vmatprep.subr.bf16.mxu1 %v11635_v37  ;;  %v11656_v37 = vld [vmem:[%s15722_s3 + $0x364] ss:$8 sps:$4 sm:$0xff]  }
 0x3cf   : > { %8666 = vmatpush1.bf16.msra.mxu1 %v11633_v47  ;;  %v6272_v47 = vld [vmem:[#allocation4 + $0x298] sm:$0x77] }
 0x3d0   : > { %8718 = vmatprep.subr.bf16.mxu1 %v11638_v27  ;;  %v11654_v27 = vld [vmem:[%s15722_s3 + $0x360] ss:$8 sps:$4 sm:$0xff]  }
 0x3d2   : > { %8668 = vmatmul.mubr.bf16.vlgmr.msra.gmra.mrb[0].mxu1 %v15947_v34 }
 0x3d3   : > { %8677 = vmatprep.mubr.bf16.mxu1 %v15948_v13  ;;  %8719 = vmatpush1.bf16.msra.mxu1 %v11636_v31  ;;  %v11659_v31 = vld [vmem:[%s15722_s3 + $0x374] ss:$8 sps:$4 sm:$0xff]   ;;  %v15956_v13 = vcombine.low %v15952_v33, %v15953_v21 }
 0x3d4   : > { %8720 = vmatprep.subr.bf16.mxu1 %v11641_v3  ;;  %v15955_v3 = vld [vmem:[#allocation38_spill] sm:$0xff] }
 0x3d5   : > { %v10155_v34 = vcombine.high %v15955_v3, %v6272_v47 }
 0x3d7   : > { %8721 = vmatpush1.bf16.msra.mxu1 %v11639_v60  ;;  %v11657_v60 = vld [vmem:[%s15722_s3 + $0x370] ss:$8 sps:$4 sm:$0xff]  }
 0x3d8   : > { %8722 = vmatprep.subr.bf16.mxu1 %v11644_v29  ;;  %v11662_v29 = vld [vmem:[%s15722_s3 + $0x384] ss:$8 sps:$4 sm:$0xff]  }
 0x3da   : > { %8678 = vmatmul.mubr.bf16.gmra.mrb[4].mxu1 %v15949_v48  ;;  %v11665_v48 = vld [vmem:[%s15722_s3 + $0x394] ss:$8 sps:$4 sm:$0xff]  }
 0x3db   : > { %8687 = vmatprep.mubr.bf16.mxu1 %v15950_v38  ;;  %8723 = vmatpush1.bf16.msra.mxu1 %v11642_v46  ;;  %v11660_v46 = vld [vmem:[%s15722_s3 + $0x380] ss:$8 sps:$4 sm:$0xff]  }
 0x3dc   : > { %8724 = vmatprep.subr.bf16.mxu1 %v11647_v61  ;;  %v10154_v61 = vcombine.low %v15955_v3, %v6272_v47  ;;  %v15957_v38 = vld [vmem:[#allocation39_spill] sm:$0xff]  ;;  %v11677_v47 = vld [vmem:[%s15722_s3 + $0x3d4] ss:$8 sps:$4 sm:$0xff]  }
 0x3df   : > { %8725 = vmatpush1.bf16.msra.mxu1 %v11645_v40  ;;  %v15958_v40 = vcombine.high %v15957_v38, %v14130_v5 }
 0x3e0   : > { %8726 = vmatprep.subr.bf16.mxu1 %v11650_v22  ;;  %v11663_v22 = vld [vmem:[%s15722_s3 + $0x390] ss:$8 sps:$4 sm:$0xff]  }
 0x3e2   : > { %8688 = vmatmul.mubr.bf16.gmra.mrb[8].mxu1 %v15951_v26  ;;  %v11671_v26 = vld [vmem:[%s15722_s3 + $0x3b4] ss:$8 sps:$4 sm:$0xff]  }
 0x3e3   : > { %8697 = vmatprep.mubr.bf16.mxu1 %v15954_v23  ;;  %8727 = vmatpush1.bf16.msra.mxu1 %v11648_v25  ;;  %v11668_v25 = vld [vmem:[%s15722_s3 + $0x3a4] ss:$8 sps:$4 sm:$0xff]   ;;  %v11669_v23 = vld [vmem:[%s15722_s3 + $0x3b0] ss:$8 sps:$4 sm:$0xff]  }
 0x3e4   : > { %8728 = vmatprep.subr.bf16.mxu1 %v11653_v62  ;;  %v11666_v62 = vld [vmem:[%s15722_s3 + $0x3a0] ss:$8 sps:$4 sm:$0xff]  }
 0x3e7   : > { %8729 = vmatpush1.bf16.msra.mxu1 %v11651_v45  ;;  %v11674_v45 = vld [vmem:[%s15722_s3 + $0x3c4] ss:$8 sps:$4 sm:$0xff]  }
 0x3e8   : > { %8730 = vmatprep.subr.bf16.mxu1 %v11656_v37  ;;  %v11672_v37 = vld [vmem:[%s15722_s3 + $0x3c0] ss:$8 sps:$4 sm:$0xff]  }
 0x3ea   : > { %8698 = vmatmul.mubr.bf16.gmra.mrb[12].mxu1 %v15956_v13  ;;  %v11683_v13 = vld [vmem:[%s15722_s3 + $0x3f4] ss:$8 sps:$4 sm:$0xff]  }
 0x3eb   : > { %8707 = vmatprep.mubr.bf16.mxu1 %v10155_v34  ;;  %8731 = vmatpush1.bf16.msra.mxu1 %v11654_v27  ;;  %v11675_v27 = vld [vmem:[%s15722_s3 + $0x3d0] ss:$8 sps:$4 sm:$0xff]   ;;  %v11678_v34 = vld [vmem:[%s15722_s3 + $0x3e0] ss:$8 sps:$4 sm:$0xff]  }
 0x3ec   : > { %8732 = vmatprep.subr.bf16.mxu1 %v11659_v31  ;;  %v11680_v31 = vld [vmem:[%s15722_s3 + $0x3e4] ss:$8 sps:$4 sm:$0xff]  }
 0x3ef   : > { %8733 = vmatpush1.bf16.msra.mxu1 %v11657_v60  ;;  %v11681_v60 = vld [vmem:[%s15722_s3 + $0x3f0] ss:$8 sps:$4 sm:$0xff]  }
 0x3f0   : > { %8734 = vmatprep.subr.bf16.mxu1 %v11662_v29  ;;  %v11686_v29 = vld [vmem:[%s15722_s3 + $0x404] ss:$8 sps:$4 sm:$0xff]  }
 0x3f2   : > { %8708 = vmatmul.mubr.bf16.gmra.mrb[16].mxu1 %v10154_v61  ;;  %v11689_v61 = vld [vmem:[%s15722_s3 + $0x414] ss:$8 sps:$4 sm:$0xff]  }
 0x3f3   : > { %8735 = vmatpush1.bf16.msra.mxu1 %v11660_v46  ;;  %8750 = vmatprep.mubr.bf16.mxu1 %v15958_v40  ;;  %v11684_v46 = vld [vmem:[%s15722_s3 + $0x400] ss:$8 sps:$4 sm:$0xff]   ;;  %v15960_v40 = vcombine.high %v14245_v35, %v14257_v63 }
 0x3f4   : > { %8736 = vmatprep.subr.bf16.mxu1 %v11665_v48  ;;  %v15959_v48 = vcombine.low %v15957_v38, %v14130_v5  ;;  %v11690_v5 = vld [vmem:[%s15722_s3 + $0x420] ss:$8 sps:$4 sm:$0xff]   ;;  %v11695_v38 = vld [vmem:[%s15722_s3 + $0x434] ss:$8 sps:$4 sm:$0xff]  }
 0x3f7   : > { %8737 = vmatpush1.bf16.msra.mxu1 %v11663_v22  ;;  %v11687_v22 = vld [vmem:[%s15722_s3 + $0x410] ss:$8 sps:$4 sm:$0xff]  }
 0x3f8   : > { %8738 = vmatprep.subr.bf16.mxu1 %v11668_v25  ;;  %v11692_v25 = vld [vmem:[%s15722_s3 + $0x424] ss:$8 sps:$4 sm:$0xff]  }
 0x3fb   : > { %8739 = vmatpush1.bf16.msra.mxu1 %v11666_v62  ;;  %v15961_v62 = vcombine.low %v14245_v35, %v14257_v63  ;;  %v11696_v63 = vld [vmem:[%s15722_s3 + $0x440] ss:$8 sps:$4 sm:$0xff]   ;;  %v11701_v35 = vld [vmem:[%s15722_s3 + $0x454] ss:$8 sps:$4 sm:$0xff]  }
 0x3fc   : > { %8740 = vmatprep.subr.bf16.mxu1 %v11671_v26  ;;  %v15962_v26 = vcombine.high %v14270_v2, %v15952_v33 }
 0x3ff   : > { %8741 = vmatpush1.bf16.msra.mxu1 %v11669_v23  ;;  %v11693_v23 = vld [vmem:[%s15722_s3 + $0x430] ss:$8 sps:$4 sm:$0xff]  }
 0x400   : > { %8742 = vmatprep.subr.bf16.mxu1 %v11674_v45  ;;  %v11698_v45 = vld [vmem:[%s15722_s3 + $0x444] ss:$8 sps:$4 sm:$0xff]  }
 0x403   : > { %8743 = vmatpush1.bf16.msra.mxu1 %v11672_v37  ;;  %v15963_v37 = vcombine.low %v14270_v2, %v15952_v33  ;;  %v11702_v2 = vld [vmem:[%s15722_s3 + $0x460] ss:$8 sps:$4 sm:$0xff]   ;;  %v11707_v33 = vld [vmem:[%s15722_s3 + $0x474] ss:$8 sps:$4 sm:$0xff]  }
 0x404   : > { %8744 = vmatprep.subr.bf16.mxu1 %v11677_v47  ;;  %v15964_v47 = vcombine.high %v15953_v21, %v15955_v3 }
 0x407   : > { %8745 = vmatpush1.bf16.msra.mxu1 %v11675_v27  ;;  %v11699_v27 = vld [vmem:[%s15722_s3 + $0x450] ss:$8 sps:$4 sm:$0xff]  }
 0x408   : > { %8746 = vmatprep.subr.bf16.mxu1 %v11680_v31  ;;  %v11704_v31 = vld [vmem:[%s15722_s3 + $0x464] ss:$8 sps:$4 sm:$0xff]  }
 0x40b   : > { %8747 = vmatpush1.bf16.msra.mxu1 %v11678_v34  ;;  %v6273_v34 = vld [vmem:[#allocation4 + $0x2a0] sm:$0x77] }
 0x40c   : > { %8748 = vmatprep.subr.bf16.mxu1 %v11683_v13  ;;  %v15965_v13 = vld [vmem:[#allocation40_spill] sm:$0xff] }
 0x40f   : > { %8749 = vmatpush1.bf16.msra.mxu1 %v11681_v60  ;;  %v10157_v60 = vcombine.high %v15965_v13, %v6273_v34 }
 0x410   : > { %8801 = vmatprep.subr.bf16.mxu1 %v11686_v29  ;;  %v15966_v29 = vcombine.low %v15953_v21, %v15955_v3  ;;  %v11713_v21 = vld [vmem:[%s15722_s3 + $0x494] ss:$8 sps:$4 sm:$0xff]   ;;  %v15967_v3 = vld [vmem:[#allocation15_spill] sm:$0xff] }
 0x412   : > { %8751 = vmatmul.mubr.bf16.vlgmr.msra.gmra.mrb[0].mxu1 %v15959_v48  ;;  %v11708_v48 = vld [vmem:[%s15722_s3 + $0x480] ss:$8 sps:$4 sm:$0xff]  }
 0x413   : > { %8760 = vmatprep.mubr.bf16.mxu1 %v15960_v40  ;;  %8802 = vmatpush1.bf16.msra.mxu1 %v11684_v46  ;;  %v11705_v46 = vld [vmem:[%s15722_s3 + $0x470] ss:$8 sps:$4 sm:$0xff]   ;;  %v10156_v40 = vcombine.low %v15965_v13, %v6273_v34  ;;  %v11737_v13 = vld [vmem:[%s15722_s3 + $0x514] ss:$8 sps:$4 sm:$0xff]  }
 0x414   : > { %8803 = vmatprep.subr.bf16.mxu1 %v11689_v61  ;;  %v11710_v61 = vld [vmem:[%s15722_s3 + $0x484] ss:$8 sps:$4 sm:$0xff]   ;;  %v11729_v34 = vld [vmem:[%s15722_s3 + $0x4f0] ss:$8 sps:$4 sm:$0xff]  }
 0x417   : > { %8804 = vmatpush1.bf16.msra.mxu1 %v11687_v22  ;;  %v15968_v22 = vld [vmem:[#allocation16_spill] sm:$0xff] }
 0x418   : > { %8805 = vmatprep.subr.bf16.mxu1 %v11692_v25  ;;  %v15969_v25 = vcombine.high %v15967_v3, %v15968_v22 }
 0x41a   : > { %8761 = vmatmul.mubr.bf16.gmra.mrb[4].mxu1 %v15961_v62  ;;  %v11714_v62 = vld [vmem:[%s15722_s3 + $0x4a0] ss:$8 sps:$4 sm:$0xff]  }
 0x41b   : > { %8770 = vmatprep.mubr.bf16.mxu1 %v15962_v26  ;;  %8806 = vmatpush1.bf16.msra.mxu1 %v11690_v5  ;;  %v11711_v5 = vld [vmem:[%s15722_s3 + $0x490] ss:$8 sps:$4 sm:$0xff]   ;;  %v11719_v26 = vld [vmem:[%s15722_s3 + $0x4b4] ss:$8 sps:$4 sm:$0xff]  }
 0x41c   : > { %8807 = vmatprep.subr.bf16.mxu1 %v11695_v38  ;;  %v11716_v38 = vld [vmem:[%s15722_s3 + $0x4a4] ss:$8 sps:$4 sm:$0xff]  }
 0x41f   : > { %8808 = vmatpush1.bf16.msra.mxu1 %v11693_v23  ;;  %v11717_v23 = vld [vmem:[%s15722_s3 + $0x4b0] ss:$8 sps:$4 sm:$0xff]  }
 0x420   : > { %8809 = vmatprep.subr.bf16.mxu1 %v11698_v45  ;;  %v11722_v45 = vld [vmem:[%s15722_s3 + $0x4c4] ss:$8 sps:$4 sm:$0xff]  }
 0x422   : > { %8771 = vmatmul.mubr.bf16.gmra.mrb[8].mxu1 %v15963_v37  ;;  %v11723_v37 = vld [vmem:[%s15722_s3 + $0x4d0] ss:$8 sps:$4 sm:$0xff]  }
 0x423   : > { %8780 = vmatprep.mubr.bf16.mxu1 %v15964_v47  ;;  %8810 = vmatpush1.bf16.msra.mxu1 %v11696_v63  ;;  %v11720_v63 = vld [vmem:[%s15722_s3 + $0x4c0] ss:$8 sps:$4 sm:$0xff]   ;;  %v11728_v47 = vld [vmem:[%s15722_s3 + $0x4e4] ss:$8 sps:$4 sm:$0xff]  }
 0x424   : > { %8811 = vmatprep.subr.bf16.mxu1 %v11701_v35  ;;  %v11725_v35 = vld [vmem:[%s15722_s3 + $0x4d4] ss:$8 sps:$4 sm:$0xff]  }
 0x427   : > { %8812 = vmatpush1.bf16.msra.mxu1 %v11699_v27  ;;  %v11726_v27 = vld [vmem:[%s15722_s3 + $0x4e0] ss:$8 sps:$4 sm:$0xff]  }
 0x428   : > { %8813 = vmatprep.subr.bf16.mxu1 %v11704_v31  ;;  %v11731_v31 = vld [vmem:[%s15722_s3 + $0x4f4] ss:$8 sps:$4 sm:$0xff]  }
 0x42a   : > { %8781 = vmatmul.mubr.bf16.gmra.mrb[12].mxu1 %v15966_v29  ;;  %v15971_v29 = vcombine.high %v14398_v53, %v14417_v30 }
 0x42b   : > { %8790 = vmatprep.mubr.bf16.mxu1 %v10157_v60  ;;  %8814 = vmatpush1.bf16.msra.mxu1 %v11702_v2  ;;  %v11734_v2 = vld [vmem:[%s15722_s3 + $0x504] ss:$8 sps:$4 sm:$0xff]   ;;  %v15970_v60 = vcombine.low %v15967_v3, %v15968_v22  ;;  %v15973_v3 = vcombine.high %v14450_v4, %v14387_v39  ;;  %v11741_v22 = vld [vmem:[%s15722_s3 + $0x530] ss:$8 sps:$4 sm:$0xff]  }
 0x42c   : > { %8815 = vmatprep.subr.bf16.mxu1 %v11707_v33  ;;  %v11732_v33 = vld [vmem:[%s15722_s3 + $0x500] ss:$8 sps:$4 sm:$0xff]  }
 0x42f   : > { %8816 = vmatpush1.bf16.msra.mxu1 %v11705_v46  ;;  %v11735_v46 = vld [vmem:[%s15722_s3 + $0x510] ss:$8 sps:$4 sm:$0xff]  }
 0x430   : > { %8817 = vmatprep.subr.bf16.mxu1 %v11710_v61  ;;  %v11740_v61 = vld [vmem:[%s15722_s3 + $0x524] ss:$8 sps:$4 sm:$0xff]  }
 0x432   : > { %8791 = vmatmul.mubr.bf16.gmra.mrb[16].mxu1 %v10156_v40  ;;  %v11743_v40 = vld [vmem:[%s15722_s3 + $0x534] ss:$8 sps:$4 sm:$0xff]  }
 0x433   : > { %8818 = vmatpush1.bf16.msra.mxu1 %v11708_v48  ;;  %8833 = vmatprep.mubr.bf16.mxu1 %v15969_v25  ;;  %v11738_v48 = vld [vmem:[%s15722_s3 + $0x520] ss:$8 sps:$4 sm:$0xff]   ;;  %v11746_v25 = vld [vmem:[%s15722_s3 + $0x544] ss:$8 sps:$4 sm:$0xff]  }
 0x434   : > { %8819 = vmatprep.subr.bf16.mxu1 %v11713_v21  ;;  %v15972_v21 = vcombine.low %v14398_v53, %v14417_v30  ;;  %v11744_v53 = vld [vmem:[%s15722_s3 + $0x540] ss:$8 sps:$4 sm:$0xff]   ;;  %v11749_v30 = vld [vmem:[%s15722_s3 + $0x554] ss:$8 sps:$4 sm:$0xff]  }
 0x437   : > { %8820 = vmatpush1.bf16.msra.mxu1 %v11711_v5  ;;  %v15974_v5 = vcombine.low %v14450_v4, %v14387_v39  ;;  %v11750_v39 = vld [vmem:[%s15722_s3 + $0x560] ss:$8 sps:$4 sm:$0xff]   ;;  %v11755_v4 = vld [vmem:[%s15722_s3 + $0x574] ss:$8 sps:$4 sm:$0xff]  }
 0x438   : > { %8821 = vmatprep.subr.bf16.mxu1 %v11716_v38  ;;  %v15975_v38 = vcombine.high %v14394_v51, %v14454_v43 }
 0x43b   : > { %8822 = vmatpush1.bf16.msra.mxu1 %v11714_v62  ;;  %v11747_v62 = vld [vmem:[%s15722_s3 + $0x550] ss:$8 sps:$4 sm:$0xff]  }
 0x43c   : > { %8823 = vmatprep.subr.bf16.mxu1 %v11719_v26  ;;  %v11752_v26 = vld [vmem:[%s15722_s3 + $0x564] ss:$8 sps:$4 sm:$0xff]  }
 0x43f   : > { %8824 = vmatpush1.bf16.msra.mxu1 %v11717_v23  ;;  %v6274_v23 = vld [vmem:[#allocation4 + $0x2a8] sm:$0x77] }
 0x440   : > { %8825 = vmatprep.subr.bf16.mxu1 %v11722_v45  ;;  %v10159_v45 = vcombine.high %v14520_v49, %v6274_v23 }
 0x443   : > { %8826 = vmatpush1.bf16.msra.mxu1 %v11720_v63  ;;  %v15976_v63 = vcombine.low %v14394_v51, %v14454_v43  ;;  %v11761_v51 = vld [vmem:[%s15722_s3 + $0x594] ss:$8 sps:$4 sm:$0xff]  }
 0x444   : > { %8827 = vmatprep.subr.bf16.mxu1 %v11725_v35  ;;  %v11753_v35 = vld [vmem:[%s15722_s3 + $0x570] ss:$8 sps:$4 sm:$0xff]  }
 0x445   : > { %v15977_v43 = vld [vmem:[#allocation8_spill] sm:$0xff] }
 0x447   : > { %8828 = vmatpush1.bf16.msra.mxu1 %v11723_v37  ;;  %v11758_v37 = vld [vmem:[%s15722_s3 + $0x584] ss:$8 sps:$4 sm:$0xff]  }
 0x448   : > { %8829 = vmatprep.subr.bf16.mxu1 %v11728_v47  ;;  %v11756_v47 = vld [vmem:[%s15722_s3 + $0x580] ss:$8 sps:$4 sm:$0xff]  }
 0x44b   : > { %8830 = vmatpush1.bf16.msra.mxu1 %v11726_v27  ;;  %v10158_v27 = vcombine.low %v14520_v49, %v6274_v23  ;;  %v11764_v49 = vld [vmem:[%s15722_s3 + $0x5a4] ss:$8 sps:$4 sm:$0xff]   ;;  %v15981_v23 = vcombine.low %v14431_v50, %v14438_v28 }
 0x44c   : > { %8831 = vmatprep.subr.bf16.mxu1 %v11731_v31  ;;  %v15978_v31 = vcombine.high %v14410_v52, %v15977_v43 }
 0x44f   : > { %8832 = vmatpush1.bf16.msra.mxu1 %v11729_v34  ;;  %v11759_v34 = vld [vmem:[%s15722_s3 + $0x590] ss:$8 sps:$4 sm:$0xff]  }
 0x450   : > { %8884 = vmatprep.subr.bf16.mxu1 %v11734_v2  ;;  %v11762_v2 = vld [vmem:[%s15722_s3 + $0x5a0] ss:$8 sps:$4 sm:$0xff]  }
 0x452   : > { %8834 = vmatmul.mubr.bf16.vlgmr.msra.gmra.mrb[0].mxu1 %v15970_v60  ;;  %v11770_v60 = vld [vmem:[%s15722_s3 + $0x5c4] ss:$8 sps:$4 sm:$0xff]  }
 0x453   : > { %8843 = vmatprep.mubr.bf16.mxu1 %v15971_v29  ;;  %8885 = vmatpush1.bf16.msra.mxu1 %v11732_v33  ;;  %v11767_v33 = vld [vmem:[%s15722_s3 + $0x5b4] ss:$8 sps:$4 sm:$0xff]   ;;  %v11768_v29 = vld [vmem:[%s15722_s3 + $0x5c0] ss:$8 sps:$4 sm:$0xff]  }
 0x454   : > { %8886 = vmatprep.subr.bf16.mxu1 %v11737_v13  ;;  %v11765_v13 = vld [vmem:[%s15722_s3 + $0x5b0] ss:$8 sps:$4 sm:$0xff]  }
 0x457   : > { %8887 = vmatpush1.bf16.msra.mxu1 %v11735_v46  ;;  %v11773_v46 = vld [vmem:[%s15722_s3 + $0x5d4] ss:$8 sps:$4 sm:$0xff]  }
 0x458   : > { %8888 = vmatprep.subr.bf16.mxu1 %v11740_v61  ;;  %v11771_v61 = vld [vmem:[%s15722_s3 + $0x5d0] ss:$8 sps:$4 sm:$0xff]  }
 0x45a   : > { %8844 = vmatmul.mubr.bf16.gmra.mrb[4].mxu1 %v15972_v21  ;;  %v11779_v21 = vld [vmem:[%s15722_s3 + $0x5f4] ss:$8 sps:$4 sm:$0xff]  }
 0x45b   : > { %8853 = vmatprep.mubr.bf16.mxu1 %v15973_v3  ;;  %8889 = vmatpush1.bf16.msra.mxu1 %v11738_v48  ;;  %v11776_v48 = vld [vmem:[%s15722_s3 + $0x5e4] ss:$8 sps:$4 sm:$0xff]   ;;  %v11777_v3 = vld [vmem:[%s15722_s3 + $0x5f0] ss:$8 sps:$4 sm:$0xff]  }
 0x45c   : > { %8890 = vmatprep.subr.bf16.mxu1 %v11743_v40  ;;  %v11774_v40 = vld [vmem:[%s15722_s3 + $0x5e0] ss:$8 sps:$4 sm:$0xff]  }
 0x45f   : > { %8891 = vmatpush1.bf16.msra.mxu1 %v11741_v22  ;;  %v11782_v22 = vld [vmem:[%s15722_s3 + $0x604] ss:$8 sps:$4 sm:$0xff]  }
 0x460   : > { %8892 = vmatprep.subr.bf16.mxu1 %v11746_v25  ;;  %v11780_v25 = vld [vmem:[%s15722_s3 + $0x600] ss:$8 sps:$4 sm:$0xff]  }
 0x462   : > { %8854 = vmatmul.mubr.bf16.gmra.mrb[8].mxu1 %v15974_v5  ;;  %v15980_v5 = vcombine.high %v14431_v50, %v14438_v28 }
 0x463   : > { %8863 = vmatprep.mubr.bf16.mxu1 %v15975_v38  ;;  %8893 = vmatpush1.bf16.msra.mxu1 %v11744_v53  ;;  %v11785_v53 = vld [vmem:[%s15722_s3 + $0x614] ss:$8 sps:$4 sm:$0xff]   ;;  %v11783_v38 = vld [vmem:[%s15722_s3 + $0x610] ss:$8 sps:$4 sm:$0xff]  }
 0x464   : > { %8894 = vmatprep.subr.bf16.mxu1 %v11749_v30  ;;  %v15979_v30 = vcombine.low %v14410_v52, %v15977_v43  ;;  %v11786_v52 = vld [vmem:[%s15722_s3 + $0x620] ss:$8 sps:$4 sm:$0xff]   ;;  %v6275_v43 = vld [vmem:[#allocation4 + $0x2b0] sm:$0x77] }
 0x467   : > { %8895 = vmatpush1.bf16.msra.mxu1 %v11747_v62  ;;  %v11788_v62 = vld [vmem:[%s15722_s3 + $0x624] ss:$8 sps:$4 sm:$0xff]  }
 0x468   : > { %8896 = vmatprep.subr.bf16.mxu1 %v11752_v26  ;;  %v11791_v26 = vld [vmem:[%s15722_s3 + $0x634] ss:$8 sps:$4 sm:$0xff]  }
 0x46a   : > { %8864 = vmatmul.mubr.bf16.gmra.mrb[12].mxu1 %v15976_v63  ;;  %v11792_v63 = vld [vmem:[%s15722_s3 + $0x640] ss:$8 sps:$4 sm:$0xff]  }
 0x46b   : > { %8873 = vmatprep.mubr.bf16.mxu1 %v10159_v45  ;;  %8897 = vmatpush1.bf16.msra.mxu1 %v11750_v39  ;;  %v15982_v39 = vcombine.high %v14495_v12, %v14502_v17  ;;  %v11794_v45 = vld [vmem:[%s15722_s3 + $0x644] ss:$8 sps:$4 sm:$0xff]  }
 0x46c   : > { %8898 = vmatprep.subr.bf16.mxu1 %v11755_v4  ;;  %v11789_v4 = vld [vmem:[%s15722_s3 + $0x630] ss:$8 sps:$4 sm:$0xff]  }
 0x46f   : > { %8899 = vmatpush1.bf16.msra.mxu1 %v11753_v35  ;;  %v11797_v35 = vld [vmem:[%s15722_s3 + $0x654] ss:$8 sps:$4 sm:$0xff]  }
 0x470   : > { %8900 = vmatprep.subr.bf16.mxu1 %v11758_v37  ;;  %v15983_v37 = vcombine.low %v14495_v12, %v14502_v17 }
 0x472   : > { %8874 = vmatmul.mubr.bf16.gmra.mrb[16].mxu1 %v10158_v27  ;;  %v11795_v27 = vld [vmem:[%s15722_s3 + $0x650] ss:$8 sps:$4 sm:$0xff]  }
 0x473   : > { %8901 = vmatpush1.bf16.msra.mxu1 %v11756_v47  ;;  %8916 = vmatprep.mubr.bf16.mxu1 %v15978_v31  ;;  %v15984_v47 = vcombine.high %v14509_v10, %v14516_v55  ;;  %v11798_v31 = vld [vmem:[%s15722_s3 + $0x660] ss:$8 sps:$4 sm:$0xff]  }
 0x474   : > { %8902 = vmatprep.subr.bf16.mxu1 %v11761_v51  ;;  %v11800_v51 = vld [vmem:[%s15722_s3 + $0x664] ss:$8 sps:$4 sm:$0xff]  }
 0x477   : > { %8903 = vmatpush1.bf16.msra.mxu1 %v11759_v34  ;;  %v11803_v34 = vld [vmem:[%s15722_s3 + $0x674] ss:$8 sps:$4 sm:$0xff]  }
 0x478   : > { %8904 = vmatprep.subr.bf16.mxu1 %v11764_v49  ;;  %v10161_v49 = vcombine.high %v14539_v14, %v6275_v43 }
 0x47b   : > { %8905 = vmatpush1.bf16.msra.mxu1 %v11762_v2  ;;  %v15985_v2 = vcombine.low %v14509_v10, %v14516_v55 }
 0x47c   : > { %8906 = vmatprep.subr.bf16.mxu1 %v11767_v33  ;;  %v11801_v33 = vld [vmem:[%s15722_s3 + $0x670] ss:$8 sps:$4 sm:$0xff]  }
 0x47f   : > { %8907 = vmatpush1.bf16.msra.mxu1 %v11765_v13  ;;  %v11806_v13 = vld [vmem:[%s15722_s3 + $0x684] ss:$8 sps:$4 sm:$0xff]  }
 0x480   : > { %8908 = vmatprep.subr.bf16.mxu1 %v11770_v60  ;;  %v11804_v60 = vld [vmem:[%s15722_s3 + $0x680] ss:$8 sps:$4 sm:$0xff]  }
 0x483   : > { %8909 = vmatpush1.bf16.msra.mxu1 %v11768_v29  ;;  %v10160_v29 = vcombine.low %v14539_v14, %v6275_v43  ;;  %v11842_v43 = vld [vmem:[%s15722_s3 + $0x744] ss:$8 sps:$4 sm:$0xff]  }
 0x484   : > { %8910 = vmatprep.subr.bf16.mxu1 %v11773_v46  ;;  %v11809_v46 = vld [vmem:[%s15722_s3 + $0x694] ss:$8 sps:$4 sm:$0xff]  }
 0x487   : > { %8911 = vmatpush1.bf16.msra.mxu1 %v11771_v61  ;;  %v15986_v61 = vcombine.high %v14552_v54, %v14431_v50 }
 0x488   : > { %8912 = vmatprep.subr.bf16.mxu1 %v11776_v48  ;;  %v11807_v48 = vld [vmem:[%s15722_s3 + $0x690] ss:$8 sps:$4 sm:$0xff]  }
 0x48b   : > { %8913 = vmatpush1.bf16.msra.mxu1 %v11774_v40  ;;  %v11812_v40 = vld [vmem:[%s15722_s3 + $0x6a4] ss:$8 sps:$4 sm:$0xff]  }
 0x48c   : > { %8914 = vmatprep.subr.bf16.mxu1 %v11779_v21  ;;  %v11810_v21 = vld [vmem:[%s15722_s3 + $0x6a0] ss:$8 sps:$4 sm:$0xff]  }
 0x48f   : > { %8915 = vmatpush1.bf16.msra.mxu1 %v11777_v3  ;;  %v11815_v3 = vld [vmem:[%s15722_s3 + $0x6b4] ss:$8 sps:$4 sm:$0xff]  }
 0x490   : > { %8967 = vmatprep.subr.bf16.mxu1 %v11782_v22  ;;  %v11813_v22 = vld [vmem:[%s15722_s3 + $0x6b0] ss:$8 sps:$4 sm:$0xff]  }
 0x492   : > { %8917 = vmatmul.mubr.bf16.vlgmr.msra.gmra.mrb[0].mxu1 %v15979_v30  ;;  %v11821_v30 = vld [vmem:[%s15722_s3 + $0x6d4] ss:$8 sps:$4 sm:$0xff]  }
 0x493   : > { %8926 = vmatprep.mubr.bf16.mxu1 %v15980_v5  ;;  %8968 = vmatpush1.bf16.msra.mxu1 %v11780_v25  ;;  %v11818_v25 = vld [vmem:[%s15722_s3 + $0x6c4] ss:$8 sps:$4 sm:$0xff]   ;;  %v11819_v5 = vld [vmem:[%s15722_s3 + $0x6d0] ss:$8 sps:$4 sm:$0xff]  }
 0x494   : > { %8969 = vmatprep.subr.bf16.mxu1 %v11785_v53  ;;  %v11816_v53 = vld [vmem:[%s15722_s3 + $0x6c0] ss:$8 sps:$4 sm:$0xff]  }
 0x497   : > { %8970 = vmatpush1.bf16.msra.mxu1 %v11783_v38  ;;  %v11824_v38 = vld [vmem:[%s15722_s3 + $0x6e4] ss:$8 sps:$4 sm:$0xff]  }
 0x498   : > { %8971 = vmatprep.subr.bf16.mxu1 %v11788_v62  ;;  %v11822_v62 = vld [vmem:[%s15722_s3 + $0x6e0] ss:$8 sps:$4 sm:$0xff]  }
 0x49a   : > { %8927 = vmatmul.mubr.bf16.gmra.mrb[4].mxu1 %v15981_v23  ;;  %v11830_v23 = vld [vmem:[%s15722_s3 + $0x704] ss:$8 sps:$4 sm:$0xff]  }
 0x49b   : > { %8936 = vmatprep.mubr.bf16.mxu1 %v15982_v39  ;;  %8972 = vmatpush1.bf16.msra.mxu1 %v11786_v52  ;;  %v11827_v52 = vld [vmem:[%s15722_s3 + $0x6f4] ss:$8 sps:$4 sm:$0xff]   ;;  %v11828_v39 = vld [vmem:[%s15722_s3 + $0x700] ss:$8 sps:$4 sm:$0xff]  }
 0x49c   : > { %8973 = vmatprep.subr.bf16.mxu1 %v11791_v26  ;;  %v11825_v26 = vld [vmem:[%s15722_s3 + $0x6f0] ss:$8 sps:$4 sm:$0xff]  }
 0x49f   : > { %8974 = vmatpush1.bf16.msra.mxu1 %v11789_v4  ;;  %v11833_v4 = vld [vmem:[%s15722_s3 + $0x714] ss:$8 sps:$4 sm:$0xff]  }
 0x4a0   : > { %8975 = vmatprep.subr.bf16.mxu1 %v11794_v45  ;;  %v15987_v45 = vcombine.low %v14552_v54, %v14431_v50  ;;  %v11834_v50 = vld [vmem:[%s15722_s3 + $0x720] ss:$8 sps:$4 sm:$0xff]   ;;  %v11839_v54 = vld [vmem:[%s15722_s3 + $0x734] ss:$8 sps:$4 sm:$0xff]  }
 0x4a2   : > { %8937 = vmatmul.mubr.bf16.gmra.mrb[8].mxu1 %v15983_v37  ;;  %v11836_v37 = vld [vmem:[%s15722_s3 + $0x724] ss:$8 sps:$4 sm:$0xff]  }
 0x4a3   : > { %8946 = vmatprep.mubr.bf16.mxu1 %v15984_v47  ;;  %8976 = vmatpush1.bf16.msra.mxu1 %v11792_v63  ;;  %v15988_v63 = vcombine.high %v14438_v28, %v14495_v12  ;;  %v15989_v47 = vcombine.low %v14438_v28, %v14495_v12  ;;  %v11840_v28 = vld [vmem:[%s15722_s3 + $0x740] ss:$8 sps:$4 sm:$0xff]   ;;  %v11845_v12 = vld [vmem:[%s15722_s3 + $0x754] ss:$8 sps:$4 sm:$0xff]  }
 0x4a4   : > { %8977 = vmatprep.subr.bf16.mxu1 %v11797_v35  ;;  %v11831_v35 = vld [vmem:[%s15722_s3 + $0x710] ss:$8 sps:$4 sm:$0xff]  }
 0x4a7   : > { %8978 = vmatpush1.bf16.msra.mxu1 %v11795_v27  ;;  %v15990_v27 = vcombine.high %v14502_v17, %v14509_v10 }
 0x4a8   : > { %8979 = vmatprep.subr.bf16.mxu1 %v11800_v51  ;;  %v11837_v51 = vld [vmem:[%s15722_s3 + $0x730] ss:$8 sps:$4 sm:$0xff]  }
 0x4aa   : > { %8947 = vmatmul.mubr.bf16.gmra.mrb[12].mxu1 %v15985_v2  ;;  %v11848_v2 = vld [vmem:[%s15722_s3 + $0x764] ss:$8 sps:$4 sm:$0xff]  }
 0x4ab   : > { %8956 = vmatprep.mubr.bf16.mxu1 %v10161_v49  ;;  %8980 = vmatpush1.bf16.msra.mxu1 %v11798_v31  ;;  %v15991_v31 = vcombine.low %v14502_v17, %v14509_v10  ;;  %v11843_v49 = vld [vmem:[%s15722_s3 + $0x750] ss:$8 sps:$4 sm:$0xff]   ;;  %v11846_v17 = vld [vmem:[%s15722_s3 + $0x760] ss:$8 sps:$4 sm:$0xff]   ;;  %v11851_v10 = vld [vmem:[%s15722_s3 + $0x774] ss:$8 sps:$4 sm:$0xff]  }
 0x4ac   : > { %8981 = vmatprep.subr.bf16.mxu1 %v11803_v34  ;;  %v15992_v34 = vcombine.high %v14516_v55, %v14539_v14 }
 0x4af   : > { %8982 = vmatpush1.bf16.msra.mxu1 %v11801_v33  ;;  %v6276_v33 = vld [vmem:[#allocation4 + $0x2b8] sm:$0x77] }
 0x4b0   : > { %8983 = vmatprep.subr.bf16.mxu1 %v11806_v13  ;;  %v15993_v13 = vld [vmem:[#allocation22_spill] sm:$0xff] }
 0x4b2   : > { %8957 = vmatmul.mubr.bf16.gmra.mrb[16].mxu1 %v10160_v29  ;;  %v15994_v29 = vcombine.low %v14516_v55, %v14539_v14  ;;  %v11857_v55 = vld [vmem:[%s15722_s3 + $0x794] ss:$8 sps:$4 sm:$0xff]   ;;  %v15995_v14 = vcombine.high %v14593_v36, %v14635_v44 }
 0x4b3   : > { %8984 = vmatpush1.bf16.msra.mxu1 %v11804_v60  ;;  %8999 = vmatprep.mubr.bf16.mxu1 %v15986_v61  ;;  %v10163_v60 = vcombine.high %v15993_v13, %v6276_v33  ;;  %v11854_v61 = vld [vmem:[%s15722_s3 + $0x784] ss:$8 sps:$4 sm:$0xff]  }
 0x4b4   : > { %8985 = vmatprep.subr.bf16.mxu1 %v11809_v46  ;;  %v11849_v46 = vld [vmem:[%s15722_s3 + $0x770] ss:$8 sps:$4 sm:$0xff]  }
 0x4b7   : > { %8986 = vmatpush1.bf16.msra.mxu1 %v11807_v48  ;;  %v11852_v48 = vld [vmem:[%s15722_s3 + $0x780] ss:$8 sps:$4 sm:$0xff]  }
 0x4b8   : > { %8987 = vmatprep.subr.bf16.mxu1 %v11812_v40  ;;  %v10162_v40 = vcombine.low %v15993_v13, %v6276_v33  ;;  %v11900_v33 = vld [vmem:[%s15722_s3 + $0x880] ss:$8 sps:$4 sm:$0xff]   ;;  %v11911_v13 = vld [vmem:[%s15722_s3 + $0x8b4] ss:$8 sps:$4 sm:$0xff]  }
 0x4bb   : > { %8988 = vmatpush1.bf16.msra.mxu1 %v11810_v21  ;;  %v11855_v21 = vld [vmem:[%s15722_s3 + $0x790] ss:$8 sps:$4 sm:$0xff]  }
 0x4bc   : > { %8989 = vmatprep.subr.bf16.mxu1 %v11815_v3  ;;  %v11860_v3 = vld [vmem:[%s15722_s3 + $0x7a4] ss:$8 sps:$4 sm:$0xff]  }
 0x4bf   : > { %8990 = vmatpush1.bf16.msra.mxu1 %v11813_v22  ;;  %v11858_v22 = vld [vmem:[%s15722_s3 + $0x7a0] ss:$8 sps:$4 sm:$0xff]  }
 0x4c0   : > { %8991 = vmatprep.subr.bf16.mxu1 %v11818_v25  ;;  %v11863_v25 = vld [vmem:[%s15722_s3 + $0x7b4] ss:$8 sps:$4 sm:$0xff]  }
 0x4c3   : > { %8992 = vmatpush1.bf16.msra.mxu1 %v11816_v53  ;;  %v11861_v53 = vld [vmem:[%s15722_s3 + $0x7b0] ss:$8 sps:$4 sm:$0xff]  }
 0x4c4   : > { %8993 = vmatprep.subr.bf16.mxu1 %v11821_v30  ;;  %v11866_v30 = vld [vmem:[%s15722_s3 + $0x7c4] ss:$8 sps:$4 sm:$0xff]  }
 0x4c7   : > { %8994 = vmatpush1.bf16.msra.mxu1 %v11819_v5  ;;  %v11864_v5 = vld [vmem:[%s15722_s3 + $0x7c0] ss:$8 sps:$4 sm:$0xff]  }
 0x4c8   : > { %8995 = vmatprep.subr.bf16.mxu1 %v11824_v38  ;;  %v11869_v38 = vld [vmem:[%s15722_s3 + $0x7d4] ss:$8 sps:$4 sm:$0xff]  }
 0x4cb   : > { %8996 = vmatpush1.bf16.msra.mxu1 %v11822_v62  ;;  %v11867_v62 = vld [vmem:[%s15722_s3 + $0x7d0] ss:$8 sps:$4 sm:$0xff]  }
 0x4cc   : > { %8997 = vmatprep.subr.bf16.mxu1 %v11827_v52  ;;  %v11872_v52 = vld [vmem:[%s15722_s3 + $0x7e4] ss:$8 sps:$4 sm:$0xff]  }
 0x4cf   : > { %8998 = vmatpush1.bf16.msra.mxu1 %v11825_v26  ;;  %v11870_v26 = vld [vmem:[%s15722_s3 + $0x7e0] ss:$8 sps:$4 sm:$0xff]  }
 0x4d0   : > { %9050 = vmatprep.subr.bf16.mxu1 %v11830_v23  ;;  %v11875_v23 = vld [vmem:[%s15722_s3 + $0x7f4] ss:$8 sps:$4 sm:$0xff]  }
 0x4d2   : > { %9000 = vmatmul.mubr.bf16.vlgmr.msra.gmra.mrb[0].mxu1 %v15987_v45  ;;  %v11876_v45 = vld [vmem:[%s15722_s3 + $0x800] ss:$8 sps:$4 sm:$0xff]  }
 0x4d3   : > { %9009 = vmatprep.mubr.bf16.mxu1 %v15988_v63  ;;  %9051 = vmatpush1.bf16.msra.mxu1 %v11828_v39  ;;  %v11873_v39 = vld [vmem:[%s15722_s3 + $0x7f0] ss:$8 sps:$4 sm:$0xff]   ;;  %v11881_v63 = vld [vmem:[%s15722_s3 + $0x814] ss:$8 sps:$4 sm:$0xff]  }
 0x4d4   : > { %9052 = vmatprep.subr.bf16.mxu1 %v11833_v4  ;;  %v11878_v4 = vld [vmem:[%s15722_s3 + $0x804] ss:$8 sps:$4 sm:$0xff]  }
 0x4d7   : > { %9053 = vmatpush1.bf16.msra.mxu1 %v11831_v35  ;;  %v15996_v35 = vcombine.low %v14593_v36, %v14635_v44  ;;  %v11882_v36 = vld [vmem:[%s15722_s3 + $0x820] ss:$8 sps:$4 sm:$0xff]   ;;  %v11887_v44 = vld [vmem:[%s15722_s3 + $0x834] ss:$8 sps:$4 sm:$0xff]  }
 0x4d8   : > { %9054 = vmatprep.subr.bf16.mxu1 %v11836_v37  ;;  %v11879_v37 = vld [vmem:[%s15722_s3 + $0x810] ss:$8 sps:$4 sm:$0xff]  }
 0x4da   : > { %9010 = vmatmul.mubr.bf16.gmra.mrb[4].mxu1 %v15989_v47 }
 0x4db   : > { %9019 = vmatprep.mubr.bf16.mxu1 %v15990_v27  ;;  %9055 = vmatpush1.bf16.msra.mxu1 %v11834_v50  ;;  %v11884_v50 = vld [vmem:[%s15722_s3 + $0x824] ss:$8 sps:$4 sm:$0xff]   ;;  %v11885_v27 = vld [vmem:[%s15722_s3 + $0x830] ss:$8 sps:$4 sm:$0xff]  }
 0x4dc   : > { %9056 = vmatprep.subr.bf16.mxu1 %v11839_v54  ;;  %v15998_v54 = vld [vmem:[#allocation14_spill] sm:$0xff] }
 0x4df   : > { %9057 = vmatpush1.bf16.msra.mxu1 %v11837_v51  ;;  %v11890_v51 = vld [vmem:[%s15722_s3 + $0x844] ss:$8 sps:$4 sm:$0xff]  }
 0x4e0   : > { %9058 = vmatprep.subr.bf16.mxu1 %v11842_v43  ;;  %v11891_v43 = vld [vmem:[%s15722_s3 + $0x850] ss:$8 sps:$4 sm:$0xff]  }
 0x4e2   : > { %9020 = vmatmul.mubr.bf16.gmra.mrb[8].mxu1 %v15991_v31  ;;  %v11894_v31 = vld [vmem:[%s15722_s3 + $0x860] ss:$8 sps:$4 sm:$0xff]  }
 0x4e3   : > { %9029 = vmatprep.mubr.bf16.mxu1 %v15992_v34  ;;  %9059 = vmatpush1.bf16.msra.mxu1 %v11840_v28  ;;  %v11896_v28 = vld [vmem:[%s15722_s3 + $0x864] ss:$8 sps:$4 sm:$0xff]  }
 0x4e4   : > { %9060 = vmatprep.subr.bf16.mxu1 %v11845_v12  ;;  %v6277_v12 = vld [vmem:[#allocation4 + $0x2c0] sm:$0x77] }
 0x4e5   : > { %v10165_v34 = vcombine.high %v14719_v24, %v6277_v12 }
 0x4e7   : > { %9061 = vmatpush1.bf16.msra.mxu1 %v11843_v49  ;;  %v11897_v49 = vld [vmem:[%s15722_s3 + $0x870] ss:$8 sps:$4 sm:$0xff]  }
 0x4e8   : > { %9062 = vmatprep.subr.bf16.mxu1 %v11848_v2  ;;  %v11902_v2 = vld [vmem:[%s15722_s3 + $0x884] ss:$8 sps:$4 sm:$0xff]  }
 0x4ea   : > { %9030 = vmatmul.mubr.bf16.gmra.mrb[12].mxu1 %v15994_v29  ;;  %v11914_v29 = vld [vmem:[%s15722_s3 + $0x8c4] ss:$8 sps:$4 sm:$0xff]  }
 0x4eb   : > { %9039 = vmatprep.mubr.bf16.mxu1 %v10163_v60  ;;  %9063 = vmatpush1.bf16.msra.mxu1 %v11846_v17  ;;  %v10164_v17 = vcombine.low %v14719_v24, %v6277_v12  ;;  %v11908_v24 = vld [vmem:[%s15722_s3 + $0x8a4] ss:$8 sps:$4 sm:$0xff]   ;;  %v11909_v60 = vld [vmem:[%s15722_s3 + $0x8b0] ss:$8 sps:$4 sm:$0xff]  }
 0x4ec   : > { %9064 = vmatprep.subr.bf16.mxu1 %v11851_v10  ;;  %v11906_v10 = vld [vmem:[%s15722_s3 + $0x8a0] ss:$8 sps:$4 sm:$0xff]  }
 0x4ef   : > { %9065 = vmatpush1.bf16.msra.mxu1 %v11849_v46  ;;  %v11912_v46 = vld [vmem:[%s15722_s3 + $0x8c0] ss:$8 sps:$4 sm:$0xff]  }
 0x4f0   : > { %9066 = vmatprep.subr.bf16.mxu1 %v11854_v61  ;;  %v11917_v61 = vld [vmem:[%s15722_s3 + $0x8d4] ss:$8 sps:$4 sm:$0xff]  }
 0x4f2   : > { %9040 = vmatmul.mubr.bf16.gmra.mrb[16].mxu1 %v10162_v40  ;;  %v11920_v40 = vld [vmem:[%s15722_s3 + $0x8e4] ss:$8 sps:$4 sm:$0xff]  }
 0x4f3   : > { %9067 = vmatpush1.bf16.msra.mxu1 %v11852_v48  ;;  %9082 = vmatprep.mubr.bf16.mxu1 %v15995_v14  ;;  %v11915_v48 = vld [vmem:[%s15722_s3 + $0x8d0] ss:$8 sps:$4 sm:$0xff]   ;;  %v11923_v14 = vld [vmem:[%s15722_s3 + $0x8f4] ss:$8 sps:$4 sm:$0xff]  }
 0x4f4   : > { %9068 = vmatprep.subr.bf16.mxu1 %v11857_v55  ;;  %v11918_v55 = vld [vmem:[%s15722_s3 + $0x8e0] ss:$8 sps:$4 sm:$0xff]  }
 0x4f7   : > { %9069 = vmatpush1.bf16.msra.mxu1 %v11855_v21  ;;  %v11921_v21 = vld [vmem:[%s15722_s3 + $0x8f0] ss:$8 sps:$4 sm:$0xff]  }
 0x4f8   : > { %9070 = vmatprep.subr.bf16.mxu1 %v11860_v3  ;;  %v16002_v3 = vcombine.low %v14666_v8, %v14673_v11  ;;  %v6278_v8 = vld [vmem:[#allocation4 + $0x2c8] sm:$0x77] }
 0x4f9   : > { %v10167_v11 = vcombine.high %v14781_v32, %v6278_v8 }
 0x4fb   : > { %9071 = vmatpush1.bf16.msra.mxu1 %v11858_v22  ;;  %v16003_v22 = vcombine.high %v14710_v59, %v14726_v7 }
 0x4fc   : > { %9072 = vmatprep.subr.bf16.mxu1 %v11863_v25  ;;  %v16004_v25 = vcombine.low %v14710_v59, %v14726_v7  ;;  %v10166_v59 = vcombine.low %v14781_v32, %v6278_v8  ;;  %v6567_v7 = vld [vmem:[%s15723_s4] sm:$0x3] }
 0x4ff   : > { %9073 = vmatpush1.bf16.msra.mxu1 %v11861_v53  ;;  %v16005_v53 = vcombine.high %v14733_v56, %v14740_v19 }
 0x500   : > { %9074 = vmatprep.subr.bf16.mxu1 %v11866_v30  ;;  %v16006_v30 = vcombine.low %v14733_v56, %v14740_v19  ;;  %v16007_v56 = vld [vmem:[#allocation12_spill] sm:$0xff] }
 0x501   : > { %v16008_v19 = vsub.s32 0, %v16007_v56 }
 0x503   : > { %9075 = vmatpush1.bf16.msra.mxu1 %v11864_v5  ;;  %v16009_v5 = vsub.s32 1, %v16007_v56 }
 0x504   : > { %9076 = vmatprep.subr.bf16.mxu1 %v11869_v38 }
 0x505   : > { %v15597_v38 = vrot.slane %v6567_v7, %v16009_v5 }
 0x507   : > { %9077 = vmatpush1.bf16.msra.mxu1 %v11867_v62 }
 0x508   : > { %9078 = vmatprep.subr.bf16.mxu1 %v11872_v52  ;;  %v9217_v52 = vld [vmem:[%s12119_s16 + $0x8] sm:$0xff] }
 0x50b   : > { %9079 = vmatpush1.bf16.msra.mxu1 %v11870_v26  ;;  %v9225_v26 = vld [vmem:[%s12119_s16 + $0x18] sm:$0xff] }
 0x50c   : > { %9080 = vmatprep.subr.bf16.mxu1 %v11875_v23 }
 0x50f   : > { %9081 = vmatpush1.bf16.msra.mxu1 %v11873_v39 }
 0x510   : > { %9133 = vmatprep.subr.bf16.mxu1 %v11878_v4 }
 0x512   : > { %9083 = vmatmul.mubr.bf16.vlgmr.msra.gmra.mrb[0].mxu1 %v15996_v35 }
 0x513   : > { %9092 = vmatprep.mubr.bf16.mxu1 %v10111_v41  ;;  %9134 = vmatpush1.bf16.msra.mxu1 %v11876_v45  ;;  %v15997_v41 = vld [vmem:[#allocation13_spill] sm:$0xff] }
 0x514   : > { %9135 = vmatprep.subr.bf16.mxu1 %v11881_v63  ;;  %v15999_v47 = vcombine.high %v15997_v41, %v15998_v54 }
 0x517   : > { %9136 = vmatpush1.bf16.msra.mxu1 %v11879_v37 }
 0x518   : > { %9137 = vmatprep.subr.bf16.mxu1 %v11884_v50 }
 0x51a   : > { %9093 = vmatmul.mubr.bf16.gmra.mrb[4].mxu1 %v10110_v1  ;;  %v16000_v1 = vcombine.low %v15997_v41, %v15998_v54  ;;  %v9256_v54 = vld [vmem:[%s12119_s16 + $0x28] sm:$0xff] }
 0x51b   : > { %9102 = vmatprep.mubr.bf16.mxu1 %v15999_v47  ;;  %9138 = vmatpush1.bf16.msra.mxu1 %v11882_v36  ;;  %v9229_v36 = vrot.slane %v9225_v26, 6 }
 0x51c   : > { %9139 = vmatprep.subr.bf16.mxu1 %v11887_v44  ;;  %v9255_v44 = vld [vmem:[%s12119_s16 + $0x20] sm:$0xff] }
 0x51f   : > { %9140 = vmatpush1.bf16.msra.mxu1 %v11885_v27 }
 0x520   : > { %9141 = vmatprep.subr.bf16.mxu1 %v11890_v51  ;;  %v9259_v51 = vrot.slane %v9255_v44, 4  ;;  %v9325_v44 = vld [vmem:[%s12119_s16 + $0x50] sm:$0xff] }
 0x522   : > { %9103 = vmatmul.mubr.bf16.gmra.mrb[8].mxu1 %v16000_v1 }
 0x523   : > { %9112 = vmatprep.mubr.bf16.mxu1 %v10147_v9  ;;  %9142 = vmatpush1.bf16.msra.mxu1 %v11888_v18  ;;  %v11899_v9 = vld [vmem:[%s15722_s3 + $0x874] ss:$8 sps:$4 sm:$0xff]  }
 0x524   : > { %9143 = vmatprep.subr.bf16.mxu1 %v11893_v0  ;;  %v9286_v18 = vld [vmem:[%s12119_s16 + $0x30] sm:$0xff]  ;;  %v9287_v0 = vld [vmem:[%s12119_s16 + $0x38] sm:$0xff] }
 0x527   : > { %9144 = vmatpush1.bf16.msra.mxu1 %v11891_v43 }
 0x528   : > { %9145 = vmatprep.subr.bf16.mxu1 %v11896_v28  ;;  %v9260_v28 = vrot.slane %v9256_v54, 4 }
 0x52a   : > { %9113 = vmatmul.mubr.bf16.gmra.mrb[12].mxu1 %v10146_v6  ;;  %v11903_v6 = vld [vmem:[%s15722_s3 + $0x890] ss:$8 sps:$4 sm:$0xff]  }
 0x52b   : > { %9122 = vmatprep.mubr.bf16.mxu1 %v10165_v34  ;;  %9146 = vmatpush1.bf16.msra.mxu1 %v11894_v31 }
 0x52c   : > { %9147 = vmatprep.subr.bf16.mxu1 %v11899_v9 }
 0x52f   : > { %9148 = vmatpush1.bf16.msra.mxu1 %v11897_v49  ;;  %v9290_v49 = vrot.slane %v9286_v18, 2  ;;  %v9355_v18 = vld [vmem:[%s12119_s16 + $0x60] sm:$0xff] }
 0x530   : > { %9149 = vmatprep.subr.bf16.mxu1 %v11902_v2  ;;  %v9291_v2 = vrot.slane %v9287_v0, 2 }
 0x532   : > { %9123 = vmatmul.mubr.bf16.gmra.mrb[16].mxu1 %v10164_v17 }
 0x533   : > { %9150 = vmatpush1.bf16.msra.mxu1 %v11900_v33  ;;  %9165 = vmatprep.mubr.bf16.mxu1 %v16001_v16 }
 0x534   : > { %9151 = vmatprep.subr.bf16.mxu1 %v11905_v15 }
 0x537   : > { %9152 = vmatpush1.bf16.msra.mxu1 %v11903_v6 }
 0x538   : > { %9153 = vmatprep.subr.bf16.mxu1 %v11908_v24 }
 0x53b   : > { %9154 = vmatpush1.bf16.msra.mxu1 %v11906_v10 }
 0x53c   : > { %9155 = vmatprep.subr.bf16.mxu1 %v11911_v13 }
 0x53f   : > { %9156 = vmatpush1.bf16.msra.mxu1 %v11909_v60 }
 0x540   : > { %9157 = vmatprep.subr.bf16.mxu1 %v11914_v29 }
 0x543   : > { %9158 = vmatpush1.bf16.msra.mxu1 %v11912_v46 }
 0x544   : > { %9159 = vmatprep.subr.bf16.mxu1 %v11917_v61 }
 0x547   : > { %9160 = vmatpush1.bf16.msra.mxu1 %v11915_v48 }
 0x548   : > { %9161 = vmatprep.subr.bf16.mxu1 %v11920_v40 }
 0x54b   : > { %9162 = vmatpush1.bf16.msra.mxu1 %v11918_v55 }
 0x54c   : > { %9163 = vmatprep.subr.bf16.mxu1 %v11923_v14 }
 0x54f   : > { %9164 = vmatpush1.bf16.msra.mxu1 %v11921_v21 }
 0x552   : > { %9166 = vmatmul.mubr.bf16.vlgmr.msra.gmra.mrb[0].mxu1 %v16002_v3 }
 0x553   : > { %9175 = vmatprep.mubr.bf16.mxu1 %v16003_v22 }
 0x55a   : > { %9176 = vmatmul.mubr.bf16.gmra.mrb[4].mxu1 %v16004_v25 }
 0x55b   : > { %9185 = vmatprep.mubr.bf16.mxu1 %v16005_v53 }
 0x562   : > { %9186 = vmatmul.mubr.bf16.gmra.mrb[8].mxu1 %v16006_v30 }
 0x563   : > { %9195 = vmatprep.mubr.bf16.mxu1 %v10149_v57  ;;  %v15592_v57 = vrot.slane %v6567_v7, %v16008_v19 }
 0x56a   : > { %9196 = vmatmul.mubr.bf16.gmra.mrb[12].mxu1 %v10148_v58  ;;  %v9224_v58 = vld [vmem:[%s12119_s16 + $0x10] sm:$0xff] }
 0x56b   : > { %9205 = vmatprep.mubr.bf16.mxu1 %v10167_v11  ;;  %v9228_v63 = vrot.slane %v9224_v58, 6 }
 0x572   : > { %9206 = vmatmul.mubr.bf16.gmra.mrb[16].mxu1 %v10166_v59 }
 0x625   : > { %v9167_v42 = vpop.f32.mrb[0].mxu1 }
 0x626   : > { %v10675_v32 = vadd.f32 %v9167_v42, %v15592_v57  ;;  %v9169_v62 = vpop.f32.mrb[1].mxu1 }
 0x627   : > { %v10676_v23 = vadd.f32 %v9169_v62, %v15597_v38  ;;  %v9171_v39 = vpop.f32.mrb[2].mxu1 }
 0x628   : > { %v9218_v4 = vadd.f32 %v10675_v32, %v9216_v20  ;;  %v10677_v45 = vadd.f32 %v9171_v39, %v15592_v57  ;;  %v9173_v35 = vpop.f32.mrb[3].mxu1 }
 0x629   : > { %v9219_v37 = vadd.f32 %v10676_v23, %v9217_v52  ;;  %v10678_v50 = vadd.f32 %v9173_v35, %v15597_v38  ;;  %v9317_v52 = vld [vmem:[%s12119_s16 + $0x40] sm:$0xff] }
 0x62a   : > { %v9220_v41 = vmax.f32 %v9218_v4, 0.0  ;;  %v9232_v27 = vadd.f32 %v10677_v45, %v9228_v63 }
 0x62b   : > { %v9221_v47 = vmax.f32 %v9219_v37, 0.0  ;;  %v9233_v1 = vadd.f32 %v10678_v50, %v9229_v36 }
 0x62c   : > { %9222 = vst [vmem:[%s15611_s11] sm:$0xff] %v9220_v41  ;;  %v9236_v33 = vmax.f32 %v9232_v27, 0.0 }
 0x62d   : > { %9223 = vst [vmem:[%s15611_s11 + $0x8] sm:$0xff] %v9221_v47  ;;  %v9177_v43 = vpop.f32.mrb[4].mxu1  ;;  %v9237_v24 = vmax.f32 %v9233_v1, 0.0  ;;  %v9326_v47 = vld [vmem:[%s12119_s16 + $0x58] sm:$0xff] }
 0x62e   : > { %v10679_v12 = vadd.f32 %v9177_v43, %v15592_v57  ;;  %v9179_v31 = vpop.f32.mrb[5].mxu1  ;;  %v9245_v14 = vrot.slane %v9236_v33, 2 }
 0x62f   : > { %v10680_v9 = vadd.f32 %v9179_v31, %v15597_v38  ;;  %v9181_v34 = vpop.f32.mrb[6].mxu1  ;;  %v9248_v25 = vrot.slane %v9237_v24, 2 }
 0x630   : > { %v9234_v17 = vadd.f32 %v10679_v12, %v9228_v63  ;;  %v9263_v15 = vadd.f32 %v10679_v12, %v9259_v51  ;;  %v10681_v16 = vadd.f32 %v9181_v34, %v15592_v57  ;;  %v9183_v6 = vpop.f32.mrb[7].mxu1  ;;  %v9318_v63 = vld [vmem:[%s12119_s16 + $0x48] sm:$0xff] }
 0x631   : > { %v9235_v10 = vadd.f32 %v10680_v9, %v9229_v36  ;;  %v9264_v13 = vadd.f32 %v10680_v9, %v9260_v28  ;;  %v10682_v60 = vadd.f32 %v9183_v6, %v15597_v38  ;;  %v9356_v12 = vld [vmem:[%s12119_s16 + $0x68] sm:$0xff] }
 0x632   : > { %v9238_v29 = vmax.f32 %v9234_v17, 0.0  ;;  %v9267_v46 = vmax.f32 %v9263_v15, 0.0  ;;  %v9265_v61 = vadd.f32 %v10681_v16, %v9259_v51  ;;  %v9294_v22 = vadd.f32 %v10681_v16, %v9290_v49 }
 0x633   : > { %v9239_v48 = vmax.f32 %v9235_v10, 0.0  ;;  %v9268_v40 = vmax.f32 %v9264_v13, 0.0  ;;  %v9266_v55 = vadd.f32 %v10682_v60, %v9260_v28  ;;  %v9295_v8 = vadd.f32 %v10682_v60, %v9291_v2 }
 0x634   : > { %v9246_v21 = vrot.slane %v9238_v29, 2  ;;  %v9269_v3 = vmax.f32 %v9265_v61, 0.0  ;;  %v9276_v7 = vrot.slane %v9267_v46, 4  ;;  %v9298_v23 = vmax.f32 %v9294_v22, 0.0 }
 0x635   : > { %v9249_v53 = vrot.slane %v9239_v48, 2  ;;  %v9270_v30 = vmax.f32 %v9266_v55, 0.0  ;;  %v9187_v11 = vpop.f32.mrb[8].mxu1  ;;  %v9279_v20 = vrot.slane %v9268_v40, 4  ;;  %v9299_v37 = vmax.f32 %v9295_v8, 0.0  ;;  %v9385_v40 = vld [vmem:[%s12119_s16 + $0x70] sm:$0xff] }
 0x636   : > { %v9247_v59 = vsel %vm9244_vm0, %v9245_v14, %v9246_v21  ;;  %v9277_v56 = vrot.slane %v9269_v3, 4  ;;  %v10683_v19 = vadd.f32 %v9187_v11, %v15592_v57  ;;  %v9189_v5 = vpop.f32.mrb[9].mxu1  ;;  %v9307_v0 = vrot.slane %v9298_v23, 6  ;;  %v9386_v3 = vld [vmem:[%s12119_s16 + $0x78] sm:$0xff]  ;;  %s10654_s16 = sshll.u32 %s12054_s22, 11 }
 0x637   : > { %9253 = vst [vmem:[%s15611_s11 + $0x10] sm:$0xff] %v9247_v59  ;;  %v9250_v42 = vsel %vm9244_vm0, %v9248_v25, %v9249_v53  ;;  %v9280_v58 = vrot.slane %v9270_v30, 4  ;;  %v10684_v32 = vadd.f32 %v9189_v5, %v15597_v38  ;;  %v9191_v62 = vpop.f32.mrb[10].mxu1  ;;  %v9329_v28 = vrot.slane %v9325_v44, 6  ;;  %s15667_s22 = scalar_lea.hbm %s15724_s5, %s10654_s16 }
 0x638   : > { %9254 = vst [vmem:[%s15611_s11 + $0x18] sm:$0xff] %v9250_v42  ;;  %v9278_v26 = vsel %vm9275_vm2, %v9276_v7, %v9277_v56  ;;  %v9296_v39 = vadd.f32 %v10683_v19, %v9290_v49  ;;  %v10685_v4 = vadd.f32 %v9191_v62, %v15592_v57  ;;  %v9193_v45 = vpop.f32.mrb[11].mxu1  ;;  %v9310_v31 = vrot.slane %v9299_v37, 6 }
 0x639   : > { %9284 = vst [vmem:[%s15611_s11 + $0x20] sm:$0xff] %v9278_v26  ;;  %v9281_v35 = vsel %vm9275_vm2, %v9279_v20, %v9280_v58  ;;  %v9297_v50 = vadd.f32 %v10684_v32, %v9291_v2  ;;  %v10686_v36 = vadd.f32 %v9193_v45, %v15597_v38  ;;  %v9330_v2 = vrot.slane %v9326_v47, 6 }
 0x63a   : > { %9285 = vst [vmem:[%s15611_s11 + $0x28] sm:$0xff] %v9281_v35  ;;  %v9300_v41 = vmax.f32 %v9296_v39, 0.0  ;;  %v9319_v54 = vadd.f32 %v10685_v4, %v9317_v52  ;;  %v9359_v16 = vrot.slane %v9355_v18, 4  ;;  %v9360_v13 = vrot.slane %v9356_v12, 4 }
 0x63b   : > { %v9301_v27 = vmax.f32 %v9297_v50, 0.0  ;;  %v9320_v51 = vadd.f32 %v10686_v36, %v9318_v63  ;;  %v9389_v8 = vrot.slane %v9385_v40, 2  ;;  %v9390_v7 = vrot.slane %v9386_v3, 2 }
 0x63c   : > { %v9308_v1 = vrot.slane %v9300_v41, 6  ;;  %v9321_v43 = vmax.f32 %v9319_v54, 0.0 }
 0x63d   : > { %v9311_v9 = vrot.slane %v9301_v27, 6  ;;  %v9322_v34 = vmax.f32 %v9320_v51, 0.0  ;;  %v9197_v49 = vpop.f32.mrb[12].mxu1 }
 0x63e   : > { %v9309_v33 = vsel %vm1159_vm9, %v9307_v0, %v9308_v1  ;;  %9323 = vst [vmem:[%s15611_s11 + $0x40] sm:$0xff] %v9321_v43  ;;  %v10687_v17 = vadd.f32 %v9197_v49, %v15592_v57  ;;  %v9199_v15 = vpop.f32.mrb[13].mxu1 }
 0x63f   : > { %9315 = vst [vmem:[%s15611_s11 + $0x30] sm:$0xff] %v9309_v33  ;;  %v9312_v6 = vsel %vm1159_vm9, %v9310_v31, %v9311_v9  ;;  %9324 = vst [vmem:[%s15611_s11 + $0x48] sm:$0xff] %v9322_v34  ;;  %v10688_v24 = vadd.f32 %v9199_v15, %v15597_v38  ;;  %v9201_v10 = vpop.f32.mrb[14].mxu1 }
 0x640   : > { %9316 = vst [vmem:[%s15611_s11 + $0x38] sm:$0xff] %v9312_v6  ;;  %v9333_v60 = vadd.f32 %v10687_v17, %v9329_v28  ;;  %v10689_v29 = vadd.f32 %v9201_v10, %v15592_v57  ;;  %v9203_v46 = vpop.f32.mrb[15].mxu1 }
 0x641   : > { %v9334_v61 = vadd.f32 %v10688_v24, %v9330_v2  ;;  %v10690_v48 = vadd.f32 %v9203_v46, %v15597_v38 }
 0x642   : > { %v9337_v55 = vmax.f32 %v9333_v60, 0.0  ;;  %v9335_v14 = vadd.f32 %v10689_v29, %v9329_v28  ;;  %v9363_v21 = vadd.f32 %v10689_v29, %v9359_v16 }
 0x643   : > { %v9338_v22 = vmax.f32 %v9334_v61, 0.0  ;;  %v9336_v25 = vadd.f32 %v10690_v48, %v9330_v2  ;;  %v9364_v53 = vadd.f32 %v10690_v48, %v9360_v13 }
 0x644   : > { %v9339_v30 = vmax.f32 %v9335_v14, 0.0  ;;  %v9345_v56 = vrot.slane %v9337_v55, 2  ;;  %v9367_v5 = vmax.f32 %v9363_v21, 0.0 }
 0x645   : > { %v9340_v11 = vmax.f32 %v9336_v25, 0.0  ;;  %v9207_v59 = vpop.f32.mrb[16].mxu1  ;;  %v9348_v58 = vrot.slane %v9338_v22, 2  ;;  %v9368_v62 = vmax.f32 %v9364_v53, 0.0 }
 0x646   : > { %v9346_v19 = vrot.slane %v9339_v30, 2  ;;  %v10691_v42 = vadd.f32 %v9207_v59, %v15592_v57  ;;  %v9209_v20 = vpop.f32.mrb[17].mxu1  ;;  %v9375_v18 = vrot.slane %v9367_v5, 4 }
 0x647   : > { %v9349_v32 = vrot.slane %v9340_v11, 2  ;;  %v10692_v52 = vadd.f32 %v9209_v20, %v15597_v38  ;;  %v9211_v26 = vpop.f32.mrb[18].mxu1  ;;  %v9378_v1 = vrot.slane %v9368_v62, 4 }
 0x648   : > { %v9347_v23 = vsel %vm9244_vm0, %v9345_v56, %v9346_v19  ;;  %v9365_v39 = vadd.f32 %v10691_v42, %v9359_v16  ;;  %v9393_v4 = vadd.f32 %v10691_v42, %v9389_v8  ;;  %v10693_v45 = vadd.f32 %v9211_v26, %v15592_v57  ;;  %v9213_v63 = vpop.f32.mrb[19].mxu1 }
 0x649   : > { %9353 = vst [vmem:[%s15611_s11 + $0x50] sm:$0xff] %v9347_v23  ;;  %v9350_v35 = vsel %vm9244_vm0, %v9348_v58, %v9349_v32  ;;  %v9366_v37 = vadd.f32 %v10692_v52, %v9360_v13  ;;  %v9394_v50 = vadd.f32 %v10692_v52, %v9390_v7  ;;  %v10694_v36 = vadd.f32 %v9213_v63, %v15597_v38 }
 0x64a   : > { %9354 = vst [vmem:[%s15611_s11 + $0x58] sm:$0xff] %v9350_v35  ;;  %v9369_v44 = vmax.f32 %v9365_v39, 0.0  ;;  %v9397_v41 = vmax.f32 %v9393_v4, 0.0  ;;  %v9395_v54 = vadd.f32 %v10693_v45, %v9389_v8 }
 0x64b   : > { %v9370_v47 = vmax.f32 %v9366_v37, 0.0  ;;  %v9398_v27 = vmax.f32 %v9394_v50, 0.0  ;;  %v9396_v51 = vadd.f32 %v10694_v36, %v9390_v7 }
 0x64c   : > { %v9376_v57 = vrot.slane %v9369_v44, 4  ;;  %v9399_v0 = vmax.f32 %v9395_v54, 0.0  ;;  %v9405_v12 = vrot.slane %v9397_v41, 6 }
 0x64d   : > { %v9379_v43 = vrot.slane %v9370_v47, 4  ;;  %v9400_v38 = vmax.f32 %v9396_v51, 0.0  ;;  %v9408_v34 = vrot.slane %v9398_v27, 6 }
 0x64e   : > { %v9377_v28 = vsel %vm9275_vm2, %v9375_v18, %v9376_v57  ;;  %v9406_v31 = vrot.slane %v9399_v0, 6 }
 0x64f   : > { %9383 = vst [vmem:[%s15611_s11 + $0x60] sm:$0xff] %v9377_v28  ;;  %v9380_v9 = vsel %vm9275_vm2, %v9378_v1, %v9379_v43  ;;  %v9409_v49 = vrot.slane %v9400_v38, 6 }
 0x650   : > { %9384 = vst [vmem:[%s15611_s11 + $0x68] sm:$0xff] %v9380_v9  ;;  %v9407_v2 = vsel %vm1159_vm9, %v9405_v12, %v9406_v31 }
 0x651   : > { %9413 = vst [vmem:[%s15611_s11 + $0x70] sm:$0xff] %v9407_v2  ;;  %v9410_v33 = vsel %vm1159_vm9, %v9408_v34, %v9409_v49 }
 0x652   : > { %9414 = vst [vmem:[%s15611_s11 + $0x78] sm:$0xff] %v9410_v33 }
 0x653   : > { %11947 = shalt.err (!%p11944_p3)
}
 0x654   : > { %s11948_s30 = scalar_lea.hbm %s15667_s22, 2048  ;;  %s11952_s8 = scalar_lea.hbm %s15724_s5, 4096 }
 0x655   : > { %p11949_p4 = scmp.ne.s32.totalorder %s15667_s22, %s11948_s30  ;;  %p11953_p9 = scmp.lt.u32.totalorder %s15667_s22, %s15724_s5 }
 0x656   : > { %p11954_p10 = scmp.lt.u32.totalorder %s11952_s8, %s11948_s30  ;;  %p11956_p12 = scmp.lt.u32.totalorder %s11948_s30, %s15667_s22 }
 0x657   : > { %p11950_p7 = pnand %p11949_p4, %p12071_p5 }
 0x658   : > { %p11955_p11 = por %p11954_p10, %p11953_p9 }
 0x659   : > { %p11951_p8 = pneg %p11950_p7 }
 0x65a   : > { %p11957_p13 = por %p11956_p12, %p11955_p11 }
 0x65c   : > { %p11958_p0 = pnand %p11957_p13, %p11951_p8 }
 0x65e   : > { %11961 = shalt.err (!%p11958_p0)
}
 0x65f   : > { %s12001_s11 = smov 256   ;;  %s12002_s16 = smov 16  }
 0x660   : > { %11015 = dma.vmem_to_hbm [thread:$0]  (%p12071_p5), %s15669_s12, 2048, %s15667_s22, %s15678_s17, %s12001_s11, %s12001_s11, %s12002_s16  }
 0x661 PF: > { %p11021_p1 = scmp.ge.s32.totalorder %s11996_s21, 2  ;;  %s9445_s13 = sand.u32 1, %s11984_s18  }
 0x662   : > { %s9446_s14 = scalar_lea.sflag [#allocation6], %s9445_s13 }
 0x663   : > { %p11018_p2 = pnand %p11021_p1, %p12075_p6 }
 0x665   : > { %11979 = dma.done.wait (!%p11018_p2), %s9446_s14, 2048  }
 0x666   : > { %11981 = vsyncadd (!%p11018_p2), %s9446_s14, 4294965248  ;;  %p15_p3 = scmp.ge.s32.totalorder %s12058_s24, 4   ;;  %s16010_s18 = smov %s11988_s19 }
 0x667   : > { %s16011_s19 = smov %s11992_s20  ;;  %s16012_s20 = smov %s12069_s27 }
 0x668   : > { %s16013_s21 = smov %s12058_s24  ;;  %17 = sbr.rel (!%p15_p3) target bundleno = 3 (0x3), region = 75 }
 0x66f   :  { %9451 = vsyncpa [#allocation6], 1 }
 0x670   :  { %9453 = vsyncpa [#allocation6 + $0x1], 1 }

</bundles_post_ra>
